<compile_context>
chip_gen: v5e
topology: v5e:2x2
jax: 0.10.0
libtpu: 0.0.40
codegen_flags: <defaults>
</compile_context>

<pallas_src>
import functools

import jax
import jax.numpy as jnp
from jax.experimental import pallas as pl
from jax.experimental.pallas import tpu as pltpu

TM_MAX = 1024              # lane-axis row tile (multiple of 256)
BN_EPS = 1e-5              # PyTorch BatchNorm default
COMPUTE_DTYPE = jnp.bfloat16


# ----------------------------------------------------------------------------
# Pallas kernels: lane-dense matmul + BN shift + Mish, fully fused
# ----------------------------------------------------------------------------
def _mish_f32(y):
    # Mish(x) = x * tanh(softplus(x)); logaddexp is overflow-safe.
    return y * jnp.tanh(jnp.logaddexp(y, 0.0))


def _conv_bn_kernel(p_ref, w_ref, shift_ref, o_ref, *, mish):
    # p_ref: (K, TM) bf16   w_ref: (N, K) bf16 (BN scale folded in)
    # shift_ref: (N, 1) f32 o_ref: (N, TM)
    y = jnp.dot(w_ref[...], p_ref[...], preferred_element_type=jnp.float32)
    y = y + shift_ref[...]
    if mish:
        y = _mish_f32(y)
    o_ref[...] = y.astype(o_ref.dtype)


def _deconv_redir_fmish_kernel(p_ref, w_ref, shift_ref,
                               skip_ref, wr_ref, shiftr_ref, o_ref):
    # Fused: FMish( BN(convT(x)) + BN(1x1 redir conv(skip_src)) )
    y = jnp.dot(w_ref[...], p_ref[...], preferred_element_type=jnp.float32)
    y = y + shift_ref[...]
    r = jnp.dot(wr_ref[...], skip_ref[...], preferred_element_type=jnp.float32)
    y = y + r + shiftr_ref[...]
    o_ref[...] = _mish_f32(y).astype(o_ref.dtype)


def _round_up(x, m):
    return (x + m - 1) // m * m


def _run_matmul(kernel_fn, patches_t, w_lhs, shift, out_dtype,
                skip=None, wr=None, shiftr=None):
    # patches_t: (K, M) bf16, w_lhs: (N, K) bf16, shift: (N,) f32
    K, M = patches_t.shape
    N = w_lhs.shape[0]

    tm = min(TM_MAX, _round_up(M, 128))
    Mp = _round_up(M, tm)
    if Mp != M:                      # only the tiny deepest layer ever pads
        patches_t = jnp.pad(patches_t, ((0, 0), (0, Mp - M)))
        if skip is not None:
            skip = jnp.pad(skip, ((0, 0), (0, Mp - M)))

    args = [patches_t, w_lhs, shift.reshape(N, 1).astype(jnp.float32)]
    in_specs = [
        pl.BlockSpec((K, tm), lambda i: (0, i)),
        pl.BlockSpec((N, K), lambda i: (0, 0)),
        pl.BlockSpec((N, 1), lambda i: (0, 0)),
    ]
    if skip is not None:
        Cs = skip.shape[0]
        args += [skip, wr, shiftr.reshape(N, 1).astype(jnp.float32)]
        in_specs += [
            pl.BlockSpec((Cs, tm), lambda i: (0, i)),
            pl.BlockSpec((N, Cs), lambda i: (0, 0)),
            pl.BlockSpec((N, 1), lambda i: (0, 0)),
        ]

    out = pl.pallas_call(
        kernel_fn,
        out_shape=jax.ShapeDtypeStruct((N, Mp), out_dtype),
        grid=(Mp // tm,),
        in_specs=in_specs,
        out_specs=pl.BlockSpec((N, tm), lambda i: (0, i)),
        compiler_params=pltpu.CompilerParams(
            dimension_semantics=("parallel",)),
    )(*args)
    return out[:, :M] if Mp != M else out


# ----------------------------------------------------------------------------
# Plain-JAX glue: channel-first im2col, weight reshaping, convT -> conv
# ----------------------------------------------------------------------------
def _im2col_cf(x, k, stride, pad):
    # x: (C, B, D, H, W) -> patches^T (k^3*C, B*Do*Ho*Wo), K-order (kd,kh,kw,c)
    C, B, D, H, W = x.shape
    Do = (D + 2 * pad - k) // stride + 1
    Ho = (H + 2 * pad - k) // stride + 1
    Wo = (W + 2 * pad - k) // stride + 1
    xp = jnp.pad(x, ((0, 0), (0, 0), (pad, pad), (pad, pad), (pad, pad)))
    cols = []
    for kd in range(k):
        for kh in range(k):
            for kw in range(k):
                cols.append(xp[:, :, kd:kd + Do * stride:stride,
                               kh:kh + Ho * stride:stride,
                               kw:kw + Wo * stride:stride])
    p = jnp.stack(cols, axis=0).reshape(k * k * k * C, B * Do * Ho * Wo)
    return p, (B, Do, Ho, Wo)


def _conv_w_lhs(w, scale):
    # PyTorch Conv3d weight (Cout, Cin, kD, kH, kW) -> (Cout, k^3*Cin),
    # K-order (kd,kh,kw,cin); BN scale folded into rows.
    Cout, Cin, kd, kh, kw = w.shape
    wl = jnp.transpose(w, (0, 2, 3, 4, 1)).reshape(Cout, kd * kh * kw * Cin)
    return (wl * scale[:, None]).astype(COMPUTE_DTYPE)


def _deconv_w_lhs(w, scale):
    # ConvTranspose3d weight (Cin, Cout, kD, kH, kW) -> equivalent forward-conv
    # LHS (Cout, k^3*Cin): flip spatial taps, swap in/out channels.
    Cin, Cout, kd, kh, kw = w.shape
    wf = jnp.flip(w, axis=(2, 3, 4))
    wl = jnp.transpose(wf, (1, 2, 3, 4, 0)).reshape(Cout, kd * kh * kw * Cin)
    return (wl * scale[:, None]).astype(COMPUTE_DTYPE)


def conv3d_bn(x, w_pt, scale, shift, *, stride, pad, mish,
              out_dtype=COMPUTE_DTYPE):
    # x: (C, B, D, H, W) -> (Cout, B, Do, Ho, Wo)
    k = w_pt.shape[-1]
    patches, (B, Do, Ho, Wo) = _im2col_cf(x, k, stride, pad)
    w_lhs = _conv_w_lhs(w_pt, scale)
    out = _run_matmul(functools.partial(_conv_bn_kernel, mish=mish),
                      patches.astype(COMPUTE_DTYPE), w_lhs, shift, out_dtype)
    return out.reshape(w_lhs.shape[0], B, Do, Ho, Wo)


def deconv3d_bn_redir_fmish(x, w_pt, scale, shift,
                            skip_src, wr_pt, scaler, shiftr,
                            *, stride=2, pad=1, out_pad=1,
                            out_dtype=COMPUTE_DTYPE):
    # FMish( BN(ConvTranspose3d(x)) + BN(1x1x1 conv(skip_src)) ), fully fused.
    # ConvTranspose3d(k=3,s=2,p=1,op=1) == stride-1 conv of the zero-dilated,
    # asymmetrically padded input with the flipped, io-swapped kernel.
    k = w_pt.shape[-1]
    C, B, D, H, W = x.shape
    Dd, Hd, Wd = (D - 1) * stride + 1, (H - 1) * stride + 1, (W - 1) * stride + 1
    xd = jnp.zeros((C, B, Dd, Hd, Wd), x.dtype)
    xd = xd.at[:, :, ::stride, ::stride, ::stride].set(x)
    lo = k - 1 - pad
    hi = k - 1 - pad + out_pad
    xd = jnp.pad(xd, ((0, 0), (0, 0), (lo, hi), (lo, hi), (lo, hi)))

    patches, (B2, Do, Ho, Wo) = _im2col_cf(xd, k, 1, 0)
    w_lhs = _deconv_w_lhs(w_pt, scale)
    N = w_lhs.shape[0]
    Cs = skip_src.shape[0]
    wr_lhs = (wr_pt.reshape(N, Cs) * scaler[:, None]).astype(COMPUTE_DTYPE)
    skip_flat = skip_src.reshape(Cs, -1).astype(COMPUTE_DTYPE)

    out = _run_matmul(_deconv_redir_fmish_kernel,
                      patches.astype(COMPUTE_DTYPE), w_lhs, shift, out_dtype,
                      skip=skip_flat, wr=wr_lhs, shiftr=shiftr)
    return out.reshape(N, B, Do, Ho, Wo)


# ----------------------------------------------------------------------------
# Parameters (deterministic synthetic init, PyTorch layouts)
# ----------------------------------------------------------------------------
def _fuse_bn(gamma, beta, mean, var, eps=BN_EPS):
    scale = gamma / jnp.sqrt(var + eps)
    shift = beta - mean * scale
    return scale, shift


def init_params(key, c):
    keys = iter(jax.random.split(key, 32))

    def conv_w(cout, cin, k):
        return 0.05 * jax.random.normal(next(keys), (cout, cin, k, k, k), jnp.float32)

    def deconv_w(cin, cout, k):
        return 0.05 * jax.random.normal(next(keys), (cin, cout, k, k, k), jnp.float32)

    def bn(ch):
        k1, k2, k3, k4 = jax.random.split(next(keys), 4)
        gamma = 1.0 + 0.1 * jax.random.normal(k1, (ch,), jnp.float32)
        beta = 0.1 * jax.random.normal(k2, (ch,), jnp.float32)
        mean = 0.1 * jax.random.normal(k3, (ch,), jnp.float32)
        var = 1.0 + 0.1 * jax.random.uniform(k4, (ch,), jnp.float32)
        return _fuse_bn(gamma, beta, mean, var)

    p = {}
    p["conv1"] = (conv_w(2 * c, c, 3),) + bn(2 * c)
    p["conv2"] = (conv_w(2 * c, 2 * c, 3),) + bn(2 * c)
    p["conv3"] = (conv_w(4 * c, 2 * c, 3),) + bn(4 * c)
    p["conv4"] = (conv_w(4 * c, 4 * c, 3),) + bn(4 * c)
    p["conv5"] = (deconv_w(4 * c, 2 * c, 3),) + bn(2 * c)
    p["conv6"] = (deconv_w(2 * c, c, 3),) + bn(c)
    p["redir1"] = (conv_w(c, c, 1),) + bn(c)
    p["redir2"] = (conv_w(2 * c, 2 * c, 1),) + bn(2 * c)
    return p


# ----------------------------------------------------------------------------
# hourglass forward
# ----------------------------------------------------------------------------
def hourglass_forward(x_ncdhw, params):
    # NCDHW -> channel-first internal layout (C, B, D, H, W), bf16 compute.
    x = jnp.transpose(x_ncdhw, (1, 0, 2, 3, 4)).astype(COMPUTE_DTYPE)
    c1 = conv3d_bn(x,  *params["conv1"], stride=2, pad=1, mish=True)
    c2 = conv3d_bn(c1, *params["conv2"], stride=1, pad=1, mish=True)
    c3 = conv3d_bn(c2, *params["conv3"], stride=2, pad=1, mish=True)
    c4 = conv3d_bn(c3, *params["conv4"], stride=1, pad=1, mish=True)
    # conv5 = FMish(BN(convT(c4)) + redir2(c2)); redir fused into the kernel.
    c5 = deconv3d_bn_redir_fmish(c4, *params["conv5"], c2, *params["redir2"])
    # conv6 = FMish(BN(convT(c5)) + redir1(x)); final layer emits f32.
    c6 = deconv3d_bn_redir_fmish(c5, *params["conv6"], x, *params["redir1"],
                                 out_dtype=jnp.float32)
    return jnp.transpose(c6, (1, 0, 2, 3, 4))             # -> NCDHW


if __name__ == "__main__":
    key = jax.random.PRNGKey(0)
    k_x, k_p = jax.random.split(key)

    B, C, D, H, W = 2, 4, 8, 16, 16                       # cost-volume-like input
    x = jax.random.normal(k_x, (B, C, D, H, W), jnp.float32)
    params = init_params(k_p, C)

    fwd = jax.jit(hourglass_forward)
    out = fwd(x, params)
    jax.block_until_ready(out)

    assert out.shape == (B, C, D, H, W), out.shape
    assert out.dtype == jnp.float32
    print("KERNEL_OK")
</pallas_src>

<mosaic_0001>
module attributes {stable_mosaic.version = 11 : i64} {
  func.func @_conv_bn_kernel(%arg0: i32, %arg1: memref<108x512xbf16, #tpu.memory_space<vmem>>, %arg2: memref<8x108xbf16, #tpu.memory_space<vmem>>, %arg3: memref<8x1xf32, #tpu.memory_space<vmem>>, %arg4: memref<8x512xbf16, #tpu.memory_space<vmem>>) attributes {dimension_semantics = [#tpu.dimension_semantics<parallel>], iteration_bounds = array<i64: 1>, scalar_prefetch = 0 : i64, scratch_operands = 0 : i64, tpu.core_type = #tpu.core_type<tc>, window_params = [{transform_indices = @transform_0, window_bounds = array<i64: 108, 512>}, {pipeline_mode = #tpu.pipeline_mode<synchronous>, transform_indices = @transform_1, window_bounds = array<i64: 8, 108>}, {pipeline_mode = #tpu.pipeline_mode<synchronous>, transform_indices = @transform_2, window_bounds = array<i64: 8, 1>}, {transform_indices = @transform_3, window_bounds = array<i64: 8, 512>}]} {
    %c0 = arith.constant 0 : index
    %c0_0 = arith.constant 0 : index
    %0 = vector.load %arg2[%c0, %c0_0] : memref<8x108xbf16, #tpu.memory_space<vmem>>, vector<8x108xbf16>
    %c0_1 = arith.constant 0 : index
    %c0_2 = arith.constant 0 : index
    %1 = vector.load %arg1[%c0_1, %c0_2] : memref<108x512xbf16, #tpu.memory_space<vmem>>, vector<108x512xbf16>
    %cst = arith.constant dense<0.000000e+00> : vector<8x512xf32>
    %2 = tpu.matmul %0, %1, %cst {dimension_numbers = #tpu.dot_dimension_numbers<[1], [0], [0], [1], [0, 0, 1, 1], [], []>} : vector<8x108xbf16>, vector<108x512xbf16>, vector<8x512xf32> -> vector<8x512xf32>
    %c0_3 = arith.constant 0 : index
    %c0_4 = arith.constant 0 : index
    %3 = vector.load %arg3[%c0_3, %c0_4] : memref<8x1xf32, #tpu.memory_space<vmem>>, vector<8x1xf32>
    %4 = vector.broadcast %3 : vector<8x1xf32> to vector<8x512xf32>
    %5 = arith.addf %2, %4 : vector<8x512xf32>
    %cst_5 = arith.constant 0.000000e+00 : f32
    %6 = vector.broadcast %cst_5 : f32 to vector<8x512xf32>
    %7 = arith.maximumf %5, %6 : vector<8x512xf32>
    %8 = vector.broadcast %cst_5 : f32 to vector<8x512xf32>
    %9 = arith.subf %5, %8 : vector<8x512xf32>
    %10 = arith.cmpf one, %9, %9 : vector<8x512xf32>
    %11 = vector.broadcast %cst_5 : f32 to vector<8x512xf32>
    %12 = arith.addf %5, %11 : vector<8x512xf32>
    %13 = math.absf %9 : vector<8x512xf32>
    %cst_6 = arith.constant 0.000000e+00 : f32
    %14 = vector.broadcast %cst_6 : f32 to vector<8x512xf32>
    %15 = arith.subf %14, %13 : vector<8x512xf32>
    %16 = math.exp %15 : vector<8x512xf32>
    %17 = math.log1p %16 : vector<8x512xf32>
    %18 = arith.addf %7, %17 : vector<8x512xf32>
    %19 = arith.select %10, %12, %18 : vector<8x512xi1>, vector<8x512xf32>
    %20 = math.tanh %19 : vector<8x512xf32>
    %21 = arith.mulf %5, %20 : vector<8x512xf32>
    %22 = arith.truncf %21 : vector<8x512xf32> to vector<8x512xbf16>
    %c0_7 = arith.constant 0 : index
    %c0_8 = arith.constant 0 : index
    %23 = vector.load %arg4[%c0_7, %c0_8] : memref<8x512xbf16, #tpu.memory_space<vmem>>, vector<8x512xbf16>
    tpu.vector_store %arg4[%c0_7, %c0_8], %22 {strides = array<i32>} : memref<8x512xbf16, #tpu.memory_space<vmem>>, vector<8x512xbf16>,
    return
  }
  func.func @transform_0(%arg0: i32) -> (i32, i32) {
    %c0_i32 = arith.constant 0 : i32
    %c0_i32_0 = arith.constant 0 : i32
    return %c0_i32, %arg0 : i32, i32
  }
  func.func @transform_1(%arg0: i32) -> (i32, i32) {
    %c0_i32 = arith.constant 0 : i32
    %c0_i32_0 = arith.constant 0 : i32
    %c0_i32_1 = arith.constant 0 : i32
    return %c0_i32, %c0_i32_0 : i32, i32
  }
  func.func @transform_2(%arg0: i32) -> (i32, i32) {
    %c0_i32 = arith.constant 0 : i32
    %c0_i32_0 = arith.constant 0 : i32
    %c0_i32_1 = arith.constant 0 : i32
    return %c0_i32, %c0_i32_0 : i32, i32
  }
  func.func @transform_3(%arg0: i32) -> (i32, i32) {
    %c0_i32 = arith.constant 0 : i32
    %c0_i32_0 = arith.constant 0 : i32
    return %c0_i32, %arg0 : i32, i32
  }
}

module attributes {stable_mosaic.version = 11 : i64} {
  func.func @_conv_bn_kernel(%arg0: i32, %arg1: memref<216x512xbf16, #tpu.memory_space<vmem>>, %arg2: memref<8x216xbf16, #tpu.memory_space<vmem>>, %arg3: memref<8x1xf32, #tpu.memory_space<vmem>>, %arg4: memref<8x512xbf16, #tpu.memory_space<vmem>>) attributes {dimension_semantics = [#tpu.dimension_semantics<parallel>], iteration_bounds = array<i64: 1>, scalar_prefetch = 0 : i64, scratch_operands = 0 : i64, tpu.core_type = #tpu.core_type<tc>, window_params = [{transform_indices = @transform_0, window_bounds = array<i64: 216, 512>}, {pipeline_mode = #tpu.pipeline_mode<synchronous>, transform_indices = @transform_1, window_bounds = array<i64: 8, 216>}, {pipeline_mode = #tpu.pipeline_mode<synchronous>, transform_indices = @transform_2, window_bounds = array<i64: 8, 1>}, {transform_indices = @transform_3, window_bounds = array<i64: 8, 512>}]} {
    %c0 = arith.constant 0 : index
    %c0_0 = arith.constant 0 : index
    %0 = vector.load %arg2[%c0, %c0_0] : memref<8x216xbf16, #tpu.memory_space<vmem>>, vector<8x216xbf16>
    %c0_1 = arith.constant 0 : index
    %c0_2 = arith.constant 0 : index
    %1 = vector.load %arg1[%c0_1, %c0_2] : memref<216x512xbf16, #tpu.memory_space<vmem>>, vector<216x512xbf16>
    %cst = arith.constant dense<0.000000e+00> : vector<8x512xf32>
    %2 = tpu.matmul %0, %1, %cst {dimension_numbers = #tpu.dot_dimension_numbers<[1], [0], [0], [1], [0, 0, 1, 1], [], []>} : vector<8x216xbf16>, vector<216x512xbf16>, vector<8x512xf32> -> vector<8x512xf32>
    %c0_3 = arith.constant 0 : index
    %c0_4 = arith.constant 0 : index
    %3 = vector.load %arg3[%c0_3, %c0_4] : memref<8x1xf32, #tpu.memory_space<vmem>>, vector<8x1xf32>
    %4 = vector.broadcast %3 : vector<8x1xf32> to vector<8x512xf32>
    %5 = arith.addf %2, %4 : vector<8x512xf32>
    %cst_5 = arith.constant 0.000000e+00 : f32
    %6 = vector.broadcast %cst_5 : f32 to vector<8x512xf32>
    %7 = arith.maximumf %5, %6 : vector<8x512xf32>
    %8 = vector.broadcast %cst_5 : f32 to vector<8x512xf32>
    %9 = arith.subf %5, %8 : vector<8x512xf32>
    %10 = arith.cmpf one, %9, %9 : vector<8x512xf32>
    %11 = vector.broadcast %cst_5 : f32 to vector<8x512xf32>
    %12 = arith.addf %5, %11 : vector<8x512xf32>
    %13 = math.absf %9 : vector<8x512xf32>
    %cst_6 = arith.constant 0.000000e+00 : f32
    %14 = vector.broadcast %cst_6 : f32 to vector<8x512xf32>
    %15 = arith.subf %14, %13 : vector<8x512xf32>
    %16 = math.exp %15 : vector<8x512xf32>
    %17 = math.log1p %16 : vector<8x512xf32>
    %18 = arith.addf %7, %17 : vector<8x512xf32>
    %19 = arith.select %10, %12, %18 : vector<8x512xi1>, vector<8x512xf32>
    %20 = math.tanh %19 : vector<8x512xf32>
    %21 = arith.mulf %5, %20 : vector<8x512xf32>
    %22 = arith.truncf %21 : vector<8x512xf32> to vector<8x512xbf16>
    %c0_7 = arith.constant 0 : index
    %c0_8 = arith.constant 0 : index
    %23 = vector.load %arg4[%c0_7, %c0_8] : memref<8x512xbf16, #tpu.memory_space<vmem>>, vector<8x512xbf16>
    tpu.vector_store %arg4[%c0_7, %c0_8], %22 {strides = array<i32>} : memref<8x512xbf16, #tpu.memory_space<vmem>>, vector<8x512xbf16>,
    return
  }
  func.func @transform_0(%arg0: i32) -> (i32, i32) {
    %c0_i32 = arith.constant 0 : i32
    %c0_i32_0 = arith.constant 0 : i32
    return %c0_i32, %arg0 : i32, i32
  }
  func.func @transform_1(%arg0: i32) -> (i32, i32) {
    %c0_i32 = arith.constant 0 : i32
    %c0_i32_0 = arith.constant 0 : i32
    %c0_i32_1 = arith.constant 0 : i32
    return %c0_i32, %c0_i32_0 : i32, i32
  }
  func.func @transform_2(%arg0: i32) -> (i32, i32) {
    %c0_i32 = arith.constant 0 : i32
    %c0_i32_0 = arith.constant 0 : i32
    %c0_i32_1 = arith.constant 0 : i32
    return %c0_i32, %c0_i32_0 : i32, i32
  }
  func.func @transform_3(%arg0: i32) -> (i32, i32) {
    %c0_i32 = arith.constant 0 : i32
    %c0_i32_0 = arith.constant 0 : i32
    return %c0_i32, %arg0 : i32, i32
  }
}

module attributes {stable_mosaic.version = 11 : i64} {
  func.func @_conv_bn_kernel(%arg0: i32, %arg1: memref<216x128xbf16, #tpu.memory_space<vmem>>, %arg2: memref<16x216xbf16, #tpu.memory_space<vmem>>, %arg3: memref<16x1xf32, #tpu.memory_space<vmem>>, %arg4: memref<16x128xbf16, #tpu.memory_space<vmem>>) attributes {dimension_semantics = [#tpu.dimension_semantics<parallel>], iteration_bounds = array<i64: 1>, scalar_prefetch = 0 : i64, scratch_operands = 0 : i64, tpu.core_type = #tpu.core_type<tc>, window_params = [{transform_indices = @transform_0, window_bounds = array<i64: 216, 128>}, {pipeline_mode = #tpu.pipeline_mode<synchronous>, transform_indices = @transform_1, window_bounds = array<i64: 16, 216>}, {pipeline_mode = #tpu.pipeline_mode<synchronous>, transform_indices = @transform_2, window_bounds = array<i64: 16, 1>}, {transform_indices = @transform_3, window_bounds = array<i64: 16, 128>}]} {
    %c0 = arith.constant 0 : index
    %c0_0 = arith.constant 0 : index
    %0 = vector.load %arg2[%c0, %c0_0] : memref<16x216xbf16, #tpu.memory_space<vmem>>, vector<16x216xbf16>
    %c0_1 = arith.constant 0 : index
    %c0_2 = arith.constant 0 : index
    %1 = vector.load %arg1[%c0_1, %c0_2] : memref<216x128xbf16, #tpu.memory_space<vmem>>, vector<216x128xbf16>
    %cst = arith.constant dense<0.000000e+00> : vector<16x128xf32>
    %2 = tpu.matmul %0, %1, %cst {dimension_numbers = #tpu.dot_dimension_numbers<[1], [0], [0], [1], [0, 0, 1, 1], [], []>} : vector<16x216xbf16>, vector<216x128xbf16>, vector<16x128xf32> -> vector<16x128xf32>
    %c0_3 = arith.constant 0 : index
    %c0_4 = arith.constant 0 : index
    %3 = vector.load %arg3[%c0_3, %c0_4] : memref<16x1xf32, #tpu.memory_space<vmem>>, vector<16x1xf32>
    %4 = vector.broadcast %3 : vector<16x1xf32> to vector<16x128xf32>
    %5 = arith.addf %2, %4 : vector<16x128xf32>
    %cst_5 = arith.constant 0.000000e+00 : f32
    %6 = vector.broadcast %cst_5 : f32 to vector<16x128xf32>
    %7 = arith.maximumf %5, %6 : vector<16x128xf32>
    %8 = vector.broadcast %cst_5 : f32 to vector<16x128xf32>
    %9 = arith.subf %5, %8 : vector<16x128xf32>
    %10 = arith.cmpf one, %9, %9 : vector<16x128xf32>
    %11 = vector.broadcast %cst_5 : f32 to vector<16x128xf32>
    %12 = arith.addf %5, %11 : vector<16x128xf32>
    %13 = math.absf %9 : vector<16x128xf32>
    %cst_6 = arith.constant 0.000000e+00 : f32
    %14 = vector.broadcast %cst_6 : f32 to vector<16x128xf32>
    %15 = arith.subf %14, %13 : vector<16x128xf32>
    %16 = math.exp %15 : vector<16x128xf32>
    %17 = math.log1p %16 : vector<16x128xf32>
    %18 = arith.addf %7, %17 : vector<16x128xf32>
    %19 = arith.select %10, %12, %18 : vector<16x128xi1>, vector<16x128xf32>
    %20 = math.tanh %19 : vector<16x128xf32>
    %21 = arith.mulf %5, %20 : vector<16x128xf32>
    %22 = arith.truncf %21 : vector<16x128xf32> to vector<16x128xbf16>
    %c0_7 = arith.constant 0 : index
    %c0_8 = arith.constant 0 : index
    %23 = vector.load %arg4[%c0_7, %c0_8] : memref<16x128xbf16, #tpu.memory_space<vmem>>, vector<16x128xbf16>
    tpu.vector_store %arg4[%c0_7, %c0_8], %22 {strides = array<i32>} : memref<16x128xbf16, #tpu.memory_space<vmem>>, vector<16x128xbf16>,
    return
  }
  func.func @transform_0(%arg0: i32) -> (i32, i32) {
    %c0_i32 = arith.constant 0 : i32
    %c0_i32_0 = arith.constant 0 : i32
    return %c0_i32, %arg0 : i32, i32
  }
  func.func @transform_1(%arg0: i32) -> (i32, i32) {
    %c0_i32 = arith.constant 0 : i32
    %c0_i32_0 = arith.constant 0 : i32
    %c0_i32_1 = arith.constant 0 : i32
    return %c0_i32, %c0_i32_0 : i32, i32
  }
  func.func @transform_2(%arg0: i32) -> (i32, i32) {
    %c0_i32 = arith.constant 0 : i32
    %c0_i32_0 = arith.constant 0 : i32
    %c0_i32_1 = arith.constant 0 : i32
    return %c0_i32, %c0_i32_0 : i32, i32
  }
  func.func @transform_3(%arg0: i32) -> (i32, i32) {
    %c0_i32 = arith.constant 0 : i32
    %c0_i32_0 = arith.constant 0 : i32
    return %c0_i32, %arg0 : i32, i32
  }
}

module attributes {stable_mosaic.version = 11 : i64} {
  func.func @_conv_bn_kernel(%arg0: i32, %arg1: memref<432x128xbf16, #tpu.memory_space<vmem>>, %arg2: memref<16x432xbf16, #tpu.memory_space<vmem>>, %arg3: memref<16x1xf32, #tpu.memory_space<vmem>>, %arg4: memref<16x128xbf16, #tpu.memory_space<vmem>>) attributes {dimension_semantics = [#tpu.dimension_semantics<parallel>], iteration_bounds = array<i64: 1>, scalar_prefetch = 0 : i64, scratch_operands = 0 : i64, tpu.core_type = #tpu.core_type<tc>, window_params = [{transform_indices = @transform_0, window_bounds = array<i64: 432, 128>}, {pipeline_mode = #tpu.pipeline_mode<synchronous>, transform_indices = @transform_1, window_bounds = array<i64: 16, 432>}, {pipeline_mode = #tpu.pipeline_mode<synchronous>, transform_indices = @transform_2, window_bounds = array<i64: 16, 1>}, {transform_indices = @transform_3, window_bounds = array<i64: 16, 128>}]} {
    %c0 = arith.constant 0 : index
    %c0_0 = arith.constant 0 : index
    %0 = vector.load %arg2[%c0, %c0_0] : memref<16x432xbf16, #tpu.memory_space<vmem>>, vector<16x432xbf16>
    %c0_1 = arith.constant 0 : index
    %c0_2 = arith.constant 0 : index
    %1 = vector.load %arg1[%c0_1, %c0_2] : memref<432x128xbf16, #tpu.memory_space<vmem>>, vector<432x128xbf16>
    %cst = arith.constant dense<0.000000e+00> : vector<16x128xf32>
    %2 = tpu.matmul %0, %1, %cst {dimension_numbers = #tpu.dot_dimension_numbers<[1], [0], [0], [1], [0, 0, 1, 1], [], []>} : vector<16x432xbf16>, vector<432x128xbf16>, vector<16x128xf32> -> vector<16x128xf32>
    %c0_3 = arith.constant 0 : index
    %c0_4 = arith.constant 0 : index
    %3 = vector.load %arg3[%c0_3, %c0_4] : memref<16x1xf32, #tpu.memory_space<vmem>>, vector<16x1xf32>
    %4 = vector.broadcast %3 : vector<16x1xf32> to vector<16x128xf32>
    %5 = arith.addf %2, %4 : vector<16x128xf32>
    %cst_5 = arith.constant 0.000000e+00 : f32
    %6 = vector.broadcast %cst_5 : f32 to vector<16x128xf32>
    %7 = arith.maximumf %5, %6 : vector<16x128xf32>
    %8 = vector.broadcast %cst_5 : f32 to vector<16x128xf32>
    %9 = arith.subf %5, %8 : vector<16x128xf32>
    %10 = arith.cmpf one, %9, %9 : vector<16x128xf32>
    %11 = vector.broadcast %cst_5 : f32 to vector<16x128xf32>
    %12 = arith.addf %5, %11 : vector<16x128xf32>
    %13 = math.absf %9 : vector<16x128xf32>
    %cst_6 = arith.constant 0.000000e+00 : f32
    %14 = vector.broadcast %cst_6 : f32 to vector<16x128xf32>
    %15 = arith.subf %14, %13 : vector<16x128xf32>
    %16 = math.exp %15 : vector<16x128xf32>
    %17 = math.log1p %16 : vector<16x128xf32>
    %18 = arith.addf %7, %17 : vector<16x128xf32>
    %19 = arith.select %10, %12, %18 : vector<16x128xi1>, vector<16x128xf32>
    %20 = math.tanh %19 : vector<16x128xf32>
    %21 = arith.mulf %5, %20 : vector<16x128xf32>
    %22 = arith.truncf %21 : vector<16x128xf32> to vector<16x128xbf16>
    %c0_7 = arith.constant 0 : index
    %c0_8 = arith.constant 0 : index
    %23 = vector.load %arg4[%c0_7, %c0_8] : memref<16x128xbf16, #tpu.memory_space<vmem>>, vector<16x128xbf16>
    tpu.vector_store %arg4[%c0_7, %c0_8], %22 {strides = array<i32>} : memref<16x128xbf16, #tpu.memory_space<vmem>>, vector<16x128xbf16>,
    return
  }
  func.func @transform_0(%arg0: i32) -> (i32, i32) {
    %c0_i32 = arith.constant 0 : i32
    %c0_i32_0 = arith.constant 0 : i32
    return %c0_i32, %arg0 : i32, i32
  }
  func.func @transform_1(%arg0: i32) -> (i32, i32) {
    %c0_i32 = arith.constant 0 : i32
    %c0_i32_0 = arith.constant 0 : i32
    %c0_i32_1 = arith.constant 0 : i32
    return %c0_i32, %c0_i32_0 : i32, i32
  }
  func.func @transform_2(%arg0: i32) -> (i32, i32) {
    %c0_i32 = arith.constant 0 : i32
    %c0_i32_0 = arith.constant 0 : i32
    %c0_i32_1 = arith.constant 0 : i32
    return %c0_i32, %c0_i32_0 : i32, i32
  }
  func.func @transform_3(%arg0: i32) -> (i32, i32) {
    %c0_i32 = arith.constant 0 : i32
    %c0_i32_0 = arith.constant 0 : i32
    return %c0_i32, %arg0 : i32, i32
  }
}

module attributes {stable_mosaic.version = 11 : i64} {
  func.func @_deconv_redir_fmish_kernel(%arg0: i32, %arg1: memref<432x512xbf16, #tpu.memory_space<vmem>>, %arg2: memref<8x432xbf16, #tpu.memory_space<vmem>>, %arg3: memref<8x1xf32, #tpu.memory_space<vmem>>, %arg4: memref<8x512xbf16, #tpu.memory_space<vmem>>, %arg5: memref<8x8xbf16, #tpu.memory_space<vmem>>, %arg6: memref<8x1xf32, #tpu.memory_space<vmem>>, %arg7: memref<8x512xbf16, #tpu.memory_space<vmem>>) attributes {dimension_semantics = [#tpu.dimension_semantics<parallel>], iteration_bounds = array<i64: 1>, scalar_prefetch = 0 : i64, scratch_operands = 0 : i64, tpu.core_type = #tpu.core_type<tc>, window_params = [{transform_indices = @transform_0, window_bounds = array<i64: 432, 512>}, {pipeline_mode = #tpu.pipeline_mode<synchronous>, transform_indices = @transform_1, window_bounds = array<i64: 8, 432>}, {pipeline_mode = #tpu.pipeline_mode<synchronous>, transform_indices = @transform_2, window_bounds = array<i64: 8, 1>}, {transform_indices = @transform_3, window_bounds = array<i64: 8, 512>}, {pipeline_mode = #tpu.pipeline_mode<synchronous>, transform_indices = @transform_4, window_bounds = array<i64: 8, 8>}, {pipeline_mode = #tpu.pipeline_mode<synchronous>, transform_indices = @transform_5, window_bounds = array<i64: 8, 1>}, {transform_indices = @transform_6, window_bounds = array<i64: 8, 512>}]} {
    %c0 = arith.constant 0 : index
    %c0_0 = arith.constant 0 : index
    %0 = vector.load %arg2[%c0, %c0_0] : memref<8x432xbf16, #tpu.memory_space<vmem>>, vector<8x432xbf16>
    %c0_1 = arith.constant 0 : index
    %c0_2 = arith.constant 0 : index
    %1 = vector.load %arg1[%c0_1, %c0_2] : memref<432x512xbf16, #tpu.memory_space<vmem>>, vector<432x512xbf16>
    %cst = arith.constant dense<0.000000e+00> : vector<8x512xf32>
    %2 = tpu.matmul %0, %1, %cst {dimension_numbers = #tpu.dot_dimension_numbers<[1], [0], [0], [1], [0, 0, 1, 1], [], []>} : vector<8x432xbf16>, vector<432x512xbf16>, vector<8x512xf32> -> vector<8x512xf32>
    %c0_3 = arith.constant 0 : index
    %c0_4 = arith.constant 0 : index
    %3 = vector.load %arg3[%c0_3, %c0_4] : memref<8x1xf32, #tpu.memory_space<vmem>>, vector<8x1xf32>
    %4 = vector.broadcast %3 : vector<8x1xf32> to vector<8x512xf32>
    %5 = arith.addf %2, %4 : vector<8x512xf32>
    %c0_5 = arith.constant 0 : index
    %c0_6 = arith.constant 0 : index
    %6 = vector.load %arg5[%c0_5, %c0_6] : memref<8x8xbf16, #tpu.memory_space<vmem>>, vector<8x8xbf16>
    %c0_7 = arith.constant 0 : index
    %c0_8 = arith.constant 0 : index
    %7 = vector.load %arg4[%c0_7, %c0_8] : memref<8x512xbf16, #tpu.memory_space<vmem>>, vector<8x512xbf16>
    %cst_9 = arith.constant dense<0.000000e+00> : vector<8x512xf32>
    %8 = tpu.matmul %6, %7, %cst_9 {dimension_numbers = #tpu.dot_dimension_numbers<[1], [0], [0], [1], [0, 0, 1, 1], [], []>} : vector<8x8xbf16>, vector<8x512xbf16>, vector<8x512xf32> -> vector<8x512xf32>
    %9 = arith.addf %5, %8 : vector<8x512xf32>
    %c0_10 = arith.constant 0 : index
    %c0_11 = arith.constant 0 : index
    %10 = vector.load %arg6[%c0_10, %c0_11] : memref<8x1xf32, #tpu.memory_space<vmem>>, vector<8x1xf32>
    %11 = vector.broadcast %10 : vector<8x1xf32> to vector<8x512xf32>
    %12 = arith.addf %9, %11 : vector<8x512xf32>
    %cst_12 = arith.constant 0.000000e+00 : f32
    %13 = vector.broadcast %cst_12 : f32 to vector<8x512xf32>
    %14 = arith.maximumf %12, %13 : vector<8x512xf32>
    %15 = vector.broadcast %cst_12 : f32 to vector<8x512xf32>
    %16 = arith.subf %12, %15 : vector<8x512xf32>
    %17 = arith.cmpf one, %16, %16 : vector<8x512xf32>
    %18 = vector.broadcast %cst_12 : f32 to vector<8x512xf32>
    %19 = arith.addf %12, %18 : vector<8x512xf32>
    %20 = math.absf %16 : vector<8x512xf32>
    %cst_13 = arith.constant 0.000000e+00 : f32
    %21 = vector.broadcast %cst_13 : f32 to vector<8x512xf32>
    %22 = arith.subf %21, %20 : vector<8x512xf32>
    %23 = math.exp %22 : vector<8x512xf32>
    %24 = math.log1p %23 : vector<8x512xf32>
    %25 = arith.addf %14, %24 : vector<8x512xf32>
    %26 = arith.select %17, %19, %25 : vector<8x512xi1>, vector<8x512xf32>
    %27 = math.tanh %26 : vector<8x512xf32>
    %28 = arith.mulf %12, %27 : vector<8x512xf32>
    %29 = arith.truncf %28 : vector<8x512xf32> to vector<8x512xbf16>
    %c0_14 = arith.constant 0 : index
    %c0_15 = arith.constant 0 : index
    %30 = vector.load %arg7[%c0_14, %c0_15] : memref<8x512xbf16, #tpu.memory_space<vmem>>, vector<8x512xbf16>
    tpu.vector_store %arg7[%c0_14, %c0_15], %29 {strides = array<i32>} : memref<8x512xbf16, #tpu.memory_space<vmem>>, vector<8x512xbf16>,
    return
  }
  func.func @transform_0(%arg0: i32) -> (i32, i32) {
    %c0_i32 = arith.constant 0 : i32
    %c0_i32_0 = arith.constant 0 : i32
    return %c0_i32, %arg0 : i32, i32
  }
  func.func @transform_1(%arg0: i32) -> (i32, i32) {
    %c0_i32 = arith.constant 0 : i32
    %c0_i32_0 = arith.constant 0 : i32
    %c0_i32_1 = arith.constant 0 : i32
    return %c0_i32, %c0_i32_0 : i32, i32
  }
  func.func @transform_2(%arg0: i32) -> (i32, i32) {
    %c0_i32 = arith.constant 0 : i32
    %c0_i32_0 = arith.constant 0 : i32
    %c0_i32_1 = arith.constant 0 : i32
    return %c0_i32, %c0_i32_0 : i32, i32
  }
  func.func @transform_3(%arg0: i32) -> (i32, i32) {
    %c0_i32 = arith.constant 0 : i32
    %c0_i32_0 = arith.constant 0 : i32
    return %c0_i32, %arg0 : i32, i32
  }
  func.func @transform_4(%arg0: i32) -> (i32, i32) {
    %c0_i32 = arith.constant 0 : i32
    %c0_i32_0 = arith.constant 0 : i32
    %c0_i32_1 = arith.constant 0 : i32
    return %c0_i32, %c0_i32_0 : i32, i32
  }
  func.func @transform_5(%arg0: i32) -> (i32, i32) {
    %c0_i32 = arith.constant 0 : i32
    %c0_i32_0 = arith.constant 0 : i32
    %c0_i32_1 = arith.constant 0 : i32
    return %c0_i32, %c0_i32_0 : i32, i32
  }
  func.func @transform_6(%arg0: i32) -> (i32, i32) {
    %c0_i32 = arith.constant 0 : i32
    %c0_i32_0 = arith.constant 0 : i32
    return %c0_i32, %arg0 : i32, i32
  }
}

module attributes {stable_mosaic.version = 11 : i64} {
  func.func @_deconv_redir_fmish_kernel(%arg0: i32, %arg1: memref<216x1024xbf16, #tpu.memory_space<vmem>>, %arg2: memref<4x216xbf16, #tpu.memory_space<vmem>>, %arg3: memref<4x1xf32, #tpu.memory_space<vmem>>, %arg4: memref<4x1024xbf16, #tpu.memory_space<vmem>>, %arg5: memref<4x4xbf16, #tpu.memory_space<vmem>>, %arg6: memref<4x1xf32, #tpu.memory_space<vmem>>, %arg7: memref<4x1024xf32, #tpu.memory_space<vmem>>) attributes {dimension_semantics = [#tpu.dimension_semantics<parallel>], iteration_bounds = array<i64: 4>, scalar_prefetch = 0 : i64, scratch_operands = 0 : i64, tpu.core_type = #tpu.core_type<tc>, window_params = [{transform_indices = @transform_0, window_bounds = array<i64: 216, 1024>}, {pipeline_mode = #tpu.pipeline_mode<synchronous>, transform_indices = @transform_1, window_bounds = array<i64: 4, 216>}, {pipeline_mode = #tpu.pipeline_mode<synchronous>, transform_indices = @transform_2, window_bounds = array<i64: 4, 1>}, {transform_indices = @transform_3, window_bounds = array<i64: 4, 1024>}, {pipeline_mode = #tpu.pipeline_mode<synchronous>, transform_indices = @transform_4, window_bounds = array<i64: 4, 4>}, {pipeline_mode = #tpu.pipeline_mode<synchronous>, transform_indices = @transform_5, window_bounds = array<i64: 4, 1>}, {transform_indices = @transform_6, window_bounds = array<i64: 4, 1024>}]} {
    %c0 = arith.constant 0 : index
    %c0_0 = arith.constant 0 : index
    %0 = vector.load %arg2[%c0, %c0_0] : memref<4x216xbf16, #tpu.memory_space<vmem>>, vector<4x216xbf16>
    %c0_1 = arith.constant 0 : index
    %c0_2 = arith.constant 0 : index
    %1 = vector.load %arg1[%c0_1, %c0_2] : memref<216x1024xbf16, #tpu.memory_space<vmem>>, vector<216x1024xbf16>
    %cst = arith.constant dense<0.000000e+00> : vector<4x1024xf32>
    %2 = tpu.matmul %0, %1, %cst {dimension_numbers = #tpu.dot_dimension_numbers<[1], [0], [0], [1], [0, 0, 1, 1], [], []>} : vector<4x216xbf16>, vector<216x1024xbf16>, vector<4x1024xf32> -> vector<4x1024xf32>
    %c0_3 = arith.constant 0 : index
    %c0_4 = arith.constant 0 : index
    %3 = vector.load %arg3[%c0_3, %c0_4] : memref<4x1xf32, #tpu.memory_space<vmem>>, vector<4x1xf32>
    %4 = vector.broadcast %3 : vector<4x1xf32> to vector<4x1024xf32>
    %5 = arith.addf %2, %4 : vector<4x1024xf32>
    %c0_5 = arith.constant 0 : index
    %c0_6 = arith.constant 0 : index
    %6 = vector.load %arg5[%c0_5, %c0_6] : memref<4x4xbf16, #tpu.memory_space<vmem>>, vector<4x4xbf16>
    %c0_7 = arith.constant 0 : index
    %c0_8 = arith.constant 0 : index
    %7 = vector.load %arg4[%c0_7, %c0_8] : memref<4x1024xbf16, #tpu.memory_space<vmem>>, vector<4x1024xbf16>
    %cst_9 = arith.constant dense<0.000000e+00> : vector<4x1024xf32>
    %8 = tpu.matmul %6, %7, %cst_9 {dimension_numbers = #tpu.dot_dimension_numbers<[1], [0], [0], [1], [0, 0, 1, 1], [], []>} : vector<4x4xbf16>, vector<4x1024xbf16>, vector<4x1024xf32> -> vector<4x1024xf32>
    %9 = arith.addf %5, %8 : vector<4x1024xf32>
    %c0_10 = arith.constant 0 : index
    %c0_11 = arith.constant 0 : index
    %10 = vector.load %arg6[%c0_10, %c0_11] : memref<4x1xf32, #tpu.memory_space<vmem>>, vector<4x1xf32>
    %11 = vector.broadcast %10 : vector<4x1xf32> to vector<4x1024xf32>
    %12 = arith.addf %9, %11 : vector<4x1024xf32>
    %cst_12 = arith.constant 0.000000e+00 : f32
    %13 = vector.broadcast %cst_12 : f32 to vector<4x1024xf32>
    %14 = arith.maximumf %12, %13 : vector<4x1024xf32>
    %15 = vector.broadcast %cst_12 : f32 to vector<4x1024xf32>
    %16 = arith.subf %12, %15 : vector<4x1024xf32>
    %17 = arith.cmpf one, %16, %16 : vector<4x1024xf32>
    %18 = vector.broadcast %cst_12 : f32 to vector<4x1024xf32>
    %19 = arith.addf %12, %18 : vector<4x1024xf32>
    %20 = math.absf %16 : vector<4x1024xf32>
    %cst_13 = arith.constant 0.000000e+00 : f32
    %21 = vector.broadcast %cst_13 : f32 to vector<4x1024xf32>
    %22 = arith.subf %21, %20 : vector<4x1024xf32>
    %23 = math.exp %22 : vector<4x1024xf32>
    %24 = math.log1p %23 : vector<4x1024xf32>
    %25 = arith.addf %14, %24 : vector<4x1024xf32>
    %26 = arith.select %17, %19, %25 : vector<4x1024xi1>, vector<4x1024xf32>
    %27 = math.tanh %26 : vector<4x1024xf32>
    %28 = arith.mulf %12, %27 : vector<4x1024xf32>
    %c0_14 = arith.constant 0 : index
    %c0_15 = arith.constant 0 : index
    %29 = vector.load %arg7[%c0_14, %c0_15] : memref<4x1024xf32, #tpu.memory_space<vmem>>, vector<4x1024xf32>
    tpu.vector_store %arg7[%c0_14, %c0_15], %28 {strides = array<i32>} : memref<4x1024xf32, #tpu.memory_space<vmem>>, vector<4x1024xf32>,
    return
  }
  func.func @transform_0(%arg0: i32) -> (i32, i32) {
    %c0_i32 = arith.constant 0 : i32
    %c0_i32_0 = arith.constant 0 : i32
    return %c0_i32, %arg0 : i32, i32
  }
  func.func @transform_1(%arg0: i32) -> (i32, i32) {
    %c0_i32 = arith.constant 0 : i32
    %c0_i32_0 = arith.constant 0 : i32
    %c0_i32_1 = arith.constant 0 : i32
    return %c0_i32, %c0_i32_0 : i32, i32
  }
  func.func @transform_2(%arg0: i32) -> (i32, i32) {
    %c0_i32 = arith.constant 0 : i32
    %c0_i32_0 = arith.constant 0 : i32
    %c0_i32_1 = arith.constant 0 : i32
    return %c0_i32, %c0_i32_0 : i32, i32
  }
  func.func @transform_3(%arg0: i32) -> (i32, i32) {
    %c0_i32 = arith.constant 0 : i32
    %c0_i32_0 = arith.constant 0 : i32
    return %c0_i32, %arg0 : i32, i32
  }
  func.func @transform_4(%arg0: i32) -> (i32, i32) {
    %c0_i32 = arith.constant 0 : i32
    %c0_i32_0 = arith.constant 0 : i32
    %c0_i32_1 = arith.constant 0 : i32
    return %c0_i32, %c0_i32_0 : i32, i32
  }
  func.func @transform_5(%arg0: i32) -> (i32, i32) {
    %c0_i32 = arith.constant 0 : i32
    %c0_i32_0 = arith.constant 0 : i32
    %c0_i32_1 = arith.constant 0 : i32
    return %c0_i32, %c0_i32_0 : i32, i32
  }
  func.func @transform_6(%arg0: i32) -> (i32, i32) {
    %c0_i32 = arith.constant 0 : i32
    %c0_i32_0 = arith.constant 0 : i32
    return %c0_i32, %arg0 : i32, i32
  }
}

</mosaic_0001>

<bundles_post_ra>
// kernel: hourglass_forward.6
= control target key start
LH: loop header
LB: loop body
LE: loop exit
PB: predicated region body
PF: predicated region fallthrough
CT: control target
= control target key end

     0   :  { %vm190_vm0 = vcmask 1045504   ;;  %v513_v21 = vmov 0   ;;  %vm186_vm1 = vcmask 883712   ;;  %s750_s0 = inlined_call_operand.vmem [shape: bf16[108,512], index: 0, kind: input, shape index: {}]   ;;  %s751_s2 = inlined_call_operand.vmem [shape: f32[8,1], index: 2, kind: input, shape index: {}]   ;;  %s752_s1 = inlined_call_operand.vmem [shape: bf16[8,108], index: 1, kind: input, shape index: {}]   ;;  %s753_s3 = inlined_call_operand.vmem [shape: bf16[8,512], index: 3, kind: output, shape index: {}]  }
   0x1   :  { %v441_v0 = vld [vmem:[%s750_s0 + $0xc0] sm:$0xf]  ;;  %v485_v1 = vld [vmem:[%s750_s0 + $0xcc] sm:$0x30]  ;;  %v483_v2 = vld [vmem:[%s750_s0 + $0xc4] sm:$0xf]  ;;  %488 = vset.pattern.permute.xlu0 %v513_v21 }
   0x2   :  { %v442_v3 = vor.u32 %v485_v1, %v441_v0  ;;  %v443_v4 = vld [vmem:[%s750_s0 + $0xd0] sm:$0x30]  ;;  %v449_v5 = vld [vmem:[%s750_s0 + $0xc8] sm:$0xf]  ;;  %v486_v6 = vld [vmem:[%s750_s0 + $0xd4] sm:$0x30] }
   0x3   :  { %v446_v7 = vor.u32 %v483_v2, %v443_v4  ;;  %v450_v8 = vor.u32 %v486_v6, %v449_v5  ;;  %v484_v9 = vld [vmem:[%s750_s0 + $0xcc] sm:$0xf]  ;;  %v451_v10 = vld [vmem:[%s750_s0 + $0xd8] sm:$0x30]  ;;  %v425_v11 = vld [vmem:[%s750_s0 + $0xa0] sm:$0xf] }
   0x4   :  { %v192_v12 = vsel %vm190_vm0, %v442_v3, 0  ;;  %v454_v13 = vor.u32 %v484_v9, %v451_v10  ;;  %v481_v14 = vld [vmem:[%s750_s0 + $0xac] sm:$0xf0]  ;;  %v479_v15 = vld [vmem:[%s750_s0 + $0xa4] sm:$0xf] }
   0x5   :  { %204 = vmatpush.bf16.msra.mxu0 %v192_v12  ;;  %v195_v16 = vsel %vm190_vm0, %v446_v7, 0  ;;  %v198_v17 = vsel %vm190_vm0, %v450_v8, 0  ;;  %v426_v18 = vor.u32 %v481_v14, %v425_v11  ;;  %v427_v19 = vld [vmem:[%s750_s0 + $0xb0] sm:$0xf0]  ;;  %v433_v20 = vld [vmem:[%s750_s0 + $0xa8] sm:$0xf] }
   0x6   :  { %217 = vmatpush.bf16.msra.mxu1 %v195_v16  ;;  %230 = vmatpush.bf16.msra.mxu2 %v198_v17  ;;  %v201_v22 = vsel %vm190_vm0, %v454_v13, 0  ;;  %v430_v23 = vor.u32 %v479_v15, %v427_v19  ;;  %v482_v24 = vld [vmem:[%s750_s0 + $0xb4] sm:$0xf0]  ;;  %v480_v25 = vld [vmem:[%s750_s0 + $0xac] sm:$0xf]  ;;  %v44_v26 = vld [vmem:[%s751_s2] sm:$0xff] }
   0x7   :  { %243 = vmatpush.bf16.msra.mxu3 %v201_v22  ;;  %v434_v27 = vor.u32 %v482_v24, %v433_v20  ;;  %v435_v28 = vld [vmem:[%s750_s0 + $0xb8] sm:$0xf0]  ;;  %v409_v29 = vld [vmem:[%s750_s0 + $0x80] sm:$0xf]  ;;  %v477_v30 = vld [vmem:[%s750_s0 + $0x8c] sm:$0xf0]  ;;  %47 = vperm.xlu0 %488, %v44_v26  }
   0x8   :  { %v438_v31 = vor.u32 %v480_v25, %v435_v28  ;;  %v475_v32 = vld [vmem:[%s750_s0 + $0x84] sm:$0xf]  ;;  %v411_v33 = vld [vmem:[%s750_s0 + $0x90] sm:$0xf0]  ;;  %v417_v34 = vld [vmem:[%s750_s0 + $0x88] sm:$0xf]  ;;  %v410_v35 = vor.u32 %v477_v30, %v409_v29 }
   0x9   :  { %205 = vmatpush.bf16.msra.mxu0 %v426_v18  ;;  %v478_v36 = vld [vmem:[%s750_s0 + $0x94] sm:$0xf0]  ;;  %v476_v37 = vld [vmem:[%s750_s0 + $0x8c] sm:$0xf]  ;;  %v419_v38 = vld [vmem:[%s750_s0 + $0x98] sm:$0xf0]  ;;  %v414_v39 = vor.u32 %v475_v32, %v411_v33 }
   0xa   :  { %218 = vmatpush.bf16.msra.mxu1 %v430_v23  ;;  %231 = vmatpush.bf16.msra.mxu2 %v434_v27  ;;  %v418_v40 = vor.u32 %v478_v36, %v417_v34  ;;  %v393_v41 = vld [vmem:[%s750_s0 + $0x60] sm:$0xf]  ;;  %v473_v42 = vld [vmem:[%s750_s0 + $0x6c] sm:$0xf0]  ;;  %v471_v43 = vld [vmem:[%s750_s0 + $0x64] sm:$0xf]  ;;  %v422_v44 = vor.u32 %v476_v37, %v419_v38 }
   0xb   :  { %244 = vmatpush.bf16.msra.mxu3 %v438_v31  ;;  %v395_v45 = vld [vmem:[%s750_s0 + $0x70] sm:$0xf0]  ;;  %v401_v46 = vld [vmem:[%s750_s0 + $0x68] sm:$0xf]  ;;  %v474_v47 = vld [vmem:[%s750_s0 + $0x74] sm:$0xf0]  ;;  %v394_v50 = vor.u32 %v473_v42, %v393_v41 }
   0xc   :  { %v472_v48 = vld [vmem:[%s750_s0 + $0x6c] sm:$0xf]  ;;  %v403_v49 = vld [vmem:[%s750_s0 + $0x78] sm:$0xf0]  ;;  %v398_v51 = vor.u32 %v471_v43, %v395_v45  ;;  %v402_v52 = vor.u32 %v474_v47, %v401_v46  ;;  %v377_v53 = vld [vmem:[%s750_s0 + $0x40] sm:$0xf] }
   0xd   :  { %206 = vmatpush.bf16.msra.mxu0 %v410_v35  ;;  %v469_v54 = vld [vmem:[%s750_s0 + $0x4c] sm:$0xf0]  ;;  %v467_v55 = vld [vmem:[%s750_s0 + $0x44] sm:$0xf]  ;;  %v406_v56 = vor.u32 %v472_v48, %v403_v49  ;;  %v379_v57 = vld [vmem:[%s750_s0 + $0x50] sm:$0xf0] }
   0xe   :  { %219 = vmatpush.bf16.msra.mxu1 %v414_v39  ;;  %232 = vmatpush.bf16.msra.mxu2 %v418_v40  ;;  %v385_v58 = vld [vmem:[%s750_s0 + $0x48] sm:$0xf]  ;;  %v470_v59 = vld [vmem:[%s750_s0 + $0x54] sm:$0xf0]  ;;  %v468_v60 = vld [vmem:[%s750_s0 + $0x4c] sm:$0xf]  ;;  %v378_v62 = vor.u32 %v469_v54, %v377_v53  ;;  %v382_v63 = vor.u32 %v467_v55, %v379_v57 }
   0xf   :  { %245 = vmatpush.bf16.msra.mxu3 %v422_v44  ;;  %v387_v61 = vld [vmem:[%s750_s0 + $0x58] sm:$0xf0]  ;;  %v386_v0 = vor.u32 %v470_v59, %v385_v58  ;;  %v361_v1 = vld [vmem:[%s750_s0 + $0x20] sm:$0xf]  ;;  %v465_v2 = vld [vmem:[%s750_s0 + $0x2c] sm:$0xf0] }
  0x10   :  { %v463_v3 = vld [vmem:[%s750_s0 + $0x24] sm:$0xf]  ;;  %v390_v4 = vor.u32 %v468_v60, %v387_v61  ;;  %v363_v5 = vld [vmem:[%s750_s0 + $0x30] sm:$0xf0]  ;;  %v369_v6 = vld [vmem:[%s750_s0 + $0x28] sm:$0xf]  ;;  %v362_v10 = vor.u32 %v465_v2, %v361_v1 }
  0x11   :  { %207 = vmatpush.bf16.msra.mxu0 %v394_v50  ;;  %v466_v7 = vld [vmem:[%s750_s0 + $0x34] sm:$0xf0]  ;;  %v464_v8 = vld [vmem:[%s750_s0 + $0x2c] sm:$0xf]  ;;  %v371_v9 = vld [vmem:[%s750_s0 + $0x38] sm:$0xf0]  ;;  %v366_v11 = vor.u32 %v463_v3, %v363_v5 }
  0x12   :  { %220 = vmatpush.bf16.msra.mxu1 %v398_v51  ;;  %233 = vmatpush.bf16.msra.mxu2 %v402_v52  ;;  %v370_v12 = vor.u32 %v466_v7, %v369_v6  ;;  %v345_v13 = vld [vmem:[%s750_s0] sm:$0xf]  ;;  %v461_v14 = vld [vmem:[%s750_s0 + $0xc] sm:$0xf0]  ;;  %v459_v15 = vld [vmem:[%s750_s0 + $0x4] sm:$0xf]  ;;  %v374_v16 = vor.u32 %v464_v8, %v371_v9 }
  0x13   :  { %246 = vmatpush.bf16.msra.mxu3 %v406_v56  ;;  %v347_v17 = vld [vmem:[%s750_s0 + $0x10] sm:$0xf0]  ;;  %v353_v18 = vld [vmem:[%s750_s0 + $0x8] sm:$0xf]  ;;  %v462_v19 = vld [vmem:[%s750_s0 + $0x14] sm:$0xf0]  ;;  %v346_v22 = vor.u32 %v461_v14, %v345_v13 }
  0x14   :  { %v460_v20 = vld [vmem:[%s750_s0 + $0xc] sm:$0xf]  ;;  %v355_v21 = vld [vmem:[%s750_s0 + $0x18] sm:$0xf0]  ;;  %v350_v23 = vor.u32 %v459_v15, %v347_v17  ;;  %v354_v24 = vor.u32 %v462_v19, %v353_v18  ;;  %v15_v26 = vld [vmem:[%s752_s1] sm:$0xf] }
  0x15   :  { %208 = vmatpush.bf16.msra.mxu0 %v378_v62  ;;  %v358_v25 = vor.u32 %v460_v20, %v355_v21 }
  0x16   :  { %221 = vmatpush.bf16.msra.mxu1 %v382_v63  ;;  %234 = vmatpush.bf16.msra.mxu2 %v386_v0 }
  0x17   :  { %247 = vmatpush.bf16.msra.mxu3 %v390_v4 }
  0x19   :  { %209 = vmatpush.bf16.msra.mxu0 %v362_v10 }
  0x1a   :  { %222 = vmatpush.bf16.msra.mxu1 %v366_v11  ;;  %235 = vmatpush.bf16.msra.mxu2 %v370_v12 }
  0x1b   :  { %248 = vmatpush.bf16.msra.mxu3 %v374_v16 }
  0x1d   :  { %210 = vmatpush.bf16.msra.mxu0 %v346_v22 }
  0x1e   :  { %223 = vmatpush.bf16.msra.mxu1 %v350_v23  ;;  %236 = vmatpush.bf16.msra.mxu2 %v354_v24 }
  0x1f   :  { %249 = vmatpush.bf16.msra.mxu3 %v358_v25 }
  0x20   :  { %455 = vmatmul.msk.bf16.vlgmr.msra.gmra.mxu0 %vm186_vm1, %v15_v26 }
  0x21   :  { %456 = vmatmul.msk.bf16.vlgmr.msra.gmra.mxu1 %vm186_vm1, %v15_v26  ;;  %457 = vmatmul.msk.bf16.vlgmr.msra.gmra.mxu2 %vm186_vm1, %v15_v26 }
  0x22   :  { %458 = vmatmul.msk.bf16.vlgmr.msra.gmra.mxu3 %vm186_vm1, %v15_v26 }
  0x79   :  { %v48_v27 = vpop.permute.xlu0 %47 }
  0x9d   :  { %v212_v28 = vpop.f32.mrf.mxu0 }
  0x9e   :  { %v712_v29 = vadd.f32 %v212_v28, %v48_v27  ;;  %v225_v30 = vpop.f32.mrf.mxu1 }
  0x9f   :  { %v714_v31 = vadd.f32 %v225_v30, %v48_v27 }
  0xa0   :  { %v267_v32 = vand.u32 2147483647, %v712_v29  ;;  %v255_v2 = vmax.f32 %v712_v29, 0.0  ;;  %vm259_vm4 = vcmp.ne.f32.partialorder %v712_v29, %v712_v29 }
  0xa1   :  { %v268_v33 = vand.u32 2147483647, %v714_v31  ;;  %v256_v12 = vmax.f32 %v714_v31, 0.0  ;;  %vm260_vm5 = vcmp.ne.f32.partialorder %v714_v31, %v714_v31 }
  0xa2   :  { %v271_v34 = vsub.f32 0.0, %v267_v32 }
  0xa3   :  { %v272_v35 = vsub.f32 0.0, %v268_v33 }
  0xa4   :  { %v275_v36 = vmul.f32 1.442695, %v271_v34  ;;  %v238_v37 = vpop.f32.mrf.mxu2 }
  0xa5   :  { %v277_v38 = vmul.f32 1.442695, %v272_v35  ;;  %v718_v39 = vadd.f32 %v238_v37, %v48_v27  ;;  %v251_v40 = vpop.f32.mrf.mxu3  ;;  %v214_v41 = vpop.f32.mrf.mxu0 }
  0xa6   :  { %489 = vpow2.f32 %v275_v36  ;;  %v720_v42 = vadd.f32 %v251_v40, %v48_v27  ;;  %v227_v43 = vpop.f32.mrf.mxu1 }
  0xa7   :  { %491 = vpow2.f32 %v277_v38  ;;  %v269_v44 = vand.u32 2147483647, %v718_v39  ;;  %v257_v26 = vmax.f32 %v718_v39, 0.0  ;;  %vm261_vm8 = vcmp.ne.f32.partialorder %v718_v39, %v718_v39 }
  0xa8   :  { %v270_v45 = vand.u32 2147483647, %v720_v42  ;;  %v258_v32 = vmax.f32 %v720_v42, 0.0  ;;  %vm262_vm9 = vcmp.ne.f32.partialorder %v720_v42, %v720_v42 }
  0xa9   :  { %v273_v46 = vsub.f32 0.0, %v269_v44 }
  0xaa   :  { %v274_v47 = vsub.f32 0.0, %v270_v45 }
  0xab   :  { %v279_v48 = vmul.f32 1.442695, %v273_v46 }
  0xac   :  { %v490_v49 = vpop.eup %489  ;;  %v281_v50 = vmul.f32 1.442695, %v274_v47  ;;  %v240_v51 = vpop.f32.mrf.mxu2 }
  0xad   :  { %v492_v52 = vpop.eup %491  ;;  %v283_v53 = vadd.f32 1.0, %v490_v49  ;;  %493 = vpow2.f32 %v279_v48  ;;  %v253_v54 = vpop.f32.mrf.mxu3  ;;  %v286_v55 = vmul.f32 -0.5, %v490_v49  ;;  %v289_v60 = vand.u32 2147483647, %v490_v49 }
  0xae   :  { %v292_v56 = vadd.f32 1.0, %v492_v52  ;;  %495 = vpow2.f32 %v281_v50  ;;  %v295_v57 = vmul.f32 -0.5, %v492_v52  ;;  %v298_v63 = vand.u32 2147483647, %v492_v52 }
  0xaf   :  { %497 = vlog2.f32 %v283_v53  ;;  %v287_v58 = vadd.f32 1.0, %v286_v55  ;;  %vm290_vm2 = vcmp.lt.f32.partialorder %v289_v60, 0.0004427343 }
  0xb0   :  { %499 = vlog2.f32 %v292_v56  ;;  %v296_v61 = vadd.f32 1.0, %v295_v57  ;;  %vm299_vm3 = vcmp.lt.f32.partialorder %v298_v63, 0.0004427343 }
  0xb1   :  { %v288_v7 = vmul.f32 %v490_v49, %v287_v58 }
  0xb2   :  { %v297_v10 = vmul.f32 %v492_v52, %v296_v61 }
  0xb3   :  { %v494_v59 = vpop.eup %493 }
  0xb4   :  { %v496_v62 = vpop.eup %495  ;;  %v301_v0 = vadd.f32 1.0, %v494_v59  ;;  %v304_v3 = vmul.f32 -0.5, %v494_v59  ;;  %v307_v17 = vand.u32 2147483647, %v494_v59 }
  0xb5   :  { %v498_v1 = vpop.eup %497  ;;  %v310_v4 = vadd.f32 1.0, %v496_v62  ;;  %v313_v8 = vmul.f32 -0.5, %v496_v62  ;;  %v316_v20 = vand.u32 2147483647, %v496_v62 }
  0xb6   :  { %v500_v5 = vpop.eup %499  ;;  %v285_v6 = vmul.f32 0.6931472, %v498_v1  ;;  %501 = vlog2.f32 %v301_v0  ;;  %v305_v15 = vadd.f32 1.0, %v304_v3  ;;  %vm308_vm6 = vcmp.lt.f32.partialorder %v307_v17, 0.0004427343 }
  0xb7   :  { %v294_v9 = vmul.f32 0.6931472, %v500_v5  ;;  %503 = vlog2.f32 %v310_v4  ;;  %v314_v18 = vadd.f32 1.0, %v313_v8  ;;  %vm317_vm7 = vcmp.lt.f32.partialorder %v316_v20, 0.0004427343 }
  0xb8   :  { %v291_v11 = vsel %vm290_vm2, %v288_v7, %v285_v6  ;;  %v306_v25 = vmul.f32 %v494_v59, %v305_v15 }
  0xb9   :  { %v319_v13 = vadd.f32 %v291_v11, %v255_v2  ;;  %v300_v14 = vsel %vm299_vm3, %v297_v10, %v294_v9  ;;  %v315_v28 = vmul.f32 %v496_v62, %v314_v18 }
  0xba   :  { %v320_v16 = vadd.f32 %v300_v14, %v256_v12 }
  0xbb   :  { %v323_v19 = vsel %vm259_vm4, %v712_v29, %v319_v13 }
  0xbc   :  { %v502_v21 = vpop.eup %501  ;;  %505 = vtanh.f32 %v323_v19  ;;  %v324_v22 = vsel %vm260_vm5, %v714_v31, %v320_v16 }
  0xbd   :  { %v504_v23 = vpop.eup %503  ;;  %507 = vtanh.f32 %v324_v22  ;;  %v303_v24 = vmul.f32 0.6931472, %v502_v21 }
  0xbe   :  { %v312_v27 = vmul.f32 0.6931472, %v504_v23 }
  0xbf   :  { %v309_v30 = vsel %vm308_vm6, %v306_v25, %v303_v24 }
  0xc0   :  { %v321_v33 = vadd.f32 %v309_v30, %v257_v26  ;;  %v318_v34 = vsel %vm317_vm7, %v315_v28, %v312_v27 }
  0xc1   :  { %v322_v35 = vadd.f32 %v318_v34, %v258_v32 }
  0xc2   :  { %v506_v36 = vpop.eup %505  ;;  %v325_v37 = vsel %vm261_vm8, %v718_v39, %v321_v33 }
  0xc3   :  { %v508_v38 = vpop.eup %507  ;;  %v331_v40 = vmul.f32 %v506_v36, %v712_v29  ;;  %509 = vtanh.f32 %v325_v37  ;;  %v326_v41 = vsel %vm262_vm9, %v720_v42, %v322_v35 }
  0xc4   :  { %v332_v43 = vmul.f32 %v508_v38, %v714_v31  ;;  %511 = vtanh.f32 %v326_v41 }
  0xc6   :  { %v335_v44 = vpack.c.bf16 %v332_v43, %v331_v40 }
  0xc8   :  { %337 = vst [vmem:[%s753_s3] sm:$0xff] %v335_v44 }
  0xc9   :  { %v510_v45 = vpop.eup %509 }
  0xca   :  { %v512_v46 = vpop.eup %511  ;;  %v333_v47 = vmul.f32 %v510_v45, %v718_v39 }
  0xcb   :  { %v334_v48 = vmul.f32 %v512_v46, %v720_v42 }
  0xcd   :  { %v336_v49 = vpack.c.bf16 %v334_v48, %v333_v47 }
  0xcf   :  { %338 = vst [vmem:[%s753_s3 + $0x8] sm:$0xff] %v336_v49 }

// kernel: hourglass_forward.7
= control target key start
LH: loop header
LB: loop body
LE: loop exit
PB: predicated region body
PF: predicated region fallthrough
CT: control target
= control target key end

     0   :  { %vm356_vm0 = vcmask 1043456   ;;  %vm352_vm1 = vcmask 719872   ;;  %s1254_s0 = inlined_call_operand.vmem [shape: bf16[216,512], index: 0, kind: input, shape index: {}]   ;;  %s1255_s1 = inlined_call_operand.vmem [shape: bf16[8,216], index: 1, kind: input, shape index: {}]   ;;  %s1256_s2 = inlined_call_operand.vmem [shape: f32[8,1], index: 2, kind: input, shape index: {}]   ;;  %s1257_s3 = inlined_call_operand.vmem [shape: bf16[8,512], index: 3, kind: output, shape index: {}]  }
   0x1   :  { %v675_v0 = vld [vmem:[%s1254_s0 + $0xe0] sm:$0xf]  ;;  %v803_v1 = vld [vmem:[%s1254_s0 + $0xec] sm:$0xf0]  ;;  %v801_v2 = vld [vmem:[%s1254_s0 + $0xe4] sm:$0xf] }
   0x2   :  { %v676_v3 = vor.u32 %v803_v1, %v675_v0  ;;  %v677_v4 = vld [vmem:[%s1254_s0 + $0xf0] sm:$0xf0]  ;;  %v68_v5 = vld [vmem:[%s1254_s0 + $0x1a0] sm:$0xff]  ;;  %v799_v9 = vld [vmem:[%s1254_s0 + $0xcc] sm:$0xf0] }
   0x3   :  { %v659_v6 = vld [vmem:[%s1254_s0 + $0xc0] sm:$0xf]  ;;  %v680_v7 = vor.u32 %v801_v2, %v677_v4  ;;  %v240_v8 = vunpack.c.l.b16 %v68_v5  ;;  %v797_v10 = vld [vmem:[%s1254_s0 + $0xc4] sm:$0xf]  ;;  %v661_v11 = vld [vmem:[%s1254_s0 + $0xd0] sm:$0xf0]  ;;  %v241_v12 = vunpack.c.h.b16 %v68_v5 }
   0x4   :  { %369 = vmatpush.bf16.msra.mxu0 %v676_v3  ;;  %v660_v13 = vor.u32 %v799_v9, %v659_v6  ;;  %v755_v14 = vld [vmem:[%s1254_s0 + $0x180] sm:$0xf]  ;;  %v823_v15 = vld [vmem:[%s1254_s0 + $0x18c] sm:$0xf0]  ;;  %v664_v17 = vor.u32 %v797_v10, %v661_v11  ;;  %v793_v21 = vld [vmem:[%s1254_s0 + $0xa4] sm:$0xf] }
   0x5   :  { %395 = vmatpush.bf16.msra.mxu2 %v680_v7  ;;  %v296_v16 = vpack.c.b16 %v240_v8, %v240_v8  ;;  %v297_v18 = vpack.c.b16 %v241_v12, %v241_v12  ;;  %v643_v19 = vld [vmem:[%s1254_s0 + $0xa0] sm:$0xf]  ;;  %v795_v20 = vld [vmem:[%s1254_s0 + $0xac] sm:$0xf0]  ;;  %v645_v22 = vld [vmem:[%s1254_s0 + $0xb0] sm:$0xf0]  ;;  %v756_v27 = vor.u32 %v823_v15, %v755_v14 }
   0x6   :  { %v821_v23 = vld [vmem:[%s1254_s0 + $0x184] sm:$0xf]  ;;  %v757_v24 = vld [vmem:[%s1254_s0 + $0x190] sm:$0xf0]  ;;  %v644_v28 = vor.u32 %v795_v20, %v643_v19  ;;  %v739_v29 = vld [vmem:[%s1254_s0 + $0x160] sm:$0xf]  ;;  %v648_v31 = vor.u32 %v793_v21, %v645_v22 }
   0x7   :  { %v358_v25 = vsel %vm356_vm0, %v296_v16, 0  ;;  %v361_v26 = vsel %vm356_vm0, %v297_v18, 0  ;;  %v819_v30 = vld [vmem:[%s1254_s0 + $0x16c] sm:$0xf0]  ;;  %v760_v32 = vor.u32 %v821_v23, %v757_v24  ;;  %v627_v33 = vld [vmem:[%s1254_s0 + $0x80] sm:$0xf] }
   0x8   :  { %384 = vmatpush.bf16.msra.mxu1 %v358_v25  ;;  %370 = vmatpush.bf16.msra.mxu0 %v660_v13  ;;  %v791_v34 = vld [vmem:[%s1254_s0 + $0x8c] sm:$0xf0]  ;;  %v789_v35 = vld [vmem:[%s1254_s0 + $0x84] sm:$0xf]  ;;  %v629_v36 = vld [vmem:[%s1254_s0 + $0x90] sm:$0xf0]  ;;  %v740_v39 = vor.u32 %v819_v30, %v739_v29 }
   0x9   :  { %396 = vmatpush.bf16.msra.mxu2 %v664_v17  ;;  %410 = vmatpush.bf16.msra.mxu3 %v361_v26  ;;  %v817_v37 = vld [vmem:[%s1254_s0 + $0x164] sm:$0xf]  ;;  %v741_v38 = vld [vmem:[%s1254_s0 + $0x170] sm:$0xf0]  ;;  %v628_v40 = vor.u32 %v791_v34, %v627_v33  ;;  %v723_v41 = vld [vmem:[%s1254_s0 + $0x140] sm:$0xf]  ;;  %v632_v43 = vor.u32 %v789_v35, %v629_v36 }
   0xa   :  { %v815_v42 = vld [vmem:[%s1254_s0 + $0x14c] sm:$0xf0]  ;;  %v744_v44 = vor.u32 %v817_v37, %v741_v38  ;;  %v611_v45 = vld [vmem:[%s1254_s0 + $0x60] sm:$0xf]  ;;  %v785_v47 = vld [vmem:[%s1254_s0 + $0x64] sm:$0xf] }
   0xb   :  { %v787_v46 = vld [vmem:[%s1254_s0 + $0x6c] sm:$0xf0]  ;;  %v613_v48 = vld [vmem:[%s1254_s0 + $0x70] sm:$0xf0]  ;;  %v813_v49 = vld [vmem:[%s1254_s0 + $0x144] sm:$0xf]  ;;  %v724_v51 = vor.u32 %v815_v42, %v723_v41 }
   0xc   :  { %385 = vmatpush.bf16.msra.mxu1 %v756_v27  ;;  %371 = vmatpush.bf16.msra.mxu0 %v644_v28  ;;  %v725_v50 = vld [vmem:[%s1254_s0 + $0x150] sm:$0xf0]  ;;  %v612_v52 = vor.u32 %v787_v46, %v611_v45  ;;  %v707_v53 = vld [vmem:[%s1254_s0 + $0x120] sm:$0xf]  ;;  %v811_v54 = vld [vmem:[%s1254_s0 + $0x12c] sm:$0xf0]  ;;  %v616_v56 = vor.u32 %v785_v47, %v613_v48 }
   0xd   :  { %397 = vmatpush.bf16.msra.mxu2 %v648_v31  ;;  %411 = vmatpush.bf16.msra.mxu3 %v760_v32  ;;  %v595_v55 = vld [vmem:[%s1254_s0 + $0x40] sm:$0xf]  ;;  %v728_v57 = vor.u32 %v813_v49, %v725_v50  ;;  %v783_v58 = vld [vmem:[%s1254_s0 + $0x4c] sm:$0xf0]  ;;  %v781_v59 = vld [vmem:[%s1254_s0 + $0x44] sm:$0xf]  ;;  %v708_v1 = vor.u32 %v811_v54, %v707_v53 }
   0xe   :  { %v597_v60 = vld [vmem:[%s1254_s0 + $0x50] sm:$0xf0]  ;;  %v809_v61 = vld [vmem:[%s1254_s0 + $0x124] sm:$0xf]  ;;  %v69_v63 = vld [vmem:[%s1254_s0 + $0x1a8] sm:$0xff]  ;;  %v596_v2 = vor.u32 %v783_v58, %v595_v55  ;;  %v851_v18 = vmov 0  }
   0xf   :  { %v709_v62 = vld [vmem:[%s1254_s0 + $0x130] sm:$0xf0]  ;;  %v242_v0 = vunpack.c.l.b16 %v69_v63  ;;  %v691_v3 = vld [vmem:[%s1254_s0 + $0x100] sm:$0xf]  ;;  %v807_v4 = vld [vmem:[%s1254_s0 + $0x10c] sm:$0xf0]  ;;  %v600_v6 = vor.u32 %v781_v59, %v597_v60  ;;  %826 = vset.pattern.permute.xlu0 %v851_v18  ;;  %v243_v23 = vunpack.c.h.b16 %v69_v63 }
  0x10   :  { %386 = vmatpush.bf16.msra.mxu1 %v740_v39  ;;  %372 = vmatpush.bf16.msra.mxu0 %v628_v40  ;;  %v579_v5 = vld [vmem:[%s1254_s0 + $0x20] sm:$0xf]  ;;  %v712_v7 = vor.u32 %v809_v61, %v709_v62  ;;  %v779_v8 = vld [vmem:[%s1254_s0 + $0x2c] sm:$0xf0]  ;;  %v777_v9 = vld [vmem:[%s1254_s0 + $0x24] sm:$0xf]  ;;  %v692_v19 = vor.u32 %v807_v4, %v691_v3 }
  0x11   :  { %398 = vmatpush.bf16.msra.mxu2 %v632_v43  ;;  %412 = vmatpush.bf16.msra.mxu3 %v744_v44  ;;  %v581_v10 = vld [vmem:[%s1254_s0 + $0x30] sm:$0xf0]  ;;  %v805_v11 = vld [vmem:[%s1254_s0 + $0x104] sm:$0xf]  ;;  %v683_v14 = vld [vmem:[%s1254_s0 + $0xe8] sm:$0xf]  ;;  %v298_v16 = vpack.c.b16 %v242_v0, %v242_v0  ;;  %v580_v20 = vor.u32 %v779_v8, %v579_v5  ;;  %v299_v39 = vpack.c.b16 %v243_v23, %v243_v23 }
  0x12   :  { %v693_v12 = vld [vmem:[%s1254_s0 + $0x110] sm:$0xf0]  ;;  %v15_v13 = vld [vmem:[%s1255_s1] sm:$0xff]  ;;  %v804_v15 = vld [vmem:[%s1254_s0 + $0xf4] sm:$0xf0]  ;;  %v584_v24 = vor.u32 %v777_v9, %v581_v10 }
  0x13   :  { %v78_v17 = vunpack.c.h.b16 %v15_v13  ;;  %v563_v21 = vld [vmem:[%s1254_s0] sm:$0xf]  ;;  %v775_v22 = vld [vmem:[%s1254_s0 + $0xc] sm:$0xf0]  ;;  %v696_v25 = vor.u32 %v805_v11, %v693_v12  ;;  %v773_v26 = vld [vmem:[%s1254_s0 + $0x4] sm:$0xf]  ;;  %v684_v29 = vor.u32 %v804_v15, %v683_v14  ;;  %v77_v36 = vunpack.c.l.b16 %v15_v13 }
  0x14   :  { %387 = vmatpush.bf16.msra.mxu1 %v724_v51  ;;  %373 = vmatpush.bf16.msra.mxu0 %v612_v52  ;;  %v565_v27 = vld [vmem:[%s1254_s0 + $0x10] sm:$0xf0]  ;;  %v667_v28 = vld [vmem:[%s1254_s0 + $0xc8] sm:$0xf]  ;;  %v800_v30 = vld [vmem:[%s1254_s0 + $0xd4] sm:$0xf0]  ;;  %v564_v38 = vor.u32 %v775_v22, %v563_v21 }
  0x15   :  { %399 = vmatpush.bf16.msra.mxu2 %v616_v56  ;;  %413 = vmatpush.bf16.msra.mxu3 %v728_v57  ;;  %v802_v31 = vld [vmem:[%s1254_s0 + $0xec] sm:$0xf]  ;;  %v685_v32 = vld [vmem:[%s1254_s0 + $0xf8] sm:$0xf0]  ;;  %v364_v33 = vsel %vm356_vm0, %v298_v16, 0  ;;  %v1064_v37 = vpack.c.b16 %v78_v17, %v78_v17  ;;  %v568_v40 = vor.u32 %v773_v26, %v565_v27  ;;  %v668_v43 = vor.u32 %v800_v30, %v667_v28  ;;  %v70_v47 = vld [vmem:[%s1256_s2] sm:$0xff] }
  0x16   :  { %v763_v34 = vld [vmem:[%s1254_s0 + $0x188] sm:$0xf]  ;;  %v824_v35 = vld [vmem:[%s1254_s0 + $0x194] sm:$0xf0]  ;;  %v688_v41 = vor.u32 %v802_v31, %v685_v32  ;;  %v798_v45 = vld [vmem:[%s1254_s0 + $0xcc] sm:$0xf]  ;;  %v1078_v48 = vpack.c.b16 %v77_v36, %v77_v36  ;;  %73 = vperm.xlu0 %826, %v70_v47  }
  0x17   :  { %v651_v42 = vld [vmem:[%s1254_s0 + $0xa8] sm:$0xf]  ;;  %v764_v44 = vor.u32 %v824_v35, %v763_v34  ;;  %v669_v46 = vld [vmem:[%s1254_s0 + $0xd8] sm:$0xf0]  ;;  %v796_v49 = vld [vmem:[%s1254_s0 + $0xb4] sm:$0xf0] }
  0x18   :  { %388 = vmatpush.bf16.msra.mxu1 %v708_v1  ;;  %374 = vmatpush.bf16.msra.mxu0 %v596_v2  ;;  %v747_v50 = vld [vmem:[%s1254_s0 + $0x168] sm:$0xf]  ;;  %v820_v51 = vld [vmem:[%s1254_s0 + $0x174] sm:$0xf0]  ;;  %v367_v52 = vsel %vm356_vm0, %v299_v39, 0  ;;  %v672_v55 = vor.u32 %v798_v45, %v669_v46  ;;  %v652_v56 = vor.u32 %v796_v49, %v651_v42 }
  0x19   :  { %400 = vmatpush.bf16.msra.mxu2 %v600_v6  ;;  %414 = vmatpush.bf16.msra.mxu3 %v712_v7  ;;  %v822_v53 = vld [vmem:[%s1254_s0 + $0x18c] sm:$0xf]  ;;  %v765_v54 = vld [vmem:[%s1254_s0 + $0x198] sm:$0xf0]  ;;  %v748_v57 = vor.u32 %v820_v51, %v747_v50  ;;  %v635_v58 = vld [vmem:[%s1254_s0 + $0x88] sm:$0xf] }
  0x1a   :  { %v794_v59 = vld [vmem:[%s1254_s0 + $0xac] sm:$0xf]  ;;  %v653_v60 = vld [vmem:[%s1254_s0 + $0xb8] sm:$0xf0]  ;;  %v768_v61 = vor.u32 %v822_v53, %v765_v54  ;;  %v792_v62 = vld [vmem:[%s1254_s0 + $0x94] sm:$0xf0] }
  0x1b   :  { %v731_v63 = vld [vmem:[%s1254_s0 + $0x148] sm:$0xf]  ;;  %v816_v0 = vld [vmem:[%s1254_s0 + $0x154] sm:$0xf0]  ;;  %v818_v1 = vld [vmem:[%s1254_s0 + $0x16c] sm:$0xf]  ;;  %v656_v3 = vor.u32 %v794_v59, %v653_v60  ;;  %v636_v4 = vor.u32 %v792_v62, %v635_v58 }
  0x1c   :  { %389 = vmatpush.bf16.msra.mxu1 %v692_v19  ;;  %375 = vmatpush.bf16.msra.mxu0 %v580_v20  ;;  %v749_v2 = vld [vmem:[%s1254_s0 + $0x178] sm:$0xf0]  ;;  %v732_v5 = vor.u32 %v816_v0, %v731_v63  ;;  %v619_v6 = vld [vmem:[%s1254_s0 + $0x68] sm:$0xf]  ;;  %v790_v7 = vld [vmem:[%s1254_s0 + $0x8c] sm:$0xf] }
  0x1d   :  { %401 = vmatpush.bf16.msra.mxu2 %v584_v24  ;;  %415 = vmatpush.bf16.msra.mxu3 %v696_v25  ;;  %v637_v8 = vld [vmem:[%s1254_s0 + $0x98] sm:$0xf0]  ;;  %v752_v9 = vor.u32 %v818_v1, %v749_v2  ;;  %v788_v10 = vld [vmem:[%s1254_s0 + $0x74] sm:$0xf0]  ;;  %v715_v11 = vld [vmem:[%s1254_s0 + $0x128] sm:$0xf] }
  0x1e   :  { %v812_v12 = vld [vmem:[%s1254_s0 + $0x134] sm:$0xf0]  ;;  %v814_v13 = vld [vmem:[%s1254_s0 + $0x14c] sm:$0xf]  ;;  %v733_v14 = vld [vmem:[%s1254_s0 + $0x158] sm:$0xf0]  ;;  %v640_v15 = vor.u32 %v790_v7, %v637_v8  ;;  %v620_v16 = vor.u32 %v788_v10, %v619_v6 }
  0x1f   :  { %769 = vmatmul.msk.bf16.vlgmr.msra.gmra.mxu1 %vm352_vm1, %v1064_v37  ;;  %v716_v17 = vor.u32 %v812_v12, %v715_v11  ;;  %v603_v18 = vld [vmem:[%s1254_s0 + $0x48] sm:$0xf]  ;;  %v786_v19 = vld [vmem:[%s1254_s0 + $0x6c] sm:$0xf]  ;;  %v621_v20 = vld [vmem:[%s1254_s0 + $0x78] sm:$0xf0]  ;;  %v736_v21 = vor.u32 %v814_v13, %v733_v14 }
  0x20   :  { %421 = vmatpush.bf16.msrb.mxu1 %v684_v29  ;;  %376 = vmatpush.bf16.msra.mxu0 %v564_v38  ;;  %v784_v22 = vld [vmem:[%s1254_s0 + $0x54] sm:$0xf0]  ;;  %v699_v23 = vld [vmem:[%s1254_s0 + $0x108] sm:$0xf]  ;;  %v810_v25 = vld [vmem:[%s1254_s0 + $0x12c] sm:$0xf]  ;;  %v624_v27 = vor.u32 %v786_v19, %v621_v20 }
  0x21   :  { %436 = vmatpush.bf16.msrb.mxu3 %v364_v33  ;;  %402 = vmatpush.bf16.msra.mxu2 %v568_v40  ;;  %v808_v24 = vld [vmem:[%s1254_s0 + $0x114] sm:$0xf0]  ;;  %v717_v26 = vld [vmem:[%s1254_s0 + $0x138] sm:$0xf0]  ;;  %v604_v28 = vor.u32 %v784_v22, %v603_v18  ;;  %v782_v30 = vld [vmem:[%s1254_s0 + $0x4c] sm:$0xf] }
  0x22   :  { %770 = vmatmul.msk.bf16.vlgmr.msra.gmra.mxu3 %vm352_vm1, %v1064_v37  ;;  %v700_v29 = vor.u32 %v808_v24, %v699_v23  ;;  %v605_v31 = vld [vmem:[%s1254_s0 + $0x58] sm:$0xf0]  ;;  %v720_v32 = vor.u32 %v810_v25, %v717_v26  ;;  %v587_v33 = vld [vmem:[%s1254_s0 + $0x28] sm:$0xf]  ;;  %v780_v34 = vld [vmem:[%s1254_s0 + $0x34] sm:$0xf0] }
  0x23   :  { %377 = vmatmul.bf16.vlgmr.msra.gmra.mxu0 %v1078_v48  ;;  %v806_v35 = vld [vmem:[%s1254_s0 + $0x10c] sm:$0xf]  ;;  %v701_v36 = vld [vmem:[%s1254_s0 + $0x118] sm:$0xf0]  ;;  %v608_v38 = vor.u32 %v782_v30, %v605_v31  ;;  %v588_v39 = vor.u32 %v780_v34, %v587_v33 }
  0x24   :  { %447 = vmatpush.bf16.msrb.mxu0 %v688_v41  ;;  %422 = vmatpush.bf16.msrb.mxu1 %v668_v43  ;;  %v778_v40 = vld [vmem:[%s1254_s0 + $0x2c] sm:$0xf]  ;;  %v589_v41 = vld [vmem:[%s1254_s0 + $0x38] sm:$0xf0]  ;;  %v704_v42 = vor.u32 %v806_v35, %v701_v36  ;;  %v571_v43 = vld [vmem:[%s1254_s0 + $0x8] sm:$0xf] }
  0x25   :  { %437 = vmatpush.bf16.msrb.mxu3 %v764_v44  ;;  %462 = vmatpush.bf16.msrb.mxu2 %v367_v52  ;;  %v776_v44 = vld [vmem:[%s1254_s0 + $0x14] sm:$0xf0]  ;;  %v592_v45 = vor.u32 %v778_v40, %v589_v41  ;;  %v774_v47 = vld [vmem:[%s1254_s0 + $0xc] sm:$0xf]  ;;  %v573_v49 = vld [vmem:[%s1254_s0 + $0x18] sm:$0xf0] }
  0x26   :  { %403 = vmatmul.bf16.vlgmr.msra.gmra.mxu2 %v1078_v48  ;;  %v572_v46 = vor.u32 %v776_v44, %v571_v43  ;;  %v576_v50 = vor.u32 %v774_v47, %v573_v49 }
  0x28   :  { %448 = vmatpush.bf16.msrb.mxu0 %v672_v55  ;;  %423 = vmatpush.bf16.msrb.mxu1 %v652_v56 }
  0x29   :  { %438 = vmatpush.bf16.msrb.mxu3 %v748_v57  ;;  %463 = vmatpush.bf16.msrb.mxu2 %v768_v61 }
  0x2c   :  { %449 = vmatpush.bf16.msrb.mxu0 %v656_v3  ;;  %424 = vmatpush.bf16.msrb.mxu1 %v636_v4 }
  0x2d   :  { %439 = vmatpush.bf16.msrb.mxu3 %v732_v5  ;;  %464 = vmatpush.bf16.msrb.mxu2 %v752_v9 }
  0x30   :  { %450 = vmatpush.bf16.msrb.mxu0 %v640_v15  ;;  %425 = vmatpush.bf16.msrb.mxu1 %v620_v16 }
  0x31   :  { %440 = vmatpush.bf16.msrb.mxu3 %v716_v17  ;;  %465 = vmatpush.bf16.msrb.mxu2 %v736_v21 }
  0x34   :  { %451 = vmatpush.bf16.msrb.mxu0 %v624_v27  ;;  %426 = vmatpush.bf16.msrb.mxu1 %v604_v28 }
  0x35   :  { %441 = vmatpush.bf16.msrb.mxu3 %v700_v29  ;;  %466 = vmatpush.bf16.msrb.mxu2 %v720_v32 }
  0x38   :  { %771 = vmatmul.msk.bf16.vlgmr.msrb.gmra.mxu3 %vm352_vm1, %v1064_v37  ;;  %452 = vmatpush.bf16.msrb.mxu0 %v608_v38 }
  0x39   :  { %427 = vmatpush.bf16.msrb.mxu1 %v588_v39  ;;  %467 = vmatpush.bf16.msrb.mxu2 %v704_v42 }
  0x3c   :  { %453 = vmatpush.bf16.msrb.mxu0 %v592_v45  ;;  %772 = vmatmul.msk.bf16.vlgmr.msrb.gmra.mxu2 %vm352_vm1, %v1064_v37 }
  0x3d   :  { %428 = vmatpush.bf16.msrb.mxu1 %v572_v46 }
  0x40   :  { %429 = vmatmul.bf16.vlgmr.msrb.gmra.mxu1 %v1078_v48  ;;  %454 = vmatpush.bf16.msrb.mxu0 %v576_v50 }
  0x43   :  { %455 = vmatmul.bf16.vlgmr.msrb.gmra.mxu0 %v1078_v48 }
  0x88   :  { %v74_v52 = vpop.permute.xlu0 %73 }
  0x9c   :  { %v391_v51 = vpop.f32.mrf.mxu1 }
  0xa0   :  { %v378_v53 = vpop.f32.mrf.mxu0 }
  0xa1   :  { %v379_v54 = vadd.f32 %v378_v53, %v74_v52 }
  0xa3   :  { %v1216_v55 = vadd.f32 %v391_v51, %v379_v54 }
  0xa4   :  { %v393_v57 = vpop.f32.mrf.mxu1 }
  0xa5   :  { %v417_v56 = vpop.f32.mrf.mxu3  ;;  %v485_v58 = vand.u32 2147483647, %v1216_v55  ;;  %v473_v17 = vmax.f32 %v1216_v55, 0.0  ;;  %vm477_vm3 = vcmp.ne.f32.partialorder %v1216_v55, %v1216_v55 }
  0xa7   :  { %v489_v59 = vsub.f32 0.0, %v485_v58 }
  0xa8   :  { %v380_v62 = vpop.f32.mrf.mxu0 }
  0xa9   :  { %v404_v60 = vpop.f32.mrf.mxu2  ;;  %v493_v37 = vmul.f32 1.442695, %v489_v59 }
  0xaa   :  { %v405_v61 = vadd.f32 %v404_v60, %v74_v52 }
  0xab   :  { %827 = vpow2.f32 %v493_v37 }
  0xac   :  { %v1219_v63 = vadd.f32 %v417_v56, %v405_v61 }
  0xad   :  { %v419_v0 = vpop.f32.mrf.mxu3 }
  0xae   :  { %v486_v48 = vand.u32 2147483647, %v1219_v63  ;;  %v474_v36 = vmax.f32 %v1219_v63, 0.0  ;;  %vm478_vm5 = vcmp.ne.f32.partialorder %v1219_v63, %v1219_v63 }
  0xb0   :  { %v490_v1 = vsub.f32 0.0, %v486_v48 }
  0xb1   :  { %v406_v2 = vpop.f32.mrf.mxu2  ;;  %v828_v4 = vpop.eup %827 }
  0xb2   :  { %v495_v3 = vmul.f32 1.442695, %v490_v1  ;;  %v501_v5 = vadd.f32 1.0, %v828_v4  ;;  %v504_v6 = vmul.f32 -0.5, %v828_v4  ;;  %v507_v8 = vand.u32 2147483647, %v828_v4 }
  0xb4   :  { %829 = vpow2.f32 %v495_v3  ;;  %v505_v7 = vadd.f32 1.0, %v504_v6  ;;  %vm508_vm2 = vcmp.lt.f32.partialorder %v507_v8, 0.0004427343 }
  0xb5   :  { %831 = vlog2.f32 %v501_v5 }
  0xb6   :  { %v506_v11 = vmul.f32 %v828_v4, %v505_v7 }
  0xba   :  { %v830_v9 = vpop.eup %829 }
  0xbb   :  { %v443_v10 = vpop.f32.mrf.mxu3  ;;  %v510_v12 = vadd.f32 1.0, %v830_v9  ;;  %v832_v13 = vpop.eup %831  ;;  %v513_v14 = vmul.f32 -0.5, %v830_v9  ;;  %v516_v20 = vand.u32 2147483647, %v830_v9 }
  0xbc   :  { %v503_v16 = vmul.f32 0.6931472, %v832_v13 }
  0xbd   :  { %v430_v15 = vpop.f32.mrf.mxu1  ;;  %833 = vlog2.f32 %v510_v12  ;;  %v514_v24 = vadd.f32 1.0, %v513_v14  ;;  %vm517_vm4 = vcmp.lt.f32.partialorder %v516_v20, 0.0004427343 }
  0xbe   :  { %v431_v18 = vadd.f32 %v430_v15, %v74_v52  ;;  %v509_v19 = vsel %vm508_vm2, %v506_v11, %v503_v16 }
  0xbf   :  { %v469_v21 = vpop.f32.mrf.mxu2  ;;  %v537_v23 = vadd.f32 %v509_v19, %v473_v17  ;;  %v515_v33 = vmul.f32 %v830_v9, %v514_v24 }
  0xc0   :  { %v456_v22 = vpop.f32.mrf.mxu0  ;;  %v1223_v25 = vadd.f32 %v443_v10, %v431_v18 }
  0xc1   :  { %v457_v26 = vadd.f32 %v456_v22, %v74_v52  ;;  %v541_v31 = vsel %vm477_vm3, %v1216_v55, %v537_v23 }
  0xc2   :  { %v487_v27 = vand.u32 2147483647, %v1223_v25  ;;  %835 = vtanh.f32 %v541_v31  ;;  %vm479_vm7 = vcmp.ne.f32.partialorder %v1223_v25, %v1223_v25 }
  0xc3   :  { %v445_v28 = vpop.f32.mrf.mxu3  ;;  %v834_v29 = vpop.eup %833  ;;  %v1228_v30 = vadd.f32 %v469_v21, %v457_v26 }
  0xc4   :  { %v512_v32 = vmul.f32 0.6931472, %v834_v29  ;;  %v491_v34 = vsub.f32 0.0, %v487_v27 }
  0xc5   :  { %v432_v35 = vpop.f32.mrf.mxu1  ;;  %v488_v38 = vand.u32 2147483647, %v1228_v30  ;;  %v476_v6 = vmax.f32 %v1228_v30, 0.0  ;;  %vm480_vm9 = vcmp.ne.f32.partialorder %v1228_v30, %v1228_v30 }
  0xc6   :  { %v518_v39 = vsel %vm517_vm4, %v515_v33, %v512_v32  ;;  %v497_v40 = vmul.f32 1.442695, %v491_v34 }
  0xc7   :  { %v538_v41 = vadd.f32 %v518_v39, %v474_v36  ;;  %v492_v42 = vsub.f32 0.0, %v488_v38  ;;  %v471_v43 = vpop.f32.mrf.mxu2 }
  0xc8   :  { %v458_v44 = vpop.f32.mrf.mxu0  ;;  %837 = vpow2.f32 %v497_v40  ;;  %v836_v47 = vpop.eup %835 }
  0xc9   :  { %v542_v45 = vsel %vm478_vm5, %v1219_v63, %v538_v41  ;;  %v499_v46 = vmul.f32 1.442695, %v492_v42  ;;  %v549_v54 = vmul.f32 %v836_v47, %v1216_v55  ;;  %v475_v55 = vmax.f32 %v1223_v25, 0.0 }
  0xca   :  { %839 = vtanh.f32 %v542_v45 }
  0xcb   :  { %841 = vpow2.f32 %v499_v46 }
  0xce   :  { %v838_v49 = vpop.eup %837 }
  0xcf   :  { %v519_v50 = vadd.f32 1.0, %v838_v49  ;;  %v522_v52 = vmul.f32 -0.5, %v838_v49  ;;  %v525_v61 = vand.u32 2147483647, %v838_v49 }
  0xd0   :  { %v840_v51 = vpop.eup %839 }
  0xd1   :  { %v842_v53 = vpop.eup %841  ;;  %v550_v56 = vmul.f32 %v840_v51, %v1219_v63  ;;  %843 = vlog2.f32 %v519_v50  ;;  %v523_v60 = vadd.f32 1.0, %v522_v52  ;;  %vm526_vm6 = vcmp.lt.f32.partialorder %v525_v61, 0.0004427343 }
  0xd2   :  { %v528_v57 = vadd.f32 1.0, %v842_v53  ;;  %v531_v59 = vmul.f32 -0.5, %v842_v53  ;;  %v534_v1 = vand.u32 2147483647, %v842_v53 }
  0xd3   :  { %v553_v58 = vpack.c.bf16 %v550_v56, %v549_v54  ;;  %v524_v48 = vmul.f32 %v838_v49, %v523_v60 }
  0xd4   :  { %845 = vlog2.f32 %v528_v57  ;;  %v532_v37 = vadd.f32 1.0, %v531_v59  ;;  %vm535_vm8 = vcmp.lt.f32.partialorder %v534_v1, 0.0004427343 }
  0xd5   :  { %555 = vst [vmem:[%s1257_s3] sm:$0xff] %v553_v58 }
  0xd6   :  { %v533_v5 = vmul.f32 %v842_v53, %v532_v37 }
  0xd7   :  { %v844_v62 = vpop.eup %843 }
  0xd8   :  { %v521_v0 = vmul.f32 0.6931472, %v844_v62 }
  0xda   :  { %v846_v63 = vpop.eup %845  ;;  %v527_v2 = vsel %vm526_vm6, %v524_v48, %v521_v0 }
  0xdb   :  { %v539_v3 = vadd.f32 %v527_v2, %v475_v55  ;;  %v530_v4 = vmul.f32 0.6931472, %v846_v63 }
  0xdd   :  { %v543_v7 = vsel %vm479_vm7, %v1223_v25, %v539_v3  ;;  %v536_v8 = vsel %vm535_vm8, %v533_v5, %v530_v4 }
  0xde   :  { %v540_v9 = vadd.f32 %v536_v8, %v476_v6  ;;  %847 = vtanh.f32 %v543_v7 }
  0xe0   :  { %v544_v10 = vsel %vm480_vm9, %v1228_v30, %v540_v9 }
  0xe1   :  { %849 = vtanh.f32 %v544_v10 }
  0xe4   :  { %v848_v11 = vpop.eup %847 }
  0xe5   :  { %v551_v13 = vmul.f32 %v848_v11, %v1223_v25 }
  0xe7   :  { %v850_v12 = vpop.eup %849 }
  0xe8   :  { %v552_v14 = vmul.f32 %v850_v12, %v1228_v30 }
  0xea   :  { %v554_v15 = vpack.c.bf16 %v552_v14, %v551_v13 }
  0xec   :  { %556 = vst [vmem:[%s1257_s3 + $0x8] sm:$0xff] %v554_v15 }

// kernel: hourglass_forward.8
= control target key start
LH: loop header
LB: loop body
LE: loop exit
PB: predicated region body
PF: predicated region fallthrough
CT: control target
= control target key end

     0   :  { %vm150_vm0 = vcmask 1043456   ;;  %v325_v4 = vmov 0   ;;  %vm146_vm1 = vcmask 719872   ;;  %s409_s0 = inlined_call_operand.vmem [shape: bf16[216,128], index: 0, kind: input, shape index: {}]   ;;  %s410_s2 = inlined_call_operand.vmem [shape: f32[16,1], index: 2, kind: input, shape index: {}]   ;;  %s411_s1 = inlined_call_operand.vmem [shape: bf16[16,216], index: 1, kind: input, shape index: {}]   ;;  %s412_s3 = inlined_call_operand.vmem [shape: bf16[16,128], index: 3, kind: output, shape index: {}]  }
   0x1   :  { %v300_v0 = vld [vmem:[%s409_s0 + $0x38] sm:$0xff]  ;;  %v43_v1 = vld [vmem:[%s409_s0 + $0x68] sm:$0xf]  ;;  %v299_v3 = vld [vmem:[%s409_s0 + $0x30] sm:$0xff]  ;;  %312 = vset.pattern.permute.xlu0 %v325_v4 }
   0x2   :  { %v118_v2 = vunpack.c.l.b16 %v43_v1  ;;  %154 = vmatpush.bf16.msra.mxu0 %v300_v0  ;;  %v305_v7 = vld [vmem:[%s409_s0 + $0x60] sm:$0xff]  ;;  %v298_v8 = vld [vmem:[%s409_s0 + $0x28] sm:$0xff]  ;;  %v304_v10 = vld [vmem:[%s409_s0 + $0x58] sm:$0xff] }
   0x3   :  { %v44_v9 = vld [vmem:[%s410_s2] sm:$0xff]  ;;  %v45_v12 = vld [vmem:[%s410_s2 + $0x8] sm:$0xff]  ;;  %v303_v13 = vld [vmem:[%s409_s0 + $0x50] sm:$0xff] }
   0x4   :  { %v132_v5 = vpack.c.b16 %v118_v2, %v118_v2  ;;  %48 = vperm.xlu0 %312, %v44_v9   ;;  %v297_v11 = vld [vmem:[%s409_s0 + $0x20] sm:$0xff]  ;;  %v296_v14 = vld [vmem:[%s409_s0 + $0x18] sm:$0xff]  ;;  %v302_v15 = vld [vmem:[%s409_s0 + $0x48] sm:$0xff] }
   0x5   :  { %v295_v16 = vld [vmem:[%s409_s0 + $0x10] sm:$0xff]  ;;  %v301_v17 = vld [vmem:[%s409_s0 + $0x40] sm:$0xff]  ;;  %v294_v18 = vld [vmem:[%s409_s0 + $0x8] sm:$0xff] }
   0x6   :  { %v152_v6 = vsel %vm150_vm0, %v132_v5, 0  ;;  %155 = vmatpush.bf16.msra.mxu0 %v299_v3  ;;  %v291_v19 = vld [vmem:[%s411_s1 + $0x4] sm:$0xf]  ;;  %v234_v20 = vld [vmem:[%s411_s1 + $0x8] sm:$0xf0] }
   0x7   :  { %170 = vmatpush.bf16.msra.mxu1 %v152_v6  ;;  %v237_v21 = vor.u32 %v291_v19, %v234_v20  ;;  %v293_v22 = vld [vmem:[%s409_s0] sm:$0xff]  ;;  %v292_v24 = vld [vmem:[%s411_s1 + $0x4] sm:$0xf0] }
   0x8   :  { %v232_v23 = vld [vmem:[%s411_s1] sm:$0xf] }
   0x9   :  { %v233_v25 = vor.u32 %v292_v24, %v232_v23 }
   0xa   :  { %156 = vmatpush.bf16.msra.mxu0 %v298_v8 }
   0xb   :  { %171 = vmatpush.bf16.msra.mxu1 %v305_v7 }
   0xc   :  { %53 = vperm.xlu0 %312, %v45_v12  }
   0xe   :  { %157 = vmatpush.bf16.msra.mxu0 %v297_v11 }
   0xf   :  { %172 = vmatpush.bf16.msra.mxu1 %v304_v10 }
  0x12   :  { %158 = vmatpush.bf16.msra.mxu0 %v296_v14 }
  0x13   :  { %173 = vmatpush.bf16.msra.mxu1 %v303_v13 }
  0x16   :  { %159 = vmatpush.bf16.msra.mxu0 %v295_v16 }
  0x17   :  { %174 = vmatpush.bf16.msra.mxu1 %v302_v15 }
  0x1a   :  { %160 = vmatpush.bf16.msra.mxu0 %v294_v18 }
  0x1b   :  { %175 = vmatpush.bf16.msra.mxu1 %v301_v17 }
  0x1e   :  { %290 = vmatmul.msk.bf16.vlgmr.msra.gmra.mxu1 %vm146_vm1, %v237_v21  ;;  %161 = vmatpush.bf16.msra.mxu0 %v293_v22 }
  0x21   :  { %162 = vmatmul.bf16.vlgmr.msra.gmra.mxu0 %v233_v25 }
  0x76   :  { %v49_v26 = vpop.permute.xlu0 %48 }
  0x7e   :  { %v54_v33 = vpop.permute.xlu0 %53 }
  0x9b   :  { %v177_v27 = vpop.f32.mrf.mxu1 }
  0x9e   :  { %v163_v28 = vpop.f32.mrf.mxu0 }
  0x9f   :  { %v164_v29 = vadd.f32 %v163_v28, %v49_v26 }
  0xa1   :  { %v178_v30 = vadd.f32 %v177_v27, %v164_v29 }
  0xa3   :  { %v188_v31 = vand.u32 2147483647, %v178_v30  ;;  %v179_v37 = vpop.f32.mrf.mxu1  ;;  %v182_v54 = vmax.f32 %v178_v30, 0.0  ;;  %vm184_vm3 = vcmp.ne.f32.partialorder %v178_v30, %v178_v30 }
  0xa5   :  { %v190_v32 = vsub.f32 0.0, %v188_v31 }
  0xa6   :  { %v165_v34 = vpop.f32.mrf.mxu0 }
  0xa7   :  { %v192_v35 = vmul.f32 1.442695, %v190_v32  ;;  %v166_v36 = vadd.f32 %v165_v34, %v54_v33 }
  0xa9   :  { %313 = vpow2.f32 %v192_v35  ;;  %v180_v38 = vadd.f32 %v179_v37, %v166_v36 }
  0xab   :  { %v189_v39 = vand.u32 2147483647, %v180_v38  ;;  %v183_v62 = vmax.f32 %v180_v38, 0.0  ;;  %vm185_vm5 = vcmp.ne.f32.partialorder %v180_v38, %v180_v38 }
  0xad   :  { %v191_v40 = vsub.f32 0.0, %v189_v39 }
  0xaf   :  { %v314_v41 = vpop.eup %313  ;;  %v194_v42 = vmul.f32 1.442695, %v191_v40 }
  0xb0   :  { %v196_v43 = vadd.f32 1.0, %v314_v41  ;;  %v199_v44 = vmul.f32 -0.5, %v314_v41  ;;  %v202_v46 = vand.u32 2147483647, %v314_v41 }
  0xb1   :  { %315 = vpow2.f32 %v194_v42 }
  0xb2   :  { %317 = vlog2.f32 %v196_v43  ;;  %v200_v45 = vadd.f32 1.0, %v199_v44  ;;  %vm203_vm2 = vcmp.lt.f32.partialorder %v202_v46, 0.0004427343 }
  0xb4   :  { %v201_v51 = vmul.f32 %v314_v41, %v200_v45 }
  0xb7   :  { %v316_v47 = vpop.eup %315 }
  0xb8   :  { %v318_v48 = vpop.eup %317  ;;  %v205_v49 = vadd.f32 1.0, %v316_v47  ;;  %v208_v52 = vmul.f32 -0.5, %v316_v47  ;;  %v211_v57 = vand.u32 2147483647, %v316_v47 }
  0xb9   :  { %v198_v50 = vmul.f32 0.6931472, %v318_v48 }
  0xba   :  { %319 = vlog2.f32 %v205_v49  ;;  %v209_v55 = vadd.f32 1.0, %v208_v52  ;;  %vm212_vm4 = vcmp.lt.f32.partialorder %v211_v57, 0.0004427343 }
  0xbb   :  { %v204_v53 = vsel %vm203_vm2, %v201_v51, %v198_v50 }
  0xbc   :  { %v214_v56 = vadd.f32 %v204_v53, %v182_v54  ;;  %v210_v60 = vmul.f32 %v316_v47, %v209_v55 }
  0xbe   :  { %v216_v61 = vsel %vm184_vm3, %v178_v30, %v214_v56 }
  0xbf   :  { %321 = vtanh.f32 %v216_v61 }
  0xc0   :  { %v320_v58 = vpop.eup %319 }
  0xc1   :  { %v207_v59 = vmul.f32 0.6931472, %v320_v58 }
  0xc3   :  { %v213_v63 = vsel %vm212_vm4, %v210_v60, %v207_v59 }
  0xc4   :  { %v215_v0 = vadd.f32 %v213_v63, %v183_v62 }
  0xc5   :  { %v322_v2 = vpop.eup %321 }
  0xc6   :  { %v217_v1 = vsel %vm185_vm5, %v180_v38, %v215_v0  ;;  %v220_v4 = vmul.f32 %v322_v2, %v178_v30 }
  0xc7   :  { %323 = vtanh.f32 %v217_v1 }
  0xcd   :  { %v324_v3 = vpop.eup %323 }
  0xce   :  { %v221_v5 = vmul.f32 %v324_v3, %v180_v38 }
  0xd0   :  { %v309_v6 = vpack.c.bf16 %v221_v5, %v220_v4 }
  0xd2   :  { %310 = vst [vmem:[%s412_s3] sm:$0xff] %v309_v6  }

// kernel: hourglass_forward.9
= control target key start
LH: loop header
LB: loop body
LE: loop exit
PB: predicated region body
PF: predicated region fallthrough
CT: control target
= control target key end

     0   :  { %v549_v6 = vmov 0   ;;  %vm266_vm0 = vcmask 392192   ;;  %s684_s0 = inlined_call_operand.vmem [shape: bf16[432,128], index: 0, kind: input, shape index: {}]   ;;  %s685_s2 = inlined_call_operand.vmem [shape: f32[16,1], index: 2, kind: input, shape index: {}]   ;;  %s686_s1 = inlined_call_operand.vmem [shape: bf16[16,432], index: 1, kind: input, shape index: {}]   ;;  %s687_s3 = inlined_call_operand.vmem [shape: bf16[16,128], index: 3, kind: output, shape index: {}]  }
   0x1   :  { %v510_v0 = vld [vmem:[%s684_s0 + $0x38] sm:$0xff]  ;;  %v509_v3 = vld [vmem:[%s684_s0 + $0x30] sm:$0xff]  ;;  %536 = vset.pattern.permute.xlu0 %v549_v6  ;;  %v508_v8 = vld [vmem:[%s684_s0 + $0x28] sm:$0xff] }
   0x2   :  { %v518_v1 = vld [vmem:[%s684_s0 + $0x78] sm:$0xff]  ;;  %270 = vmatpush.bf16.msra.mxu0 %v510_v0  ;;  %v517_v4 = vld [vmem:[%s684_s0 + $0x70] sm:$0xff]  ;;  %v516_v9 = vld [vmem:[%s684_s0 + $0x68] sm:$0xff] }
   0x3   :  { %v526_v2 = vld [vmem:[%s684_s0 + $0xb8] sm:$0xff]  ;;  %284 = vmatpush.bf16.msra.mxu1 %v518_v1  ;;  %v525_v5 = vld [vmem:[%s684_s0 + $0xb0] sm:$0xff]  ;;  %v524_v10 = vld [vmem:[%s684_s0 + $0xa8] sm:$0xff] }
   0x4   :  { %298 = vmatpush.bf16.msra.mxu2 %v526_v2  ;;  %v529_v7 = vld [vmem:[%s684_s0 + $0xd0] sm:$0xff]  ;;  %v528_v11 = vld [vmem:[%s684_s0 + $0xc8] sm:$0xff]  ;;  %v507_v12 = vld [vmem:[%s684_s0 + $0x20] sm:$0xff] }
   0x5   :  { %317 = vmatpush.bf16.msra.mxu3 %v529_v7  ;;  %v515_v13 = vld [vmem:[%s684_s0 + $0x60] sm:$0xff]  ;;  %v500_v17 = vld [vmem:[%s686_s1 + $0xc] sm:$0xf]  ;;  %v386_v18 = vld [vmem:[%s686_s1 + $0x18] sm:$0xf0] }
   0x6   :  { %271 = vmatpush.bf16.msra.mxu0 %v509_v3  ;;  %v523_v14 = vld [vmem:[%s684_s0 + $0xa0] sm:$0xff]  ;;  %v506_v19 = vld [vmem:[%s684_s0 + $0x18] sm:$0xff]  ;;  %v389_v22 = vor.u32 %v500_v17, %v386_v18  ;;  %v74_v23 = vld [vmem:[%s685_s2 + $0x8] sm:$0xff] }
   0x7   :  { %285 = vmatpush.bf16.msra.mxu1 %v517_v4  ;;  %v527_v15 = vld [vmem:[%s684_s0 + $0xc0] sm:$0xff]  ;;  %v514_v20 = vld [vmem:[%s684_s0 + $0x58] sm:$0xff]  ;;  %v505_v24 = vld [vmem:[%s684_s0 + $0x10] sm:$0xff] }
   0x8   :  { %299 = vmatpush.bf16.msra.mxu2 %v525_v5  ;;  %v73_v16 = vld [vmem:[%s685_s2] sm:$0xff]  ;;  %v522_v21 = vld [vmem:[%s684_s0 + $0x98] sm:$0xff]  ;;  %v513_v25 = vld [vmem:[%s684_s0 + $0x50] sm:$0xff] }
   0x9   :  { %318 = vmatpush.bf16.msra.mxu3 %v528_v11  ;;  %77 = vperm.xlu0 %536, %v73_v16   ;;  %v521_v26 = vld [vmem:[%s684_s0 + $0x90] sm:$0xff]  ;;  %v504_v27 = vld [vmem:[%s684_s0 + $0x8] sm:$0xff]  ;;  %v503_v30 = vld [vmem:[%s684_s0] sm:$0xff] }
   0xa   :  { %272 = vmatpush.bf16.msra.mxu0 %v508_v8  ;;  %v512_v28 = vld [vmem:[%s684_s0 + $0x48] sm:$0xff]  ;;  %v511_v31 = vld [vmem:[%s684_s0 + $0x40] sm:$0xff]  ;;  %v501_v33 = vld [vmem:[%s686_s1 + $0xc] sm:$0xf0] }
   0xb   :  { %286 = vmatpush.bf16.msra.mxu1 %v516_v9  ;;  %v520_v29 = vld [vmem:[%s684_s0 + $0x88] sm:$0xff]  ;;  %v376_v32 = vld [vmem:[%s686_s1] sm:$0xf]  ;;  %v499_v34 = vld [vmem:[%s686_s1 + $0x4] sm:$0xf] }
   0xc   :  { %300 = vmatpush.bf16.msra.mxu2 %v524_v10  ;;  %v378_v35 = vld [vmem:[%s686_s1 + $0x10] sm:$0xf0]  ;;  %v519_v36 = vld [vmem:[%s684_s0 + $0x80] sm:$0xff]  ;;  %v384_v37 = vld [vmem:[%s686_s1 + $0x8] sm:$0xf]  ;;  %v377_v39 = vor.u32 %v501_v33, %v376_v32 }
   0xd   :  { %319 = vmatpush.bf16.msra.mxu3 %v527_v15  ;;  %v502_v38 = vld [vmem:[%s686_s1 + $0x14] sm:$0xf0]  ;;  %v381_v40 = vor.u32 %v499_v34, %v378_v35 }
   0xe   :  { %273 = vmatpush.bf16.msra.mxu0 %v507_v12  ;;  %v385_v41 = vor.u32 %v502_v38, %v384_v37 }
   0xf   :  { %287 = vmatpush.bf16.msra.mxu1 %v515_v13 }
  0x10   :  { %301 = vmatpush.bf16.msra.mxu2 %v523_v14  ;;  %498 = vmatmul.msk.bf16.vlgmr.msra.gmra.mxu3 %vm266_vm0, %v389_v22 }
  0x11   :  { %82 = vperm.xlu0 %536, %v74_v23  }
  0x12   :  { %274 = vmatpush.bf16.msra.mxu0 %v506_v19 }
  0x13   :  { %288 = vmatpush.bf16.msra.mxu1 %v514_v20 }
  0x14   :  { %302 = vmatpush.bf16.msra.mxu2 %v522_v21 }
  0x16   :  { %275 = vmatpush.bf16.msra.mxu0 %v505_v24 }
  0x17   :  { %289 = vmatpush.bf16.msra.mxu1 %v513_v25 }
  0x18   :  { %303 = vmatpush.bf16.msra.mxu2 %v521_v26 }
  0x1a   :  { %276 = vmatpush.bf16.msra.mxu0 %v504_v27 }
  0x1b   :  { %290 = vmatpush.bf16.msra.mxu1 %v512_v28 }
  0x1c   :  { %304 = vmatpush.bf16.msra.mxu2 %v520_v29 }
  0x1e   :  { %277 = vmatpush.bf16.msra.mxu0 %v503_v30 }
  0x1f   :  { %291 = vmatpush.bf16.msra.mxu1 %v511_v31 }
  0x20   :  { %305 = vmatpush.bf16.msra.mxu2 %v519_v36 }
  0x21   :  { %278 = vmatmul.bf16.vlgmr.msra.gmra.mxu0 %v377_v39 }
  0x22   :  { %292 = vmatmul.bf16.vlgmr.msra.gmra.mxu1 %v381_v40 }
  0x23   :  { %306 = vmatmul.bf16.vlgmr.msra.gmra.mxu2 %v385_v41 }
  0x7b   :  { %v78_v42 = vpop.permute.xlu0 %77 }
  0x83   :  { %v83_v51 = vpop.permute.xlu0 %82 }
  0x93   :  { %v321_v47 = vpop.f32.mrf.mxu3 }
  0x9b   :  { %v323_v61 = vpop.f32.mrf.mxu3 }
  0x9e   :  { %v279_v43 = vpop.f32.mrf.mxu0 }
  0x9f   :  { %v280_v44 = vadd.f32 %v279_v43, %v78_v42  ;;  %v293_v45 = vpop.f32.mrf.mxu1 }
  0xa1   :  { %v294_v46 = vadd.f32 %v293_v45, %v280_v44 }
  0xa6   :  { %v307_v48 = vpop.f32.mrf.mxu2  ;;  %v281_v50 = vpop.f32.mrf.mxu0 }
  0xa7   :  { %v308_v49 = vadd.f32 %v307_v48, %v294_v46  ;;  %v282_v53 = vadd.f32 %v281_v50, %v83_v51  ;;  %v295_v55 = vpop.f32.mrf.mxu1 }
  0xa9   :  { %v322_v52 = vadd.f32 %v321_v47, %v308_v49  ;;  %v296_v57 = vadd.f32 %v295_v55, %v282_v53 }
  0xab   :  { %v332_v54 = vand.u32 2147483647, %v322_v52  ;;  %v326_v14 = vmax.f32 %v322_v52, 0.0  ;;  %vm328_vm2 = vcmp.ne.f32.partialorder %v322_v52, %v322_v52 }
  0xad   :  { %v334_v56 = vsub.f32 0.0, %v332_v54 }
  0xae   :  { %v309_v58 = vpop.f32.mrf.mxu2 }
  0xaf   :  { %v336_v59 = vmul.f32 1.442695, %v334_v56  ;;  %v310_v60 = vadd.f32 %v309_v58, %v296_v57 }
  0xb1   :  { %537 = vpow2.f32 %v336_v59  ;;  %v324_v62 = vadd.f32 %v323_v61, %v310_v60 }
  0xb3   :  { %v333_v63 = vand.u32 2147483647, %v324_v62  ;;  %v327_v22 = vmax.f32 %v324_v62, 0.0  ;;  %vm329_vm4 = vcmp.ne.f32.partialorder %v324_v62, %v324_v62 }
  0xb5   :  { %v335_v0 = vsub.f32 0.0, %v333_v63 }
  0xb7   :  { %v538_v1 = vpop.eup %537  ;;  %v338_v2 = vmul.f32 1.442695, %v335_v0 }
  0xb8   :  { %v340_v3 = vadd.f32 1.0, %v538_v1  ;;  %v343_v4 = vmul.f32 -0.5, %v538_v1  ;;  %v346_v6 = vand.u32 2147483647, %v538_v1 }
  0xb9   :  { %539 = vpow2.f32 %v338_v2 }
  0xba   :  { %541 = vlog2.f32 %v340_v3  ;;  %v344_v5 = vadd.f32 1.0, %v343_v4  ;;  %vm347_vm1 = vcmp.lt.f32.partialorder %v346_v6, 0.0004427343 }
  0xbc   :  { %v345_v11 = vmul.f32 %v538_v1, %v344_v5 }
  0xbf   :  { %v540_v7 = vpop.eup %539 }
  0xc0   :  { %v542_v8 = vpop.eup %541  ;;  %v349_v9 = vadd.f32 1.0, %v540_v7  ;;  %v352_v12 = vmul.f32 -0.5, %v540_v7  ;;  %v355_v17 = vand.u32 2147483647, %v540_v7 }
  0xc1   :  { %v342_v10 = vmul.f32 0.6931472, %v542_v8 }
  0xc2   :  { %543 = vlog2.f32 %v349_v9  ;;  %v353_v15 = vadd.f32 1.0, %v352_v12  ;;  %vm356_vm3 = vcmp.lt.f32.partialorder %v355_v17, 0.0004427343 }
  0xc3   :  { %v348_v13 = vsel %vm347_vm1, %v345_v11, %v342_v10 }
  0xc4   :  { %v358_v16 = vadd.f32 %v348_v13, %v326_v14  ;;  %v354_v20 = vmul.f32 %v540_v7, %v353_v15 }
  0xc6   :  { %v360_v21 = vsel %vm328_vm2, %v322_v52, %v358_v16 }
  0xc7   :  { %545 = vtanh.f32 %v360_v21 }
  0xc8   :  { %v544_v18 = vpop.eup %543 }
  0xc9   :  { %v351_v19 = vmul.f32 0.6931472, %v544_v18 }
  0xcb   :  { %v357_v23 = vsel %vm356_vm3, %v354_v20, %v351_v19 }
  0xcc   :  { %v359_v24 = vadd.f32 %v357_v23, %v327_v22 }
  0xcd   :  { %v546_v26 = vpop.eup %545 }
  0xce   :  { %v361_v25 = vsel %vm329_vm4, %v324_v62, %v359_v24  ;;  %v364_v28 = vmul.f32 %v546_v26, %v322_v52 }
  0xcf   :  { %547 = vtanh.f32 %v361_v25 }
  0xd5   :  { %v548_v27 = vpop.eup %547 }
  0xd6   :  { %v365_v29 = vmul.f32 %v548_v27, %v324_v62 }
  0xd8   :  { %v533_v30 = vpack.c.bf16 %v365_v29, %v364_v28 }
  0xda   :  { %534 = vst [vmem:[%s687_s3] sm:$0xff] %v533_v30  }

// kernel: hourglass_forward.10
= control target key start
LH: loop header
LB: loop body
LE: loop exit
PB: predicated region body
PF: predicated region fallthrough
CT: control target
= control target key end

     0   :  { %vm693_vm0 = vcmask 392192   ;;  %vm922_vm1 = vcmask 1043456   ;;  %vm918_vm2 = vcmask 64512   ;;  %s2438_s0 = inlined_call_operand.vmem [shape: bf16[432,512], index: 0, kind: input, shape index: {}]   ;;  %s2439_s1 = inlined_call_operand.vmem [shape: bf16[8,432], index: 1, kind: input, shape index: {}]   ;;  %s2440_s2 = inlined_call_operand.vmem [shape: f32[8,1], index: 2, kind: input, shape index: {}]   ;;  %s2441_s3 = inlined_call_operand.vmem [shape: bf16[8,512], index: 3, kind: input, shape index: {}]   ;;  %s2442_s5 = inlined_call_operand.vmem [shape: f32[8,1], index: 5, kind: input, shape index: {}]   ;;  %s2443_s4 = inlined_call_operand.vmem [shape: bf16[8,8], index: 4, kind: input, shape index: {}]   ;;  %s2444_s6 = inlined_call_operand.vmem [shape: bf16[8,512], index: 6, kind: output, shape index: {}]  }
   0x1   :  { %v1203_v0 = vld [vmem:[%s2438_s0 + $0xe0] sm:$0xf]  ;;  %v1559_v1 = vld [vmem:[%s2438_s0 + $0xec] sm:$0xf0]  ;;  %v1557_v35 = vld [vmem:[%s2438_s0 + $0xe4] sm:$0xf] }
   0x2   :  { %v1331_v2 = vld [vmem:[%s2438_s0 + $0x1e0] sm:$0xf]  ;;  %v1204_v3 = vor.u32 %v1559_v1, %v1203_v0  ;;  %v1591_v4 = vld [vmem:[%s2438_s0 + $0x1ec] sm:$0xf0]  ;;  %v1205_v36 = vld [vmem:[%s2438_s0 + $0xf0] sm:$0xf0] }
   0x3   :  { %v1459_v5 = vld [vmem:[%s2438_s0 + $0x2e0] sm:$0xf]  ;;  %v1623_v6 = vld [vmem:[%s2438_s0 + $0x2ec] sm:$0xf0]  ;;  %v1332_v7 = vor.u32 %v1591_v4, %v1331_v2  ;;  %v1208_v42 = vor.u32 %v1557_v35, %v1205_v36  ;;  %v1553_v46 = vld [vmem:[%s2438_s0 + $0xc4] sm:$0xf] }
   0x4   :  { %v1460_v8 = vor.u32 %v1623_v6, %v1459_v5  ;;  %v1507_v9 = vld [vmem:[%s2438_s0 + $0x340] sm:$0xf]  ;;  %v1635_v10 = vld [vmem:[%s2438_s0 + $0x34c] sm:$0xf0]  ;;  %697 = vmatpush.bf16.msra.mxu0 %v1204_v3  ;;  %v1189_v47 = vld [vmem:[%s2438_s0 + $0xd0] sm:$0xf0] }
   0x5   :  { %v1187_v11 = vld [vmem:[%s2438_s0 + $0xc0] sm:$0xf]  ;;  %v1508_v12 = vor.u32 %v1635_v10, %v1507_v9  ;;  %v1555_v13 = vld [vmem:[%s2438_s0 + $0xcc] sm:$0xf0]  ;;  %710 = vmatpush.bf16.msra.mxu1 %v1332_v7  ;;  %v1192_v56 = vor.u32 %v1553_v46, %v1189_v47  ;;  %v1549_v58 = vld [vmem:[%s2438_s0 + $0xa4] sm:$0xf] }
   0x6   :  { %v1315_v14 = vld [vmem:[%s2438_s0 + $0x1c0] sm:$0xf]  ;;  %v1587_v15 = vld [vmem:[%s2438_s0 + $0x1cc] sm:$0xf0]  ;;  %723 = vmatpush.bf16.msra.mxu2 %v1460_v8  ;;  %v1188_v16 = vor.u32 %v1555_v13, %v1187_v11  ;;  %v1173_v59 = vld [vmem:[%s2438_s0 + $0xb0] sm:$0xf0] }
   0x7   :  { %v1316_v17 = vor.u32 %v1587_v15, %v1315_v14  ;;  %v1443_v18 = vld [vmem:[%s2438_s0 + $0x2c0] sm:$0xf]  ;;  %v1619_v19 = vld [vmem:[%s2438_s0 + $0x2cc] sm:$0xf0]  ;;  %741 = vmatpush.bf16.msra.mxu3 %v1508_v12  ;;  %v1176_v4 = vor.u32 %v1549_v58, %v1173_v59  ;;  %v1545_v6 = vld [vmem:[%s2438_s0 + $0x84] sm:$0xf] }
   0x8   :  { %v1491_v20 = vld [vmem:[%s2438_s0 + $0x320] sm:$0xf]  ;;  %v1444_v21 = vor.u32 %v1619_v19, %v1443_v18  ;;  %v1631_v22 = vld [vmem:[%s2438_s0 + $0x32c] sm:$0xf0]  ;;  %698 = vmatpush.bf16.msra.mxu0 %v1188_v16  ;;  %v1157_v7 = vld [vmem:[%s2438_s0 + $0x90] sm:$0xf0] }
   0x9   :  { %v1171_v23 = vld [vmem:[%s2438_s0 + $0xa0] sm:$0xf]  ;;  %v1551_v24 = vld [vmem:[%s2438_s0 + $0xac] sm:$0xf0]  ;;  %v1492_v25 = vor.u32 %v1631_v22, %v1491_v20  ;;  %711 = vmatpush.bf16.msra.mxu1 %v1316_v17  ;;  %v1160_v16 = vor.u32 %v1545_v6, %v1157_v7  ;;  %v1541_v17 = vld [vmem:[%s2438_s0 + $0x64] sm:$0xf] }
   0xa   :  { %v1299_v26 = vld [vmem:[%s2438_s0 + $0x1a0] sm:$0xf]  ;;  %v1583_v27 = vld [vmem:[%s2438_s0 + $0x1ac] sm:$0xf0]  ;;  %v1172_v29 = vor.u32 %v1551_v24, %v1171_v23  ;;  %724 = vmatpush.bf16.msra.mxu2 %v1444_v21  ;;  %v1141_v18 = vld [vmem:[%s2438_s0 + $0x70] sm:$0xf0] }
   0xb   :  { %v1427_v28 = vld [vmem:[%s2438_s0 + $0x2a0] sm:$0xf]  ;;  %v1615_v30 = vld [vmem:[%s2438_s0 + $0x2ac] sm:$0xf0]  ;;  %v1300_v33 = vor.u32 %v1583_v27, %v1299_v26  ;;  %742 = vmatpush.bf16.msra.mxu3 %v1492_v25  ;;  %v1461_v35 = vld [vmem:[%s2438_s0 + $0x2f0] sm:$0xf0] }
   0xc   :  { %v1475_v31 = vld [vmem:[%s2438_s0 + $0x300] sm:$0xf]  ;;  %v1627_v32 = vld [vmem:[%s2438_s0 + $0x30c] sm:$0xf0]  ;;  %v1428_v34 = vor.u32 %v1615_v30, %v1427_v28  ;;  %699 = vmatpush.bf16.msra.mxu0 %v1172_v29  ;;  %v25_v28 = vld [vmem:[%s2439_s1 + $0x8] sm:$0xff] }
   0xd   :  { %v1155_v37 = vld [vmem:[%s2438_s0 + $0x80] sm:$0xf]  ;;  %v1476_v38 = vor.u32 %v1627_v32, %v1475_v31  ;;  %v1547_v39 = vld [vmem:[%s2438_s0 + $0x8c] sm:$0xf0]  ;;  %712 = vmatpush.bf16.msra.mxu1 %v1300_v33  ;;  %v1537_v29 = vld [vmem:[%s2438_s0 + $0x44] sm:$0xf]  ;;  %v145_v32 = vunpack.c.h.b16 %v25_v28  ;;  %v1144_v33 = vor.u32 %v1541_v17, %v1141_v18 }
   0xe   :  { %v1283_v40 = vld [vmem:[%s2438_s0 + $0x180] sm:$0xf]  ;;  %v1579_v41 = vld [vmem:[%s2438_s0 + $0x18c] sm:$0xf0]  ;;  %v1156_v45 = vor.u32 %v1547_v39, %v1155_v37  ;;  %725 = vmatpush.bf16.msra.mxu2 %v1428_v34  ;;  %v1589_v30 = vld [vmem:[%s2438_s0 + $0x1e4] sm:$0xf] }
   0xf   :  { %v1411_v43 = vld [vmem:[%s2438_s0 + $0x280] sm:$0xf]  ;;  %v1611_v44 = vld [vmem:[%s2438_s0 + $0x28c] sm:$0xf0]  ;;  %v1284_v48 = vor.u32 %v1579_v41, %v1283_v40  ;;  %743 = vmatpush.bf16.msra.mxu3 %v1476_v38  ;;  %v1333_v31 = vld [vmem:[%s2438_s0 + $0x1f0] sm:$0xf0]  ;;  %v144_v40 = vunpack.c.l.b16 %v25_v28  ;;  %v1918_v41 = vpack.c.b16 %v145_v32, %v145_v32 }
  0x10   :  { %v1412_v49 = vor.u32 %v1611_v44, %v1411_v43  ;;  %v1139_v50 = vld [vmem:[%s2438_s0 + $0x60] sm:$0xf]  ;;  %v1543_v51 = vld [vmem:[%s2438_s0 + $0x6c] sm:$0xf0]  ;;  %700 = vmatpush.bf16.msra.mxu0 %v1156_v45  ;;  %v1621_v34 = vld [vmem:[%s2438_s0 + $0x2e4] sm:$0xf]  ;;  %v1336_v44 = vor.u32 %v1589_v30, %v1333_v31 }
  0x11   :  { %v1267_v52 = vld [vmem:[%s2438_s0 + $0x160] sm:$0xf]  ;;  %v1575_v53 = vld [vmem:[%s2438_s0 + $0x16c] sm:$0xf0]  ;;  %v1140_v57 = vor.u32 %v1543_v51, %v1139_v50  ;;  %713 = vmatpush.bf16.msra.mxu1 %v1284_v48  ;;  %v1125_v37 = vld [vmem:[%s2438_s0 + $0x50] sm:$0xf0]  ;;  %v1464_v45 = vor.u32 %v1621_v34, %v1461_v35 }
  0x12   :  { %v1395_v54 = vld [vmem:[%s2438_s0 + $0x260] sm:$0xf]  ;;  %v1607_v55 = vld [vmem:[%s2438_s0 + $0x26c] sm:$0xf0]  ;;  %726 = vmatpush.bf16.msra.mxu2 %v1412_v49  ;;  %v1268_v60 = vor.u32 %v1575_v53, %v1267_v52  ;;  %v1633_v38 = vld [vmem:[%s2438_s0 + $0x344] sm:$0xf]  ;;  %1521 = vmatmul.msk.bf16.vlgmr.msra.gmra.mxu3 %vm693_vm0, %v1918_v41  ;;  %v1128_v49 = vor.u32 %v1537_v29, %v1125_v37 }
  0x13   :  { %749 = vmatpush.bf16.msrb.mxu3 %v1208_v42  ;;  %v1396_v61 = vor.u32 %v1607_v55, %v1395_v54  ;;  %v1123_v62 = vld [vmem:[%s2438_s0 + $0x40] sm:$0xf]  ;;  %v1539_v63 = vld [vmem:[%s2438_s0 + $0x4c] sm:$0xf0]  ;;  %v1509_v39 = vld [vmem:[%s2438_s0 + $0x350] sm:$0xf0]  ;;  %v1940_v54 = vpack.c.b16 %v144_v40, %v144_v40 }
  0x14   :  { %v1251_v0 = vld [vmem:[%s2438_s0 + $0x140] sm:$0xf]  ;;  %v1571_v1 = vld [vmem:[%s2438_s0 + $0x14c] sm:$0xf0]  ;;  %701 = vmatpush.bf16.msra.mxu0 %v1140_v57  ;;  %v1124_v5 = vor.u32 %v1539_v63, %v1123_v62  ;;  %v1533_v46 = vld [vmem:[%s2438_s0 + $0x24] sm:$0xf]  ;;  %v1512_v50 = vor.u32 %v1633_v38, %v1509_v39 }
  0x15   :  { %v1379_v2 = vld [vmem:[%s2438_s0 + $0x240] sm:$0xf]  ;;  %v1603_v3 = vld [vmem:[%s2438_s0 + $0x24c] sm:$0xf0]  ;;  %714 = vmatpush.bf16.msra.mxu1 %v1268_v60  ;;  %v1252_v8 = vor.u32 %v1571_v1, %v1251_v0  ;;  %v1109_v47 = vld [vmem:[%s2438_s0 + $0x30] sm:$0xf0] }
  0x16   :  { %727 = vmatpush.bf16.msra.mxu2 %v1396_v61  ;;  %v1380_v9 = vor.u32 %v1603_v3, %v1379_v2  ;;  %v1107_v10 = vld [vmem:[%s2438_s0 + $0x20] sm:$0xf]  ;;  %v1535_v11 = vld [vmem:[%s2438_s0 + $0x2c] sm:$0xf0]  ;;  %v1585_v48 = vld [vmem:[%s2438_s0 + $0x1c4] sm:$0xf]  ;;  %v1112_v60 = vor.u32 %v1533_v46, %v1109_v47 }
  0x17   :  { %750 = vmatpush.bf16.msrb.mxu3 %v1192_v56  ;;  %v1235_v12 = vld [vmem:[%s2438_s0 + $0x120] sm:$0xf]  ;;  %v1567_v13 = vld [vmem:[%s2438_s0 + $0x12c] sm:$0xf0]  ;;  %v1108_v20 = vor.u32 %v1535_v11, %v1107_v10  ;;  %v1317_v51 = vld [vmem:[%s2438_s0 + $0x1d0] sm:$0xf0] }
  0x18   :  { %v1363_v14 = vld [vmem:[%s2438_s0 + $0x220] sm:$0xf]  ;;  %v1599_v15 = vld [vmem:[%s2438_s0 + $0x22c] sm:$0xf0]  ;;  %702 = vmatpush.bf16.msra.mxu0 %v1124_v5  ;;  %v1236_v24 = vor.u32 %v1567_v13, %v1235_v12  ;;  %v1617_v52 = vld [vmem:[%s2438_s0 + $0x2c4] sm:$0xf]  ;;  %v1320_v61 = vor.u32 %v1585_v48, %v1317_v51 }
  0x19   :  { %v1091_v19 = vld [vmem:[%s2438_s0] sm:$0xf]  ;;  %v1531_v21 = vld [vmem:[%s2438_s0 + $0xc] sm:$0xf0]  ;;  %715 = vmatpush.bf16.msra.mxu1 %v1252_v8  ;;  %v1364_v25 = vor.u32 %v1599_v15, %v1363_v14  ;;  %v1445_v53 = vld [vmem:[%s2438_s0 + $0x2d0] sm:$0xf0] }
  0x1a   :  { %v1219_v22 = vld [vmem:[%s2438_s0 + $0x100] sm:$0xf]  ;;  %v1563_v23 = vld [vmem:[%s2438_s0 + $0x10c] sm:$0xf0]  ;;  %728 = vmatpush.bf16.msra.mxu2 %v1380_v9  ;;  %v1092_v36 = vor.u32 %v1531_v21, %v1091_v19  ;;  %v1629_v55 = vld [vmem:[%s2438_s0 + $0x324] sm:$0xf]  ;;  %v1448_v62 = vor.u32 %v1617_v52, %v1445_v53 }
  0x1b   :  { %751 = vmatpush.bf16.msrb.mxu3 %v1176_v4  ;;  %v1347_v26 = vld [vmem:[%s2438_s0 + $0x200] sm:$0xf]  ;;  %v1595_v27 = vld [vmem:[%s2438_s0 + $0x20c] sm:$0xf0]  ;;  %v1220_v42 = vor.u32 %v1563_v23, %v1219_v22  ;;  %v1493_v56 = vld [vmem:[%s2438_s0 + $0x330] sm:$0xf0] }
  0x1c   :  { %703 = vmatpush.bf16.msra.mxu0 %v1108_v20  ;;  %v1348_v43 = vor.u32 %v1595_v27, %v1347_v26  ;;  %v24_v57 = vld [vmem:[%s2439_s1] sm:$0xff]  ;;  %v1093_v0 = vld [vmem:[%s2438_s0 + $0x10] sm:$0xf0]  ;;  %v1496_v2 = vor.u32 %v1629_v55, %v1493_v56  ;;  %v1211_v10 = vld [vmem:[%s2438_s0 + $0xe8] sm:$0xf]  ;;  %v1663_v11 = vmov 0  }
  0x1d   :  { %716 = vmatpush.bf16.msra.mxu1 %v1236_v24  ;;  %v142_v58 = vunpack.c.l.b16 %v24_v57  ;;  %v143_v59 = vunpack.c.h.b16 %v24_v57  ;;  %v1529_v63 = vld [vmem:[%s2438_s0 + $0x4] sm:$0xf]  ;;  %v1301_v3 = vld [vmem:[%s2438_s0 + $0x1b0] sm:$0xf0]  ;;  %1638 = vset.pattern.permute.xlu0 %v1663_v11  ;;  %v1560_v12 = vld [vmem:[%s2438_s0 + $0xf4] sm:$0xf0] }
  0x1e   :  { %729 = vmatpush.bf16.msra.mxu2 %v1364_v25  ;;  %v1581_v1 = vld [vmem:[%s2438_s0 + $0x1a4] sm:$0xf]  ;;  %v1429_v5 = vld [vmem:[%s2438_s0 + $0x2b0] sm:$0xf0]  ;;  %v1339_v13 = vld [vmem:[%s2438_s0 + $0x1e8] sm:$0xf]  ;;  %v1096_v19 = vor.u32 %v1529_v63, %v1093_v0  ;;  %v1212_v24 = vor.u32 %v1560_v12, %v1211_v10 }
  0x1f   :  { %752 = vmatpush.bf16.msrb.mxu3 %v1160_v16  ;;  %v1613_v4 = vld [vmem:[%s2438_s0 + $0x2a4] sm:$0xf]  ;;  %v1969_v6 = vpack.c.b16 %v142_v58, %v142_v58  ;;  %v1971_v7 = vpack.c.b16 %v143_v59, %v143_v59  ;;  %v1477_v9 = vld [vmem:[%s2438_s0 + $0x310] sm:$0xf0]  ;;  %v1592_v14 = vld [vmem:[%s2438_s0 + $0x1f4] sm:$0xf0]  ;;  %v1304_v15 = vor.u32 %v1581_v1, %v1301_v3 }
  0x20   :  { %704 = vmatpush.bf16.msra.mxu0 %v1092_v36  ;;  %v1625_v8 = vld [vmem:[%s2438_s0 + $0x304] sm:$0xf]  ;;  %v1432_v16 = vor.u32 %v1613_v4, %v1429_v5  ;;  %v1285_v18 = vld [vmem:[%s2438_s0 + $0x190] sm:$0xf0]  ;;  %v1340_v25 = vor.u32 %v1592_v14, %v1339_v13  ;;  %v1195_v26 = vld [vmem:[%s2438_s0 + $0xc8] sm:$0xf] }
  0x21   :  { %717 = vmatpush.bf16.msra.mxu1 %v1220_v42  ;;  %v1577_v17 = vld [vmem:[%s2438_s0 + $0x184] sm:$0xf]  ;;  %v1480_v20 = vor.u32 %v1625_v8, %v1477_v9  ;;  %v1413_v22 = vld [vmem:[%s2438_s0 + $0x290] sm:$0xf0]  ;;  %v1556_v27 = vld [vmem:[%s2438_s0 + $0xd4] sm:$0xf0] }
  0x22   :  { %730 = vmatpush.bf16.msra.mxu2 %v1348_v43  ;;  %v1609_v21 = vld [vmem:[%s2438_s0 + $0x284] sm:$0xf]  ;;  %v1323_v28 = vld [vmem:[%s2438_s0 + $0x1c8] sm:$0xf]  ;;  %v1588_v29 = vld [vmem:[%s2438_s0 + $0x1d4] sm:$0xf0]  ;;  %v1288_v30 = vor.u32 %v1577_v17, %v1285_v18  ;;  %v1196_v36 = vor.u32 %v1556_v27, %v1195_v26 }
  0x23   :  { %753 = vmatpush.bf16.msrb.mxu3 %v1144_v33  ;;  %705 = vmatmul.bf16.vlgmr.msra.gmra.mxu0 %v1969_v6  ;;  %v134_v23 = vld [vmem:[%s2440_s2] sm:$0xff]  ;;  %v1416_v31 = vor.u32 %v1609_v21, %v1413_v22  ;;  %v1269_v33 = vld [vmem:[%s2438_s0 + $0x170] sm:$0xf0]  ;;  %v1324_v37 = vor.u32 %v1588_v29, %v1323_v28  ;;  %v1179_v38 = vld [vmem:[%s2438_s0 + $0xa8] sm:$0xf] }
  0x24   :  { %762 = vmatpush.bf16.msrb.mxu0 %v1336_v44  ;;  %718 = vmatmul.bf16.vlgmr.msra.gmra.mxu1 %v1971_v7  ;;  %v1573_v32 = vld [vmem:[%s2438_s0 + $0x164] sm:$0xf]  ;;  %v1397_v35 = vld [vmem:[%s2438_s0 + $0x270] sm:$0xf0]  ;;  %v1552_v39 = vld [vmem:[%s2438_s0 + $0xb4] sm:$0xf0] }
  0x25   :  { %775 = vmatpush.bf16.msrb.mxu1 %v1464_v45  ;;  %731 = vmatmul.bf16.vlgmr.msra.gmra.mxu2 %v1940_v54  ;;  %v1605_v34 = vld [vmem:[%s2438_s0 + $0x264] sm:$0xf]  ;;  %v1307_v40 = vld [vmem:[%s2438_s0 + $0x1a8] sm:$0xf]  ;;  %v1584_v42 = vld [vmem:[%s2438_s0 + $0x1b4] sm:$0xf0]  ;;  %v1272_v43 = vor.u32 %v1573_v32, %v1269_v33 }
  0x26   :  { %793 = vmatpush.bf16.msrb.mxu2 %v1512_v50  ;;  %137 = vperm.xlu0 %1638, %v134_v23   ;;  %v1400_v44 = vor.u32 %v1605_v34, %v1397_v35  ;;  %v1569_v45 = vld [vmem:[%s2438_s0 + $0x144] sm:$0xf]  ;;  %v1253_v46 = vld [vmem:[%s2438_s0 + $0x150] sm:$0xf0]  ;;  %v1308_v50 = vor.u32 %v1584_v42, %v1307_v40  ;;  %v1163_v51 = vld [vmem:[%s2438_s0 + $0x88] sm:$0xf] }
  0x27   :  { %754 = vmatpush.bf16.msrb.mxu3 %v1128_v49  ;;  %v1601_v47 = vld [vmem:[%s2438_s0 + $0x244] sm:$0xf]  ;;  %v1381_v48 = vld [vmem:[%s2438_s0 + $0x250] sm:$0xf0]  ;;  %v1180_v49 = vor.u32 %v1552_v39, %v1179_v38  ;;  %v1548_v52 = vld [vmem:[%s2438_s0 + $0x94] sm:$0xf0]  ;;  %v1256_v56 = vor.u32 %v1569_v45, %v1253_v46 }
  0x28   :  { %763 = vmatpush.bf16.msrb.mxu0 %v1320_v61  ;;  %v1291_v53 = vld [vmem:[%s2438_s0 + $0x188] sm:$0xf]  ;;  %v1580_v55 = vld [vmem:[%s2438_s0 + $0x194] sm:$0xf0]  ;;  %v1384_v57 = vor.u32 %v1601_v47, %v1381_v48  ;;  %v1565_v58 = vld [vmem:[%s2438_s0 + $0x124] sm:$0xf] }
  0x29   :  { %776 = vmatpush.bf16.msrb.mxu1 %v1448_v62  ;;  %v1237_v59 = vld [vmem:[%s2438_s0 + $0x130] sm:$0xf0]  ;;  %v1164_v62 = vor.u32 %v1548_v52, %v1163_v51  ;;  %v1292_v63 = vor.u32 %v1580_v55, %v1291_v53  ;;  %v1147_v0 = vld [vmem:[%s2438_s0 + $0x68] sm:$0xf]  ;;  %v1544_v1 = vld [vmem:[%s2438_s0 + $0x74] sm:$0xf0] }
  0x2a   :  { %794 = vmatpush.bf16.msrb.mxu2 %v1496_v2  ;;  %v1365_v61 = vld [vmem:[%s2438_s0 + $0x230] sm:$0xf0]  ;;  %v1275_v2 = vld [vmem:[%s2438_s0 + $0x168] sm:$0xf]  ;;  %v1576_v3 = vld [vmem:[%s2438_s0 + $0x174] sm:$0xf0]  ;;  %v1240_v4 = vor.u32 %v1565_v58, %v1237_v59  ;;  %v1148_v14 = vor.u32 %v1544_v1, %v1147_v0 }
  0x2b   :  { %755 = vmatpush.bf16.msrb.mxu3 %v1112_v60  ;;  %v1597_v60 = vld [vmem:[%s2438_s0 + $0x224] sm:$0xf]  ;;  %v1221_v9 = vld [vmem:[%s2438_s0 + $0x110] sm:$0xf0]  ;;  %v1131_v12 = vld [vmem:[%s2438_s0 + $0x48] sm:$0xf] }
  0x2c   :  { %764 = vmatpush.bf16.msrb.mxu0 %v1304_v15  ;;  %v1368_v5 = vor.u32 %v1597_v60, %v1365_v61  ;;  %v1561_v8 = vld [vmem:[%s2438_s0 + $0x104] sm:$0xf]  ;;  %v1349_v11 = vld [vmem:[%s2438_s0 + $0x210] sm:$0xf0]  ;;  %v1467_v13 = vld [vmem:[%s2438_s0 + $0x2e8] sm:$0xf]  ;;  %v1276_v15 = vor.u32 %v1576_v3, %v1275_v2 }
  0x2d   :  { %777 = vmatpush.bf16.msrb.mxu1 %v1432_v16  ;;  %v1593_v10 = vld [vmem:[%s2438_s0 + $0x204] sm:$0xf]  ;;  %v1624_v16 = vld [vmem:[%s2438_s0 + $0x2f4] sm:$0xf0]  ;;  %v1515_v17 = vld [vmem:[%s2438_s0 + $0x348] sm:$0xf]  ;;  %v1224_v22 = vor.u32 %v1561_v8, %v1221_v9 }
  0x2e   :  { %795 = vmatpush.bf16.msrb.mxu2 %v1480_v20  ;;  %v1636_v18 = vld [vmem:[%s2438_s0 + $0x354] sm:$0xf0]  ;;  %v1259_v20 = vld [vmem:[%s2438_s0 + $0x148] sm:$0xf]  ;;  %v1352_v23 = vor.u32 %v1593_v10, %v1349_v11  ;;  %v1590_v51 = vld [vmem:[%s2438_s0 + $0x1ec] sm:$0xf] }
  0x2f   :  { %756 = vmatpush.bf16.msrb.mxu3 %v1096_v19  ;;  %v1540_v19 = vld [vmem:[%s2438_s0 + $0x54] sm:$0xf0]  ;;  %v1115_v26 = vld [vmem:[%s2438_s0 + $0x28] sm:$0xf]  ;;  %v1341_v52 = vld [vmem:[%s2438_s0 + $0x1f8] sm:$0xf0] }
  0x30   :  { %765 = vmatpush.bf16.msrb.mxu0 %v1288_v30  ;;  %v1572_v21 = vld [vmem:[%s2438_s0 + $0x154] sm:$0xf0]  ;;  %v1451_v27 = vld [vmem:[%s2438_s0 + $0x2c8] sm:$0xf]  ;;  %v1132_v28 = vor.u32 %v1540_v19, %v1131_v12  ;;  %v1554_v0 = vld [vmem:[%s2438_s0 + $0xcc] sm:$0xf] }
  0x31   :  { %778 = vmatpush.bf16.msrb.mxu1 %v1416_v31  ;;  %v1260_v29 = vor.u32 %v1572_v21, %v1259_v20  ;;  %v1620_v30 = vld [vmem:[%s2438_s0 + $0x2d4] sm:$0xf0]  ;;  %v1499_v31 = vld [vmem:[%s2438_s0 + $0x328] sm:$0xf]  ;;  %v1197_v2 = vld [vmem:[%s2438_s0 + $0xd8] sm:$0xf0] }
  0x32   :  { %814 = vmatpush.bf16.msra.mxu2 %v1340_v25  ;;  %757 = vmatmul.bf16.vlgmr.msrb.gmra.mxu3 %v1969_v6  ;;  %v1516_v25 = vor.u32 %v1636_v18, %v1515_v17  ;;  %v1632_v32 = vld [vmem:[%s2438_s0 + $0x334] sm:$0xf0]  ;;  %v1243_v34 = vld [vmem:[%s2438_s0 + $0x128] sm:$0xf]  ;;  %v1586_v3 = vld [vmem:[%s2438_s0 + $0x1cc] sm:$0xf]  ;;  %v1200_v12 = vor.u32 %v1554_v0, %v1197_v2 }
  0x33   :  { %801 = vmatpush.bf16.msra.mxu3 %v1212_v24  ;;  %v1468_v24 = vor.u32 %v1624_v16, %v1467_v13  ;;  %v1536_v33 = vld [vmem:[%s2438_s0 + $0x34] sm:$0xf0]  ;;  %v1099_v38 = vld [vmem:[%s2438_s0 + $0x8] sm:$0xf]  ;;  %v1618_v8 = vld [vmem:[%s2438_s0 + $0x2cc] sm:$0xf] }
  0x34   :  { %766 = vmatpush.bf16.msrb.mxu0 %v1272_v43  ;;  %v1568_v35 = vld [vmem:[%s2438_s0 + $0x134] sm:$0xf0]  ;;  %v1435_v40 = vld [vmem:[%s2438_s0 + $0x2a8] sm:$0xf]  ;;  %v1116_v42 = vor.u32 %v1536_v33, %v1115_v26  ;;  %v1453_v9 = vld [vmem:[%s2438_s0 + $0x2d8] sm:$0xf0] }
  0x35   :  { %779 = vmatpush.bf16.msrb.mxu1 %v1400_v44  ;;  %1522 = vmatmul.msk.bf16.vlgmr.msrb.gmra.mxu2 %vm693_vm0, %v1918_v41  ;;  %v1532_v39 = vld [vmem:[%s2438_s0 + $0x14] sm:$0xf0]  ;;  %v1244_v43 = vor.u32 %v1568_v35, %v1243_v34  ;;  %v1483_v45 = vld [vmem:[%s2438_s0 + $0x308] sm:$0xf]  ;;  %v1181_v16 = vld [vmem:[%s2438_s0 + $0xb8] sm:$0xf0] }
  0x36   :  { %815 = vmatpush.bf16.msra.mxu2 %v1324_v37  ;;  %v1500_v37 = vor.u32 %v1632_v32, %v1499_v31  ;;  %v1616_v44 = vld [vmem:[%s2438_s0 + $0x2b4] sm:$0xf0]  ;;  %v1227_v47 = vld [vmem:[%s2438_s0 + $0x108] sm:$0xf]  ;;  %v1100_v58 = vor.u32 %v1532_v39, %v1099_v38  ;;  %v1582_v17 = vld [vmem:[%s2438_s0 + $0x1ac] sm:$0xf] }
  0x37   :  { %802 = vmatpush.bf16.msra.mxu3 %v1196_v36  ;;  %v1452_v36 = vor.u32 %v1620_v30, %v1451_v27  ;;  %v1628_v46 = vld [vmem:[%s2438_s0 + $0x314] sm:$0xf0]  ;;  %v1436_v53 = vor.u32 %v1616_v44, %v1435_v40  ;;  %v1419_v60 = vld [vmem:[%s2438_s0 + $0x288] sm:$0xf]  ;;  %v1309_v18 = vld [vmem:[%s2438_s0 + $0x1b8] sm:$0xf0] }
  0x38   :  { %767 = vmatpush.bf16.msrb.mxu0 %v1256_v56  ;;  %v1564_v48 = vld [vmem:[%s2438_s0 + $0x114] sm:$0xf0]  ;;  %v1484_v55 = vor.u32 %v1628_v46, %v1483_v45  ;;  %v1622_v56 = vld [vmem:[%s2438_s0 + $0x2ec] sm:$0xf]  ;;  %v1403_v10 = vld [vmem:[%s2438_s0 + $0x268] sm:$0xf] }
  0x39   :  { %780 = vmatpush.bf16.msrb.mxu1 %v1384_v57  ;;  %v1469_v57 = vld [vmem:[%s2438_s0 + $0x2f8] sm:$0xf0]  ;;  %v1228_v59 = vor.u32 %v1564_v48, %v1227_v47  ;;  %v1612_v61 = vld [vmem:[%s2438_s0 + $0x294] sm:$0xf0]  ;;  %v1614_v20 = vld [vmem:[%s2438_s0 + $0x2ac] sm:$0xf] }
  0x3a   :  { %816 = vmatpush.bf16.msra.mxu2 %v1308_v50  ;;  %v1213_v50 = vld [vmem:[%s2438_s0 + $0xf8] sm:$0xf0]  ;;  %v1472_v1 = vor.u32 %v1622_v56, %v1469_v57  ;;  %v1608_v11 = vld [vmem:[%s2438_s0 + $0x274] sm:$0xf0]  ;;  %v1546_v26 = vld [vmem:[%s2438_s0 + $0x8c] sm:$0xf] }
  0x3b   :  { %803 = vmatpush.bf16.msra.mxu3 %v1180_v49  ;;  %v1558_v49 = vld [vmem:[%s2438_s0 + $0xec] sm:$0xf]  ;;  %v1404_v19 = vor.u32 %v1608_v11, %v1403_v10  ;;  %v1437_v21 = vld [vmem:[%s2438_s0 + $0x2b8] sm:$0xf0]  ;;  %v1371_v34 = vld [vmem:[%s2438_s0 + $0x228] sm:$0xf] }
  0x3c   :  { %768 = vmatpush.bf16.msrb.mxu0 %v1240_v4  ;;  %v1325_v4 = vld [vmem:[%s2438_s0 + $0x1d8] sm:$0xf0]  ;;  %v1440_v27 = vor.u32 %v1614_v20, %v1437_v21  ;;  %v1610_v32 = vld [vmem:[%s2438_s0 + $0x28c] sm:$0xf]  ;;  %v1600_v35 = vld [vmem:[%s2438_s0 + $0x234] sm:$0xf0] }
  0x3d   :  { %781 = vmatpush.bf16.msrb.mxu1 %v1368_v5  ;;  %v1420_v5 = vor.u32 %v1612_v61, %v1419_v60  ;;  %v1328_v13 = vor.u32 %v1586_v3, %v1325_v4  ;;  %v1293_v30 = vld [vmem:[%s2438_s0 + $0x198] sm:$0xf0]  ;;  %v1542_v38 = vld [vmem:[%s2438_s0 + $0x6c] sm:$0xf]  ;;  %v1372_v44 = vor.u32 %v1600_v35, %v1371_v34  ;;  %v1355_v47 = vld [vmem:[%s2438_s0 + $0x208] sm:$0xf] }
  0x3e   :  { %817 = vmatpush.bf16.msra.mxu2 %v1292_v63  ;;  %v1344_v63 = vor.u32 %v1590_v51, %v1341_v52  ;;  %v1421_v33 = vld [vmem:[%s2438_s0 + $0x298] sm:$0xf0]  ;;  %v1606_v45 = vld [vmem:[%s2438_s0 + $0x26c] sm:$0xf]  ;;  %v1596_v48 = vld [vmem:[%s2438_s0 + $0x214] sm:$0xf0] }
  0x3f   :  { %804 = vmatpush.bf16.msra.mxu3 %v1164_v62  ;;  %v1216_v62 = vor.u32 %v1558_v49, %v1213_v50  ;;  %v1424_v39 = vor.u32 %v1610_v32, %v1421_v33  ;;  %v1149_v40 = vld [vmem:[%s2438_s0 + $0x78] sm:$0xf0]  ;;  %v1538_v51 = vld [vmem:[%s2438_s0 + $0x4c] sm:$0xf]  ;;  %v906_v0 = vld [vmem:[%s2441_s3] sm:$0xff] }
  0x40   :  { %769 = vmatpush.bf16.msrb.mxu0 %v1224_v22  ;;  %v1387_v22 = vld [vmem:[%s2438_s0 + $0x248] sm:$0xf]  ;;  %v1405_v46 = vld [vmem:[%s2438_s0 + $0x278] sm:$0xf0]  ;;  %v1152_v49 = vor.u32 %v1542_v38, %v1149_v40  ;;  %v1634_v52 = vld [vmem:[%s2438_s0 + $0x34c] sm:$0xf] }
  0x41   :  { %782 = vmatpush.bf16.msrb.mxu1 %v1352_v23  ;;  %v1604_v23 = vld [vmem:[%s2438_s0 + $0x254] sm:$0xf0]  ;;  %v1133_v56 = vld [vmem:[%s2438_s0 + $0x58] sm:$0xf0]  ;;  %v1570_v57 = vld [vmem:[%s2438_s0 + $0x14c] sm:$0xf] }
  0x42   :  { %818 = vmatpush.bf16.msra.mxu2 %v1276_v15  ;;  %v1456_v15 = vor.u32 %v1618_v8, %v1453_v9  ;;  %v1388_v31 = vor.u32 %v1604_v23, %v1387_v22  ;;  %v1602_v60 = vld [vmem:[%s2438_s0 + $0x24c] sm:$0xf]  ;;  %v1389_v61 = vld [vmem:[%s2438_s0 + $0x258] sm:$0xf0] }
  0x43   :  { %805 = vmatpush.bf16.msra.mxu3 %v1148_v14  ;;  %770 = vmatmul.bf16.vlgmr.msrb.gmra.mxu0 %v1971_v7  ;;  %v1550_v14 = vld [vmem:[%s2438_s0 + $0xac] sm:$0xf]  ;;  %v1501_v4 = vld [vmem:[%s2438_s0 + $0x338] sm:$0xf0]  ;;  %v1392_v8 = vor.u32 %v1602_v60, %v1389_v61 }
  0x44   :  { %827 = vmatpush.bf16.msra.mxu0 %v1468_v24  ;;  %783 = vmatmul.bf16.vlgmr.msrb.gmra.mxu1 %v1940_v54  ;;  %v1184_v24 = vor.u32 %v1550_v14, %v1181_v16  ;;  %v1630_v3 = vld [vmem:[%s2438_s0 + $0x32c] sm:$0xf]  ;;  %v1117_v9 = vld [vmem:[%s2438_s0 + $0x38] sm:$0xf0]  ;;  %v910_v14 = vunpack.c.l.b16 %v906_v0 }
  0x45   :  { %845 = vmatpush.bf16.msra.mxu1 %v1516_v25  ;;  %v1312_v25 = vor.u32 %v1582_v17, %v1309_v18  ;;  %v1566_v10 = vld [vmem:[%s2438_s0 + $0x12c] sm:$0xf]  ;;  %v1245_v11 = vld [vmem:[%s2438_s0 + $0x138] sm:$0xf0]  ;;  %v1504_v16 = vor.u32 %v1630_v3, %v1501_v4  ;;  %v911_v18 = vunpack.c.h.b16 %v906_v0 }
  0x46   :  { %819 = vmatpush.bf16.msra.mxu2 %v1260_v29  ;;  %v1578_v29 = vld [vmem:[%s2438_s0 + $0x18c] sm:$0xf]  ;;  %v1248_v20 = vor.u32 %v1566_v10, %v1245_v11  ;;  %v1101_v21 = vld [vmem:[%s2438_s0 + $0x18] sm:$0xf0] }
  0x47   :  { %806 = vmatpush.bf16.msra.mxu3 %v1132_v28  ;;  %v1165_v28 = vld [vmem:[%s2438_s0 + $0x98] sm:$0xf0]  ;;  %v1626_v22 = vld [vmem:[%s2438_s0 + $0x30c] sm:$0xf]  ;;  %v915_v34 = vpack.c.b16 %v911_v18, %v911_v18 }
  0x48   :  { %828 = vmatpush.bf16.msra.mxu0 %v1452_v36  ;;  %v1168_v36 = vor.u32 %v1546_v26, %v1165_v28  ;;  %v1485_v23 = vld [vmem:[%s2438_s0 + $0x318] sm:$0xf0]  ;;  %v991_v28 = vld [vmem:[%s2442_s5] sm:$0xff] }
  0x49   :  { %846 = vmatpush.bf16.msra.mxu1 %v1500_v37  ;;  %v1296_v37 = vor.u32 %v1578_v29, %v1293_v30  ;;  %v1229_v26 = vld [vmem:[%s2438_s0 + $0x118] sm:$0xf0]  ;;  %v1594_v29 = vld [vmem:[%s2438_s0 + $0x20c] sm:$0xf]  ;;  %994 = vperm.xlu0 %1638, %v991_v28   ;;  %v1488_v33 = vor.u32 %v1626_v22, %v1485_v23 }
  0x4a   :  { %820 = vmatpush.bf16.msra.mxu2 %v1244_v43  ;;  %v1277_v43 = vld [vmem:[%s2438_s0 + $0x178] sm:$0xf0] }
  0x4b   :  { %807 = vmatpush.bf16.msra.mxu3 %v1116_v42  ;;  %v1574_v42 = vld [vmem:[%s2438_s0 + $0x16c] sm:$0xf]  ;;  %v1357_v30 = vld [vmem:[%s2438_s0 + $0x218] sm:$0xf0] }
  0x4c   :  { %829 = vmatpush.bf16.msra.mxu0 %v1436_v53  ;;  %v1280_v50 = vor.u32 %v1574_v42, %v1277_v43  ;;  %v1517_v53 = vld [vmem:[%s2438_s0 + $0x358] sm:$0xf0]  ;;  %v927_v42 = vsel %vm922_vm1, %v915_v34, 0 }
  0x4d   :  { %847 = vmatpush.bf16.msra.mxu1 %v1484_v55  ;;  %v1408_v55 = vor.u32 %v1606_v45, %v1405_v46 }
  0x4e   :  { %821 = vmatpush.bf16.msra.mxu2 %v1228_v59  ;;  %v1356_v59 = vor.u32 %v1596_v48, %v1355_v47 }
  0x4f   :  { %808 = vmatpush.bf16.msra.mxu3 %v1100_v58  ;;  %v1261_v58 = vld [vmem:[%s2438_s0 + $0x158] sm:$0xf0] }
  0x50   :  { %830 = vmatpush.bf16.msra.mxu0 %v1420_v5  ;;  %v1264_v2 = vor.u32 %v1570_v57, %v1261_v58  ;;  %v907_v5 = vld [vmem:[%s2441_s3 + $0x8] sm:$0xff] }
  0x51   :  { %866 = vmatpush.bf16.msrb.mxu1 %v1344_v63  ;;  %822 = vmatmul.bf16.vlgmr.msra.gmra.mxu2 %v1971_v7  ;;  %v1534_v63 = vld [vmem:[%s2438_s0 + $0x2c] sm:$0xf]  ;;  %v913_v17 = vunpack.c.h.b16 %v907_v5 }
  0x52   :  { %879 = vmatpush.bf16.msrb.mxu2 %v1472_v1  ;;  %809 = vmatmul.bf16.vlgmr.msra.gmra.mxu3 %v1969_v6  ;;  %v1136_v1 = vor.u32 %v1538_v51, %v1133_v56 }
  0x53   :  { %853 = vmatpush.bf16.msrb.mxu3 %v1216_v62  ;;  %v1520_v62 = vor.u32 %v1634_v52, %v1517_v53  ;;  %v917_v32 = vpack.c.b16 %v913_v17, %v913_v17 }
  0x54   :  { %831 = vmatpush.bf16.msra.mxu0 %v1404_v19  ;;  %1523 = vmatmul.msk.bf16.vlgmr.msra.gmra.mxu1 %vm693_vm0, %v1918_v41  ;;  %v1120_v19 = vor.u32 %v1534_v63, %v1117_v9 }
  0x55   :  { %867 = vmatpush.bf16.msrb.mxu1 %v1328_v13  ;;  %v1373_v13 = vld [vmem:[%s2438_s0 + $0x238] sm:$0xf0]  ;;  %v933_v40 = vsel %vm922_vm1, %v917_v32, 0 }
  0x56   :  { %880 = vmatpush.bf16.msrb.mxu2 %v1456_v15  ;;  %v1530_v15 = vld [vmem:[%s2438_s0 + $0xc] sm:$0xf] }
  0x57   :  { %854 = vmatpush.bf16.msrb.mxu3 %v1200_v12  ;;  %v1598_v12 = vld [vmem:[%s2438_s0 + $0x22c] sm:$0xf]  ;;  %v1104_v35 = vor.u32 %v1530_v15, %v1101_v21 }
  0x58   :  { %832 = vmatpush.bf16.msra.mxu0 %v1388_v31  ;;  %v914_v31 = vpack.c.b16 %v910_v14, %v910_v14 }
  0x59   :  { %868 = vmatpush.bf16.msrb.mxu1 %v1312_v25  ;;  %v1562_v25 = vld [vmem:[%s2438_s0 + $0x10c] sm:$0xf] }
  0x5a   :  { %881 = vmatpush.bf16.msrb.mxu2 %v1440_v27  ;;  %v912_v27 = vunpack.c.l.b16 %v907_v5 }
  0x5b   :  { %855 = vmatpush.bf16.msrb.mxu3 %v1184_v24  ;;  %v1376_v24 = vor.u32 %v1598_v12, %v1373_v13 }
  0x5c   :  { %833 = vmatpush.bf16.msra.mxu0 %v1372_v44  ;;  %v916_v38 = vpack.c.b16 %v912_v27, %v912_v27  ;;  %v905_v44 = vld [vmem:[%s2443_s4] sm:$0xf] }
  0x5d   :  { %869 = vmatpush.bf16.msrb.mxu1 %v1296_v37  ;;  %v1360_v37 = vor.u32 %v1594_v29, %v1357_v30 }
  0x5e   :  { %882 = vmatpush.bf16.msrb.mxu2 %v1424_v39  ;;  %v924_v39 = vsel %vm922_vm1, %v914_v31, 0  ;;  %v930_v43 = vsel %vm922_vm1, %v916_v38, 0 }
  0x5f   :  { %856 = vmatpush.bf16.msrb.mxu3 %v1168_v36  ;;  %v1232_v36 = vor.u32 %v1562_v25, %v1229_v26 }
  0x60   :  { %834 = vmatpush.bf16.msra.mxu0 %v1356_v59 }
  0x61   :  { %870 = vmatpush.bf16.msrb.mxu1 %v1280_v50 }
  0x62   :  { %883 = vmatpush.bf16.msrb.mxu2 %v1408_v55 }
  0x63   :  { %857 = vmatpush.bf16.msrb.mxu3 %v1152_v49  ;;  %835 = vmatmul.bf16.vlgmr.msra.gmra.mxu0 %v1940_v54 }
  0x64   :  { %897 = vmatpush.bf16.msrb.mxu0 %v1520_v62 }
  0x65   :  { %871 = vmatpush.bf16.msrb.mxu1 %v1264_v2 }
  0x66   :  { %884 = vmatpush.bf16.msrb.mxu2 %v1392_v8 }
  0x67   :  { %858 = vmatpush.bf16.msrb.mxu3 %v1136_v1 }
  0x68   :  { %898 = vmatpush.bf16.msrb.mxu0 %v1504_v16 }
  0x69   :  { %872 = vmatpush.bf16.msrb.mxu1 %v1248_v20 }
  0x6a   :  { %885 = vmatpush.bf16.msrb.mxu2 %v1376_v24 }
  0x6b   :  { %859 = vmatpush.bf16.msrb.mxu3 %v1120_v19 }
  0x6c   :  { %899 = vmatpush.bf16.msrb.mxu0 %v1488_v33 }
  0x6d   :  { %873 = vmatpush.bf16.msrb.mxu1 %v1232_v36 }
  0x6e   :  { %886 = vmatpush.bf16.msrb.mxu2 %v1360_v37 }
  0x6f   :  { %860 = vmatpush.bf16.msrb.mxu3 %v1104_v35 }
  0x70   :  { %955 = vmatpush.bf16.msra.mxu0 %v927_v42  ;;  %874 = vmatmul.bf16.vlgmr.msrb.gmra.mxu1 %v1971_v7 }
  0x71   :  { %887 = vmatmul.bf16.vlgmr.msrb.gmra.mxu2 %v1940_v54  ;;  %968 = vmatpush.bf16.msra.mxu1 %v930_v43 }
  0x72   :  { %981 = vmatpush.bf16.msra.mxu2 %v933_v40  ;;  %861 = vmatmul.bf16.vlgmr.msrb.gmra.mxu3 %v1969_v6 }
  0x73   :  { %942 = vmatpush.bf16.msra.mxu3 %v924_v39  ;;  %1524 = vmatmul.msk.bf16.vlgmr.msrb.gmra.mxu0 %vm693_vm0, %v1918_v41 }
  0x80   :  { %1527 = vmatmul.msk.bf16.vlgmr.msra.gmra.mxu1 %vm918_vm2, %v905_v44 }
  0x81   :  { %1528 = vmatmul.msk.bf16.vlgmr.msra.gmra.mxu2 %vm918_vm2, %v905_v44 }
  0x82   :  { %1525 = vmatmul.msk.bf16.vlgmr.msra.gmra.mxu3 %vm918_vm2, %v905_v44 }
  0x83   :  { %1526 = vmatmul.msk.bf16.vlgmr.msra.gmra.mxu0 %vm918_vm2, %v905_v44 }
  0x95   :  { %v745_v46 = vpop.f32.mrf.mxu3 }
  0x98   :  { %v138_v45 = vpop.permute.xlu0 %137 }
  0x9d   :  { %v747_v50 = vpop.f32.mrf.mxu3 }
  0xa0   :  { %v706_v6 = vpop.f32.mrf.mxu0 }
  0xa1   :  { %v719_v47 = vpop.f32.mrf.mxu1  ;;  %v707_v7 = vadd.f32 %v706_v6, %v138_v45 }
  0xa3   :  { %v720_v48 = vadd.f32 %v719_v47, %v707_v7 }
  0xa8   :  { %v732_v54 = vpop.f32.mrf.mxu2  ;;  %v708_v51 = vpop.f32.mrf.mxu0 }
  0xa9   :  { %v733_v49 = vadd.f32 %v732_v54, %v720_v48  ;;  %v721_v41 = vpop.f32.mrf.mxu1 }
  0xab   :  { %v746_v52 = vadd.f32 %v745_v46, %v733_v49 }
  0xb0   :  { %v734_v53 = vpop.f32.mrf.mxu2 }
  0xb5   :  { %v758_v55 = vpop.f32.mrf.mxu3 }
  0xb6   :  { %v759_v58 = vadd.f32 %v758_v55, %v138_v45 }
  0xb8   :  { %v797_v56 = vpop.f32.mrf.mxu2 }
  0xbb   :  { %v995_v30 = vpop.permute.xlu0 %994 }
  0xbd   :  { %v760_v57 = vpop.f32.mrf.mxu3 }
  0xc0   :  { %v771_v59 = vpop.f32.mrf.mxu0  ;;  %v799_v62 = vpop.f32.mrf.mxu2 }
  0xc1   :  { %v784_v60 = vpop.f32.mrf.mxu1  ;;  %v772_v61 = vadd.f32 %v771_v59, %v759_v58 }
  0xc3   :  { %v785_v63 = vadd.f32 %v784_v60, %v772_v61 }
  0xc5   :  { %v798_v0 = vadd.f32 %v797_v56, %v785_v63 }
  0xc8   :  { %v773_v1 = vpop.f32.mrf.mxu0 }
  0xc9   :  { %v786_v2 = vpop.f32.mrf.mxu1 }
  0xd1   :  { %v849_v5 = vpop.f32.mrf.mxu1 }
  0xd4   :  { %v823_v4 = vpop.f32.mrf.mxu2 }
  0xd5   :  { %v810_v3 = vpop.f32.mrf.mxu3 }
  0xd6   :  { %v811_v14 = vadd.f32 %v810_v3, %v138_v45 }
  0xd8   :  { %v824_v17 = vadd.f32 %v823_v4, %v811_v14 }
  0xd9   :  { %v851_v10 = vpop.f32.mrf.mxu1 }
  0xdc   :  { %v825_v9 = vpop.f32.mrf.mxu2 }
  0xdd   :  { %v812_v8 = vpop.f32.mrf.mxu3 }
  0xe0   :  { %v836_v11 = vpop.f32.mrf.mxu0 }
  0xe1   :  { %v837_v21 = vadd.f32 %v836_v11, %v824_v17 }
  0xe3   :  { %v850_v26 = vadd.f32 %v849_v5, %v837_v21 }
  0xe8   :  { %v838_v12 = vpop.f32.mrf.mxu0 }
  0xed   :  { %v875_v13 = vpop.f32.mrf.mxu1 }
  0xf0   :  { %v901_v16 = vpop.f32.mrf.mxu0 }
  0xf4   :  { %v888_v18 = vpop.f32.mrf.mxu2 }
  0xf5   :  { %v862_v15 = vpop.f32.mrf.mxu3  ;;  %v877_v19 = vpop.f32.mrf.mxu1 }
  0xf6   :  { %v863_v20 = vadd.f32 %v862_v15, %v138_v45 }
  0xf8   :  { %v876_v22 = vadd.f32 %v875_v13, %v863_v20  ;;  %v903_v24 = vpop.f32.mrf.mxu0 }
  0xfa   :  { %v889_v29 = vadd.f32 %v888_v18, %v876_v22 }
  0xfc   :  { %v890_v25 = vpop.f32.mrf.mxu2  ;;  %v902_v33 = vadd.f32 %v901_v16, %v889_v29 }
  0xfd   :  { %v864_v23 = vpop.f32.mrf.mxu3  ;;  %v970_v27 = vpop.f32.mrf.mxu1 }
  0xfe   :  { %v989_v28 = vadd.f32 %v970_v27, %v850_v26 }
 0x100   :  { %v2400_v31 = vadd.f32 %v995_v30, %v989_v28  ;;  %v957_v35 = vpop.f32.mrf.mxu0 }
 0x101   :  { %v988_v39 = vadd.f32 %v957_v35, %v798_v0 }
 0x102   :  { %v1015_v32 = vand.u32 2147483647, %v2400_v31  ;;  %v1003_v11 = vmax.f32 %v2400_v31, 0.0  ;;  %vm1007_vm4 = vcmp.ne.f32.partialorder %v2400_v31, %v2400_v31 }
 0x103   :  { %v2405_v45 = vadd.f32 %v995_v30, %v988_v39 }
 0x104   :  { %v1019_v36 = vsub.f32 0.0, %v1015_v32  ;;  %v983_v38 = vpop.f32.mrf.mxu2 }
 0x105   :  { %v944_v34 = vpop.f32.mrf.mxu3  ;;  %v990_v40 = vadd.f32 %v983_v38, %v902_v33  ;;  %v972_v42 = vpop.f32.mrf.mxu1  ;;  %v1014_v48 = vand.u32 2147483647, %v2405_v45  ;;  %vm1006_vm10 = vcmp.ne.f32.partialorder %v2405_v45, %v2405_v45 }
 0x106   :  { %v987_v37 = vadd.f32 %v944_v34, %v746_v52  ;;  %v1025_v43 = vmul.f32 1.442695, %v1019_v36  ;;  %v1002_v36 = vmax.f32 %v2405_v45, 0.0 }
 0x107   :  { %v2407_v46 = vadd.f32 %v995_v30, %v990_v40  ;;  %v1018_v41 = vsub.f32 0.0, %v1014_v48 }
 0x108   :  { %v2403_v44 = vadd.f32 %v995_v30, %v987_v37  ;;  %1639 = vpow2.f32 %v1025_v43  ;;  %v959_v50 = vpop.f32.mrf.mxu0 }
 0x109   :  { %v1016_v47 = vand.u32 2147483647, %v2407_v46  ;;  %v1023_v56 = vmul.f32 1.442695, %v1018_v41  ;;  %v1004_v25 = vmax.f32 %v2407_v46, 0.0  ;;  %vm1008_vm9 = vcmp.ne.f32.partialorder %v2407_v46, %v2407_v46 }
 0x10a   :  { %v1013_v6 = vand.u32 2147483647, %v2403_v44  ;;  %v1001_v22 = vmax.f32 %v2403_v44, 0.0  ;;  %vm1005_vm8 = vcmp.ne.f32.partialorder %v2403_v44, %v2403_v44 }
 0x10b   :  { %v1020_v54 = vsub.f32 0.0, %v1016_v47 }
 0x10c   :  { %v1017_v7 = vsub.f32 0.0, %v1013_v6  ;;  %v985_v52 = vpop.f32.mrf.mxu2 }
 0x10d   :  { %v946_v49 = vpop.f32.mrf.mxu3  ;;  %v1027_v53 = vmul.f32 1.442695, %v1020_v54 }
 0x10e   :  { %v1021_v51 = vmul.f32 1.442695, %v1017_v7  ;;  %v1640_v55 = vpop.eup %1639 }
 0x10f   :  { %v1047_v57 = vadd.f32 1.0, %v1640_v55  ;;  %v1050_v58 = vmul.f32 -0.5, %v1640_v55  ;;  %v1053_v62 = vand.u32 2147483647, %v1640_v55 }
 0x110   :  { %1641 = vpow2.f32 %v1021_v51 }
 0x111   :  { %1643 = vpow2.f32 %v1027_v53  ;;  %v1051_v60 = vadd.f32 1.0, %v1050_v58  ;;  %vm1054_vm3 = vcmp.lt.f32.partialorder %v1053_v62, 0.0004427343 }
 0x112   :  { %1645 = vpow2.f32 %v1023_v56 }
 0x113   :  { %1647 = vlog2.f32 %v1047_v57  ;;  %v1052_v9 = vmul.f32 %v1640_v55, %v1051_v60 }
 0x116   :  { %v1642_v59 = vpop.eup %1641 }
 0x117   :  { %v1644_v61 = vpop.eup %1643  ;;  %v1029_v63 = vadd.f32 1.0, %v1642_v59  ;;  %v1032_v1 = vmul.f32 -0.5, %v1642_v59  ;;  %v1035_v14 = vand.u32 2147483647, %v1642_v59 }
 0x118   :  { %v1646_v0 = vpop.eup %1645  ;;  %v1056_v2 = vadd.f32 1.0, %v1644_v61  ;;  %v1059_v4 = vmul.f32 -0.5, %v1644_v61  ;;  %v1062_v16 = vand.u32 2147483647, %v1644_v61 }
 0x119   :  { %v1648_v3 = vpop.eup %1647  ;;  %1649 = vlog2.f32 %v1029_v63  ;;  %v1038_v5 = vadd.f32 1.0, %v1646_v0  ;;  %v1041_v10 = vmul.f32 -0.5, %v1646_v0  ;;  %v1033_v13 = vadd.f32 1.0, %v1032_v1 }
 0x11a   :  { %v1049_v8 = vmul.f32 0.6931472, %v1648_v3  ;;  %1651 = vlog2.f32 %v1056_v2  ;;  %v1060_v15 = vadd.f32 1.0, %v1059_v4  ;;  %v1044_v20 = vand.u32 2147483647, %v1646_v0 }
 0x11b   :  { %1653 = vlog2.f32 %v1038_v5  ;;  %v1042_v18 = vadd.f32 1.0, %v1041_v10  ;;  %v1034_v24 = vmul.f32 %v1642_v59, %v1033_v13  ;;  %vm1036_vm5 = vcmp.lt.f32.partialorder %v1035_v14, 0.0004427343 }
 0x11c   :  { %v1055_v12 = vsel %vm1054_vm3, %v1052_v9, %v1049_v8  ;;  %v1061_v28 = vmul.f32 %v1644_v61, %v1060_v15  ;;  %vm1063_vm6 = vcmp.lt.f32.partialorder %v1062_v16, 0.0004427343  ;;  %vm1045_vm7 = vcmp.lt.f32.partialorder %v1044_v20, 0.0004427343 }
 0x11d   :  { %v1067_v17 = vadd.f32 %v1055_v12, %v1003_v11  ;;  %v1043_v33 = vmul.f32 %v1646_v0, %v1042_v18 }
 0x11f   :  { %v1650_v19 = vpop.eup %1649  ;;  %v1071_v29 = vsel %vm1007_vm4, %v2400_v31, %v1067_v17 }
 0x120   :  { %v1652_v21 = vpop.eup %1651  ;;  %v1031_v23 = vmul.f32 0.6931472, %v1650_v19  ;;  %1655 = vtanh.f32 %v1071_v29 }
 0x121   :  { %v1654_v26 = vpop.eup %1653  ;;  %v1058_v27 = vmul.f32 0.6931472, %v1652_v21 }
 0x122   :  { %v1037_v30 = vsel %vm1036_vm5, %v1034_v24, %v1031_v23  ;;  %v1040_v32 = vmul.f32 0.6931472, %v1654_v26 }
 0x123   :  { %v1065_v34 = vadd.f32 %v1037_v30, %v1001_v22  ;;  %v1064_v35 = vsel %vm1063_vm6, %v1061_v28, %v1058_v27 }
 0x124   :  { %v1068_v37 = vadd.f32 %v1064_v35, %v1004_v25  ;;  %v1046_v38 = vsel %vm1045_vm7, %v1043_v33, %v1040_v32 }
 0x125   :  { %v1069_v39 = vsel %vm1005_vm8, %v2403_v44, %v1065_v34  ;;  %v1066_v40 = vadd.f32 %v1046_v38, %v1002_v36 }
 0x126   :  { %1657 = vtanh.f32 %v1069_v39  ;;  %v1072_v42 = vsel %vm1008_vm9, %v2407_v46, %v1068_v37  ;;  %v1656_v6 = vpop.eup %1655 }
 0x127   :  { %1659 = vtanh.f32 %v1072_v42  ;;  %v1070_v43 = vsel %vm1006_vm10, %v2405_v45, %v1066_v40  ;;  %v1079_v49 = vmul.f32 %v1656_v6, %v2400_v31 }
 0x128   :  { %1661 = vtanh.f32 %v1070_v43 }
 0x12c   :  { %v1658_v47 = vpop.eup %1657 }
 0x12d   :  { %v1660_v7 = vpop.eup %1659  ;;  %v1077_v48 = vmul.f32 %v1658_v47, %v2403_v44 }
 0x12e   :  { %v1662_v54 = vpop.eup %1661  ;;  %v1080_v50 = vmul.f32 %v1660_v7, %v2407_v46 }
 0x12f   :  { %v1078_v51 = vmul.f32 %v1662_v54, %v2405_v45 }
 0x130   :  { %v1082_v41 = vpack.c.bf16 %v1080_v50, %v1079_v49 }
 0x131   :  { %v1081_v52 = vpack.c.bf16 %v1078_v51, %v1077_v48 }
 0x132   :  { %1084 = vst [vmem:[%s2444_s6 + $0x8] sm:$0xff] %v1082_v41 }
 0x133   :  { %1083 = vst [vmem:[%s2444_s6] sm:$0xff] %v1081_v52 }

// kernel: hourglass_forward.11
= control target key start
LH: loop header
LB: loop body
LE: loop exit
PB: predicated region body
PF: predicated region fallthrough
CT: control target
= control target key end

     0   :  { %s2514_s21 = smov 0   ;;  %s2516_s22 = smov 0   ;;  %s3211_s0 = inlined_call_operand.vmem [shape: bf16[216,4096], index: 0, kind: input, shape index: {}]   ;;  %s3212_s1 = inlined_call_operand.vmem [shape: bf16[4,216], index: 1, kind: input, shape index: {}]   ;;  %s3213_s2 = inlined_call_operand.vmem [shape: f32[4,1], index: 2, kind: input, shape index: {}]   ;;  %s3214_s3 = inlined_call_operand.vmem [shape: bf16[4,4096], index: 3, kind: input, shape index: {}]   ;;  %s3215_s4 = inlined_call_operand.vmem [shape: bf16[4,4], index: 4, kind: input, shape index: {}]   ;;  %s3216_s5 = inlined_call_operand.vmem [shape: f32[4,1], index: 5, kind: input, shape index: {}]   ;;  %s3217_s6 = inlined_call_operand.vmem [shape: f32[4,4096], index: 6, kind: output, shape index: {}]  }
   0x1   :  { %s2518_s23 = smov 0  }
   0x2 LB: > { %s1828_s24 = sadd.s32 4294967295, %s2476_s23   ;;  %s2531_s25 = sadd.s32 1, %s2476_s23   ;;  %s2476_s23 = sphi %s2518_s23, %s3228_s23   ;;  %s2472_s22 = sphi %s2516_s22, %s3227_s22   ;;  %s2468_s21 = sphi %s2514_s21, %s3226_s21  }
   0x3   : > { %s20_s26 = ssub.s32 %s2476_s23, %s2531_s25  ;;  %s23_s27 = sadd.s32 1, %s2472_s22 }
   0x4   : > { %p21_p0 = scmp.eq.s32.totalorder %s20_s26, 0  ;;  %p30_p1 = scmp.ne.s32.totalorder %s2472_s22, %s2468_s21 }
   0x5   : > { %p31_p2 = scmp.eq.s32.totalorder %s2476_s23, 0  ;;  %p1831_p4 = scmp.ge.s32.totalorder %s2476_s23, 4 }
   0x6   : > { %s2540_s28 = scalar_select %p21_p0, %s2472_s22, %s23_s27  }
   0x7   : > { %p32_p3 = por %p31_p2, %p30_p1  ;;  %204 = sbr.rel (%p1831_p4) target bundleno = 124 (0x7c), region = 32 }
   0xc   : > { %207 = sbr.rel (!%p32_p3) target bundleno = 124 (0x7c), region = 36  ;;  %s209_s29 = sand.u32 (%p32_p3), 1, %s2472_s22  }
   0xd   : > { %s2273_s30 = sshll.u32 (%p32_p3), %s2476_s23, 5  ;;  %s2378_s7 = smul.u32 (%p32_p3), 864, %s209_s29 }
   0xe   : > { %s2548_s10 = scalar_lea.vmem (%p32_p3), %s3211_s0, %s2273_s30 }
   0xf   : > { %v227_v0 = vld [vmem:[%s2548_s10] sm:$0xff] (%p32_p3)  ;;  %v229_v1 = vld [vmem:[%s2548_s10 + $0x8] sm:$0xff] (%p32_p3)  ;;  %v231_v2 = vld [vmem:[%s2548_s10 + $0x10] sm:$0xff] (%p32_p3)  ;;  %s2553_s11 = scalar_lea.vmem (%p32_p3), [#allocation2], %s2378_s7 }
  0x10   : > { %228 = vst [vmem:[%s2553_s11] sm:$0xff] (%p32_p3), %v227_v0  ;;  %v233_v3 = vld [vmem:[%s2548_s10 + $0x18] sm:$0xff] (%p32_p3)  ;;  %v235_v4 = vld [vmem:[%s2548_s10 + $0x80] sm:$0xff] (%p32_p3)  ;;  %v237_v5 = vld [vmem:[%s2548_s10 + $0x88] sm:$0xff] (%p32_p3) }
  0x11   : > { %230 = vst [vmem:[%s2553_s11 + $0x8] sm:$0xff] %v229_v1  ;;  %v239_v6 = vld [vmem:[%s2548_s10 + $0x90] sm:$0xff]  ;;  %v241_v7 = vld [vmem:[%s2548_s10 + $0x98] sm:$0xff]  ;;  %v243_v8 = vld [vmem:[%s2548_s10 + $0x100] sm:$0xff] }
  0x12   : > { %232 = vst [vmem:[%s2553_s11 + $0x10] sm:$0xff] %v231_v2  ;;  %v245_v9 = vld [vmem:[%s2548_s10 + $0x108] sm:$0xff]  ;;  %v247_v10 = vld [vmem:[%s2548_s10 + $0x110] sm:$0xff]  ;;  %v249_v11 = vld [vmem:[%s2548_s10 + $0x118] sm:$0xff] }
  0x13   : > { %234 = vst [vmem:[%s2553_s11 + $0x18] sm:$0xff] %v233_v3  ;;  %v251_v12 = vld [vmem:[%s2548_s10 + $0x180] sm:$0xff]  ;;  %v253_v13 = vld [vmem:[%s2548_s10 + $0x188] sm:$0xff]  ;;  %v255_v14 = vld [vmem:[%s2548_s10 + $0x190] sm:$0xff] }
  0x14   : > { %236 = vst [vmem:[%s2553_s11 + $0x20] sm:$0xff] %v235_v4  ;;  %v257_v15 = vld [vmem:[%s2548_s10 + $0x198] sm:$0xff]  ;;  %v259_v16 = vld [vmem:[%s2548_s10 + $0x200] sm:$0xff]  ;;  %v261_v17 = vld [vmem:[%s2548_s10 + $0x208] sm:$0xff] }
  0x15   : > { %238 = vst [vmem:[%s2553_s11 + $0x28] sm:$0xff] %v237_v5  ;;  %v263_v18 = vld [vmem:[%s2548_s10 + $0x210] sm:$0xff]  ;;  %v265_v19 = vld [vmem:[%s2548_s10 + $0x218] sm:$0xff]  ;;  %v267_v20 = vld [vmem:[%s2548_s10 + $0x280] sm:$0xff] }
  0x16   : > { %240 = vst [vmem:[%s2553_s11 + $0x30] sm:$0xff] %v239_v6  ;;  %v269_v21 = vld [vmem:[%s2548_s10 + $0x288] sm:$0xff]  ;;  %v271_v22 = vld [vmem:[%s2548_s10 + $0x290] sm:$0xff]  ;;  %v273_v23 = vld [vmem:[%s2548_s10 + $0x298] sm:$0xff] }
  0x17   : > { %242 = vst [vmem:[%s2553_s11 + $0x38] sm:$0xff] %v241_v7  ;;  %v275_v24 = vld [vmem:[%s2548_s10 + $0x300] sm:$0xff]  ;;  %v277_v25 = vld [vmem:[%s2548_s10 + $0x308] sm:$0xff]  ;;  %v279_v26 = vld [vmem:[%s2548_s10 + $0x310] sm:$0xff] }
  0x18   : > { %244 = vst [vmem:[%s2553_s11 + $0x40] sm:$0xff] %v243_v8  ;;  %v281_v27 = vld [vmem:[%s2548_s10 + $0x318] sm:$0xff]  ;;  %v283_v28 = vld [vmem:[%s2548_s10 + $0x380] sm:$0xff]  ;;  %v285_v29 = vld [vmem:[%s2548_s10 + $0x388] sm:$0xff] }
  0x19   : > { %246 = vst [vmem:[%s2553_s11 + $0x48] sm:$0xff] %v245_v9  ;;  %v287_v30 = vld [vmem:[%s2548_s10 + $0x390] sm:$0xff]  ;;  %v289_v31 = vld [vmem:[%s2548_s10 + $0x398] sm:$0xff]  ;;  %v291_v32 = vld [vmem:[%s2548_s10 + $0x400] sm:$0xff] }
  0x1a   : > { %248 = vst [vmem:[%s2553_s11 + $0x50] sm:$0xff] %v247_v10  ;;  %v293_v33 = vld [vmem:[%s2548_s10 + $0x408] sm:$0xff]  ;;  %v295_v34 = vld [vmem:[%s2548_s10 + $0x410] sm:$0xff]  ;;  %v297_v35 = vld [vmem:[%s2548_s10 + $0x418] sm:$0xff] }
  0x1b   : > { %250 = vst [vmem:[%s2553_s11 + $0x58] sm:$0xff] %v249_v11  ;;  %v299_v36 = vld [vmem:[%s2548_s10 + $0x480] sm:$0xff]  ;;  %v301_v37 = vld [vmem:[%s2548_s10 + $0x488] sm:$0xff]  ;;  %v303_v38 = vld [vmem:[%s2548_s10 + $0x490] sm:$0xff] }
  0x1c   : > { %252 = vst [vmem:[%s2553_s11 + $0x60] sm:$0xff] %v251_v12  ;;  %v305_v39 = vld [vmem:[%s2548_s10 + $0x498] sm:$0xff]  ;;  %v307_v40 = vld [vmem:[%s2548_s10 + $0x500] sm:$0xff]  ;;  %v309_v41 = vld [vmem:[%s2548_s10 + $0x508] sm:$0xff] }
  0x1d   : > { %254 = vst [vmem:[%s2553_s11 + $0x68] sm:$0xff] %v253_v13  ;;  %v311_v42 = vld [vmem:[%s2548_s10 + $0x510] sm:$0xff]  ;;  %v313_v43 = vld [vmem:[%s2548_s10 + $0x518] sm:$0xff]  ;;  %v315_v44 = vld [vmem:[%s2548_s10 + $0x580] sm:$0xff] }
  0x1e   : > { %256 = vst [vmem:[%s2553_s11 + $0x70] sm:$0xff] %v255_v14  ;;  %v317_v45 = vld [vmem:[%s2548_s10 + $0x588] sm:$0xff]  ;;  %v319_v46 = vld [vmem:[%s2548_s10 + $0x590] sm:$0xff]  ;;  %v321_v47 = vld [vmem:[%s2548_s10 + $0x598] sm:$0xff] }
  0x1f   : > { %258 = vst [vmem:[%s2553_s11 + $0x78] sm:$0xff] %v257_v15  ;;  %v323_v48 = vld [vmem:[%s2548_s10 + $0x600] sm:$0xff]  ;;  %v325_v49 = vld [vmem:[%s2548_s10 + $0x608] sm:$0xff]  ;;  %v327_v50 = vld [vmem:[%s2548_s10 + $0x610] sm:$0xff] }
  0x20   : > { %260 = vst [vmem:[%s2553_s11 + $0x80] sm:$0xff] %v259_v16  ;;  %v329_v51 = vld [vmem:[%s2548_s10 + $0x618] sm:$0xff]  ;;  %v331_v52 = vld [vmem:[%s2548_s10 + $0x680] sm:$0xff]  ;;  %v333_v53 = vld [vmem:[%s2548_s10 + $0x688] sm:$0xff] }
  0x21   : > { %262 = vst [vmem:[%s2553_s11 + $0x88] sm:$0xff] %v261_v17  ;;  %v335_v54 = vld [vmem:[%s2548_s10 + $0x690] sm:$0xff]  ;;  %v337_v55 = vld [vmem:[%s2548_s10 + $0x698] sm:$0xff]  ;;  %v339_v56 = vld [vmem:[%s2548_s10 + $0x700] sm:$0xff] }
  0x22   : > { %264 = vst [vmem:[%s2553_s11 + $0x90] sm:$0xff] %v263_v18  ;;  %v341_v57 = vld [vmem:[%s2548_s10 + $0x708] sm:$0xff]  ;;  %v343_v58 = vld [vmem:[%s2548_s10 + $0x710] sm:$0xff]  ;;  %v345_v59 = vld [vmem:[%s2548_s10 + $0x718] sm:$0xff] }
  0x23   : > { %266 = vst [vmem:[%s2553_s11 + $0x98] sm:$0xff] %v265_v19  ;;  %v347_v60 = vld [vmem:[%s2548_s10 + $0x780] sm:$0xff]  ;;  %v349_v61 = vld [vmem:[%s2548_s10 + $0x788] sm:$0xff]  ;;  %v351_v62 = vld [vmem:[%s2548_s10 + $0x790] sm:$0xff] }
  0x24   : > { %268 = vst [vmem:[%s2553_s11 + $0xa0] sm:$0xff] %v267_v20  ;;  %v353_v63 = vld [vmem:[%s2548_s10 + $0x798] sm:$0xff]  ;;  %v355_v0 = vld [vmem:[%s2548_s10 + $0x800] sm:$0xff]  ;;  %v357_v1 = vld [vmem:[%s2548_s10 + $0x808] sm:$0xff] }
  0x25   : > { %270 = vst [vmem:[%s2553_s11 + $0xa8] sm:$0xff] %v269_v21  ;;  %v359_v2 = vld [vmem:[%s2548_s10 + $0x810] sm:$0xff]  ;;  %v361_v3 = vld [vmem:[%s2548_s10 + $0x818] sm:$0xff]  ;;  %v363_v4 = vld [vmem:[%s2548_s10 + $0x880] sm:$0xff] }
  0x26   : > { %272 = vst [vmem:[%s2553_s11 + $0xb0] sm:$0xff] %v271_v22  ;;  %v365_v5 = vld [vmem:[%s2548_s10 + $0x888] sm:$0xff]  ;;  %v367_v6 = vld [vmem:[%s2548_s10 + $0x890] sm:$0xff]  ;;  %v369_v7 = vld [vmem:[%s2548_s10 + $0x898] sm:$0xff] }
  0x27   : > { %274 = vst [vmem:[%s2553_s11 + $0xb8] sm:$0xff] %v273_v23  ;;  %v371_v8 = vld [vmem:[%s2548_s10 + $0x900] sm:$0xff]  ;;  %v373_v9 = vld [vmem:[%s2548_s10 + $0x908] sm:$0xff]  ;;  %v375_v10 = vld [vmem:[%s2548_s10 + $0x910] sm:$0xff] }
  0x28   : > { %276 = vst [vmem:[%s2553_s11 + $0xc0] sm:$0xff] %v275_v24  ;;  %v377_v11 = vld [vmem:[%s2548_s10 + $0x918] sm:$0xff]  ;;  %v379_v12 = vld [vmem:[%s2548_s10 + $0x980] sm:$0xff]  ;;  %v381_v13 = vld [vmem:[%s2548_s10 + $0x988] sm:$0xff] }
  0x29   : > { %278 = vst [vmem:[%s2553_s11 + $0xc8] sm:$0xff] %v277_v25  ;;  %v383_v14 = vld [vmem:[%s2548_s10 + $0x990] sm:$0xff]  ;;  %v385_v15 = vld [vmem:[%s2548_s10 + $0x998] sm:$0xff]  ;;  %v387_v16 = vld [vmem:[%s2548_s10 + $0xa00] sm:$0xff] }
  0x2a   : > { %280 = vst [vmem:[%s2553_s11 + $0xd0] sm:$0xff] %v279_v26  ;;  %v389_v17 = vld [vmem:[%s2548_s10 + $0xa08] sm:$0xff]  ;;  %v391_v18 = vld [vmem:[%s2548_s10 + $0xa10] sm:$0xff]  ;;  %v393_v19 = vld [vmem:[%s2548_s10 + $0xa18] sm:$0xff] }
  0x2b   : > { %282 = vst [vmem:[%s2553_s11 + $0xd8] sm:$0xff] %v281_v27  ;;  %v395_v20 = vld [vmem:[%s2548_s10 + $0xa80] sm:$0xff]  ;;  %v397_v21 = vld [vmem:[%s2548_s10 + $0xa88] sm:$0xff]  ;;  %v399_v22 = vld [vmem:[%s2548_s10 + $0xa90] sm:$0xff] }
  0x2c   : > { %284 = vst [vmem:[%s2553_s11 + $0xe0] sm:$0xff] %v283_v28  ;;  %v401_v23 = vld [vmem:[%s2548_s10 + $0xa98] sm:$0xff]  ;;  %v403_v24 = vld [vmem:[%s2548_s10 + $0xb00] sm:$0xff]  ;;  %v405_v25 = vld [vmem:[%s2548_s10 + $0xb08] sm:$0xff] }
  0x2d   : > { %286 = vst [vmem:[%s2553_s11 + $0xe8] sm:$0xff] %v285_v29  ;;  %v407_v26 = vld [vmem:[%s2548_s10 + $0xb10] sm:$0xff]  ;;  %v409_v27 = vld [vmem:[%s2548_s10 + $0xb18] sm:$0xff]  ;;  %v411_v28 = vld [vmem:[%s2548_s10 + $0xb80] sm:$0xff] }
  0x2e   : > { %288 = vst [vmem:[%s2553_s11 + $0xf0] sm:$0xff] %v287_v30  ;;  %v413_v29 = vld [vmem:[%s2548_s10 + $0xb88] sm:$0xff]  ;;  %v415_v30 = vld [vmem:[%s2548_s10 + $0xb90] sm:$0xff] }
  0x2f   : > { %290 = vst [vmem:[%s2553_s11 + $0xf8] sm:$0xff] %v289_v31  ;;  %v417_v31 = vld [vmem:[%s2548_s10 + $0xb98] sm:$0xff] }
  0x30   : > { %292 = vst [vmem:[%s2553_s11 + $0x100] sm:$0xff] %v291_v32  ;;  %v419_v32 = vld [vmem:[%s2548_s10 + $0xc00] sm:$0xff] }
  0x31   : > { %294 = vst [vmem:[%s2553_s11 + $0x108] sm:$0xff] %v293_v33  ;;  %v421_v33 = vld [vmem:[%s2548_s10 + $0xc08] sm:$0xff] }
  0x32   : > { %296 = vst [vmem:[%s2553_s11 + $0x110] sm:$0xff] %v295_v34  ;;  %v423_v34 = vld [vmem:[%s2548_s10 + $0xc10] sm:$0xff] }
  0x33   : > { %298 = vst [vmem:[%s2553_s11 + $0x118] sm:$0xff] %v297_v35  ;;  %v425_v35 = vld [vmem:[%s2548_s10 + $0xc18] sm:$0xff] }
  0x34   : > { %300 = vst [vmem:[%s2553_s11 + $0x120] sm:$0xff] %v299_v36  ;;  %v427_v36 = vld [vmem:[%s2548_s10 + $0xc80] sm:$0xff] }
  0x35   : > { %302 = vst [vmem:[%s2553_s11 + $0x128] sm:$0xff] %v301_v37  ;;  %v429_v37 = vld [vmem:[%s2548_s10 + $0xc88] sm:$0xff] }
  0x36   : > { %304 = vst [vmem:[%s2553_s11 + $0x130] sm:$0xff] %v303_v38  ;;  %v431_v38 = vld [vmem:[%s2548_s10 + $0xc90] sm:$0xff] }
  0x37   : > { %306 = vst [vmem:[%s2553_s11 + $0x138] sm:$0xff] %v305_v39  ;;  %v433_v39 = vld [vmem:[%s2548_s10 + $0xc98] sm:$0xff] }
  0x38   : > { %308 = vst [vmem:[%s2553_s11 + $0x140] sm:$0xff] %v307_v40  ;;  %v435_v40 = vld [vmem:[%s2548_s10 + $0xd00] sm:$0xff] }
  0x39   : > { %310 = vst [vmem:[%s2553_s11 + $0x148] sm:$0xff] %v309_v41  ;;  %v437_v41 = vld [vmem:[%s2548_s10 + $0xd08] sm:$0xff] }
  0x3a   : > { %312 = vst [vmem:[%s2553_s11 + $0x150] sm:$0xff] %v311_v42  ;;  %v439_v42 = vld [vmem:[%s2548_s10 + $0xd10] sm:$0xff] }
  0x3b   : > { %314 = vst [vmem:[%s2553_s11 + $0x158] sm:$0xff] %v313_v43  ;;  %v441_v43 = vld [vmem:[%s2548_s10 + $0xd18] sm:$0xff] }
  0x3c   : > { %316 = vst [vmem:[%s2553_s11 + $0x160] sm:$0xff] %v315_v44 }
  0x3d   : > { %318 = vst [vmem:[%s2553_s11 + $0x168] sm:$0xff] %v317_v45 }
  0x3e   : > { %320 = vst [vmem:[%s2553_s11 + $0x170] sm:$0xff] %v319_v46 }
  0x3f   : > { %322 = vst [vmem:[%s2553_s11 + $0x178] sm:$0xff] %v321_v47 }
  0x40   : > { %324 = vst [vmem:[%s2553_s11 + $0x180] sm:$0xff] %v323_v48 }
  0x41   : > { %326 = vst [vmem:[%s2553_s11 + $0x188] sm:$0xff] %v325_v49 }
  0x42   : > { %328 = vst [vmem:[%s2553_s11 + $0x190] sm:$0xff] %v327_v50 }
  0x43   : > { %330 = vst [vmem:[%s2553_s11 + $0x198] sm:$0xff] %v329_v51 }
  0x44   : > { %332 = vst [vmem:[%s2553_s11 + $0x1a0] sm:$0xff] %v331_v52 }
  0x45   : > { %334 = vst [vmem:[%s2553_s11 + $0x1a8] sm:$0xff] %v333_v53 }
  0x46   : > { %336 = vst [vmem:[%s2553_s11 + $0x1b0] sm:$0xff] %v335_v54 }
  0x47   : > { %338 = vst [vmem:[%s2553_s11 + $0x1b8] sm:$0xff] %v337_v55 }
  0x48   : > { %340 = vst [vmem:[%s2553_s11 + $0x1c0] sm:$0xff] %v339_v56 }
  0x49   : > { %342 = vst [vmem:[%s2553_s11 + $0x1c8] sm:$0xff] %v341_v57 }
  0x4a   : > { %344 = vst [vmem:[%s2553_s11 + $0x1d0] sm:$0xff] %v343_v58 }
  0x4b   : > { %346 = vst [vmem:[%s2553_s11 + $0x1d8] sm:$0xff] %v345_v59 }
  0x4c   : > { %348 = vst [vmem:[%s2553_s11 + $0x1e0] sm:$0xff] %v347_v60 }
  0x4d   : > { %350 = vst [vmem:[%s2553_s11 + $0x1e8] sm:$0xff] %v349_v61 }
  0x4e   : > { %352 = vst [vmem:[%s2553_s11 + $0x1f0] sm:$0xff] %v351_v62 }
  0x4f   : > { %354 = vst [vmem:[%s2553_s11 + $0x1f8] sm:$0xff] %v353_v63 }
  0x50   : > { %356 = vst [vmem:[%s2553_s11 + $0x200] sm:$0xff] %v355_v0 }
  0x51   : > { %358 = vst [vmem:[%s2553_s11 + $0x208] sm:$0xff] %v357_v1 }
  0x52   : > { %360 = vst [vmem:[%s2553_s11 + $0x210] sm:$0xff] %v359_v2 }
  0x53   : > { %362 = vst [vmem:[%s2553_s11 + $0x218] sm:$0xff] %v361_v3 }
  0x54   : > { %364 = vst [vmem:[%s2553_s11 + $0x220] sm:$0xff] %v363_v4 }
  0x55   : > { %366 = vst [vmem:[%s2553_s11 + $0x228] sm:$0xff] %v365_v5 }
  0x56   : > { %368 = vst [vmem:[%s2553_s11 + $0x230] sm:$0xff] %v367_v6 }
  0x57   : > { %370 = vst [vmem:[%s2553_s11 + $0x238] sm:$0xff] %v369_v7 }
  0x58   : > { %372 = vst [vmem:[%s2553_s11 + $0x240] sm:$0xff] %v371_v8 }
  0x59   : > { %374 = vst [vmem:[%s2553_s11 + $0x248] sm:$0xff] %v373_v9 }
  0x5a   : > { %376 = vst [vmem:[%s2553_s11 + $0x250] sm:$0xff] %v375_v10 }
  0x5b   : > { %378 = vst [vmem:[%s2553_s11 + $0x258] sm:$0xff] %v377_v11 }
  0x5c   : > { %380 = vst [vmem:[%s2553_s11 + $0x260] sm:$0xff] %v379_v12 }
  0x5d   : > { %382 = vst [vmem:[%s2553_s11 + $0x268] sm:$0xff] %v381_v13 }
  0x5e   : > { %384 = vst [vmem:[%s2553_s11 + $0x270] sm:$0xff] %v383_v14 }
  0x5f   : > { %386 = vst [vmem:[%s2553_s11 + $0x278] sm:$0xff] %v385_v15 }
  0x60   : > { %388 = vst [vmem:[%s2553_s11 + $0x280] sm:$0xff] %v387_v16 }
  0x61   : > { %390 = vst [vmem:[%s2553_s11 + $0x288] sm:$0xff] %v389_v17 }
  0x62   : > { %392 = vst [vmem:[%s2553_s11 + $0x290] sm:$0xff] %v391_v18 }
  0x63   : > { %394 = vst [vmem:[%s2553_s11 + $0x298] sm:$0xff] %v393_v19 }
  0x64   : > { %396 = vst [vmem:[%s2553_s11 + $0x2a0] sm:$0xff] %v395_v20 }
  0x65   : > { %398 = vst [vmem:[%s2553_s11 + $0x2a8] sm:$0xff] %v397_v21 }
  0x66   : > { %400 = vst [vmem:[%s2553_s11 + $0x2b0] sm:$0xff] %v399_v22 }
  0x67   : > { %402 = vst [vmem:[%s2553_s11 + $0x2b8] sm:$0xff] %v401_v23 }
  0x68   : > { %404 = vst [vmem:[%s2553_s11 + $0x2c0] sm:$0xff] %v403_v24 }
  0x69   : > { %406 = vst [vmem:[%s2553_s11 + $0x2c8] sm:$0xff] %v405_v25 }
  0x6a   : > { %408 = vst [vmem:[%s2553_s11 + $0x2d0] sm:$0xff] %v407_v26 }
  0x6b   : > { %410 = vst [vmem:[%s2553_s11 + $0x2d8] sm:$0xff] %v409_v27 }
  0x6c   : > { %412 = vst [vmem:[%s2553_s11 + $0x2e0] sm:$0xff] %v411_v28 }
  0x6d   : > { %414 = vst [vmem:[%s2553_s11 + $0x2e8] sm:$0xff] %v413_v29 }
  0x6e   : > { %416 = vst [vmem:[%s2553_s11 + $0x2f0] sm:$0xff] %v415_v30 }
  0x6f   : > { %418 = vst [vmem:[%s2553_s11 + $0x2f8] sm:$0xff] %v417_v31 }
  0x70   : > { %420 = vst [vmem:[%s2553_s11 + $0x300] sm:$0xff] %v419_v32 }
  0x71   : > { %422 = vst [vmem:[%s2553_s11 + $0x308] sm:$0xff] %v421_v33 }
  0x72   : > { %424 = vst [vmem:[%s2553_s11 + $0x310] sm:$0xff] %v423_v34 }
  0x73   : > { %426 = vst [vmem:[%s2553_s11 + $0x318] sm:$0xff] %v425_v35 }
  0x74   : > { %428 = vst [vmem:[%s2553_s11 + $0x320] sm:$0xff] %v427_v36 }
  0x75   : > { %430 = vst [vmem:[%s2553_s11 + $0x328] sm:$0xff] %v429_v37 }
  0x76   : > { %432 = vst [vmem:[%s2553_s11 + $0x330] sm:$0xff] %v431_v38 }
  0x77   : > { %434 = vst [vmem:[%s2553_s11 + $0x338] sm:$0xff] %v433_v39 }
  0x78   : > { %436 = vst [vmem:[%s2553_s11 + $0x340] sm:$0xff] %v435_v40 }
  0x79   : > { %438 = vst [vmem:[%s2553_s11 + $0x348] sm:$0xff] %v437_v41 }
  0x7a   : > { %440 = vst [vmem:[%s2553_s11 + $0x350] sm:$0xff] %v439_v42 }
  0x7b   : > { %442 = vst [vmem:[%s2553_s11 + $0x358] sm:$0xff] %v441_v43 }
  0x7c PF: > { %p1834_p5 = scmp.ge.s32.totalorder %s2476_s23, 1  ;;  %p456_p6 = scmp.lt.s32.totalorder %s2476_s23, 5 }
  0x7e   : > { %p457_p7 = pnand %p1834_p5, %p456_p6 }
  0x7f   : > { %s463_s12 = sand.u32 (!%p457_p7), 1, %s2468_s21   ;;  %s2927_s19 = sshll.u32 (!%p457_p7), %s1828_s24, 3 }
  0x80   : > { %460 = sbr.rel (%p457_p7) target bundleno = 469 (0x1d5), region = 63  ;;  %p499_p8 = scmp.lt.s32.totalorder (!%p457_p7), %s2927_s19, 31 }
  0x81   : > { %s2379_s13 = smul.u32 (!%p457_p7), 864, %s463_s12 }
  0x83   : > { %s2771_s14 = scalar_lea.vmem (!%p457_p7), [#allocation2], %s2379_s13 }
  0x85   : > { %v2065_v44 = vld [vmem:[%s2771_s14 + $0x1c0] sm:$0xf]  ;;  %v2330_v46 = vld [vmem:[%s2771_s14 + $0x1c4] sm:$0xf]  ;;  %vm1174_vm0 = vcmask 1043456   ;;  %v617_v43 = vld [vmem:[%s2771_s14 + $0x348] sm:$0xff] }
  0x86   : > { %v2334_v45 = vld [vmem:[%s2771_s14 + $0x1dc] sm:$0xf0]  ;;  %v2067_v48 = vld [vmem:[%s2771_s14 + $0x1e0] sm:$0xf0]  ;;  %vm1171_vm1 = vcmask 719872   ;;  %s3230_s19 = smov (!%p499_p8, %s2927_s19), 31 }
  0x87   : > { %v2066_v47 = vor.u32 %v2334_v45, %v2065_v44  ;;  %v616_v49 = vld [vmem:[%s2771_s14 + $0x340] sm:$0xff]  ;;  %v2070_v51 = vor.u32 %v2330_v46, %v2067_v48  ;;  %v949_v44 = vunpack.c.l.b16 %v617_v43  ;;  %s1836_s20 = sshll.u32 %s3230_s19, 1  ;;  %vm1427_vm2 = vcmask 1041408   ;;  %s1838_s7 = sshll.u32 %s3230_s19, 2 }
  0x88   : > { %v2033_v50 = vld [vmem:[%s2771_s14 + $0x180] sm:$0xf]  ;;  %v947_v52 = vunpack.c.l.b16 %v616_v49  ;;  %v948_v53 = vunpack.c.h.b16 %v616_v49  ;;  %v2322_v55 = vld [vmem:[%s2771_s14 + $0x184] sm:$0xf]  ;;  %s2977_s24 = scalar_lea.vmem %s3214_s3, %s1836_s20  ;;  %vm1423_vm3 = vcmask 31744   ;;  %s3168_s10 = scalar_lea.vmem %s3217_s6, %s1838_s7 }
  0x89   : > { %v2326_v54 = vld [vmem:[%s2771_s14 + $0x19c] sm:$0xf0]  ;;  %v2035_v56 = vld [vmem:[%s2771_s14 + $0x1a0] sm:$0xf0]  ;;  %1199 = vmatpush.bf16.msra.mxu0 %v2066_v47  ;;  %1225 = vmatpush.bf16.msra.mxu2 %v2070_v51 }
  0x8a   : > { %v2225_v57 = vld [vmem:[%s2771_s14 + $0x300] sm:$0xf]  ;;  %v1059_v59 = vpack.c.b16 %v947_v52, %v947_v52  ;;  %v1060_v60 = vpack.c.b16 %v948_v53, %v948_v53  ;;  %v2034_v61 = vor.u32 %v2326_v54, %v2033_v50  ;;  %v2038_v62 = vor.u32 %v2322_v55, %v2035_v56  ;;  %v2370_v63 = vld [vmem:[%s2771_s14 + $0x304] sm:$0xf] }
  0x8b   : > { %v2374_v58 = vld [vmem:[%s2771_s14 + $0x31c] sm:$0xf0]  ;;  %v2227_v0 = vld [vmem:[%s2771_s14 + $0x320] sm:$0xf0] }
  0x8c   : > { %v2001_v1 = vld [vmem:[%s2771_s14 + $0x140] sm:$0xf]  ;;  %v2314_v3 = vld [vmem:[%s2771_s14 + $0x144] sm:$0xf]  ;;  %v1176_v5 = vsel %vm1174_vm0, %v1059_v59, 0  ;;  %v1179_v6 = vsel %vm1174_vm0, %v1060_v60, 0  ;;  %v2226_v7 = vor.u32 %v2374_v58, %v2225_v57  ;;  %v2230_v8 = vor.u32 %v2370_v63, %v2227_v0 }
  0x8d   : > { %v2318_v2 = vld [vmem:[%s2771_s14 + $0x15c] sm:$0xf0]  ;;  %v2003_v4 = vld [vmem:[%s2771_s14 + $0x160] sm:$0xf0]  ;;  %1214 = vmatpush.bf16.msra.mxu1 %v1176_v5  ;;  %1240 = vmatpush.bf16.msra.mxu3 %v1179_v6  ;;  %v950_v57 = vunpack.c.h.b16 %v617_v43  ;;  %v2073_v58 = vld [vmem:[%s2771_s14 + $0x1c8] sm:$0xf]  ;;  %v1061_v60 = vpack.c.b16 %v949_v44, %v949_v44 }
  0x8e   : > { %v2193_v9 = vld [vmem:[%s2771_s14 + $0x2c0] sm:$0xf]  ;;  %1200 = vmatpush.bf16.msra.mxu0 %v2034_v61  ;;  %1226 = vmatpush.bf16.msra.mxu2 %v2038_v62  ;;  %v2002_v11 = vor.u32 %v2318_v2, %v2001_v1  ;;  %v2006_v12 = vor.u32 %v2314_v3, %v2003_v4  ;;  %v2362_v13 = vld [vmem:[%s2771_s14 + $0x2c4] sm:$0xf]  ;;  %v2335_v59 = vld [vmem:[%s2771_s14 + $0x1e4] sm:$0xf0] }
  0x8f   : > { %v2366_v10 = vld [vmem:[%s2771_s14 + $0x2dc] sm:$0xf0]  ;;  %v2195_v14 = vld [vmem:[%s2771_s14 + $0x2e0] sm:$0xf0]  ;;  %v2074_v4 = vor.u32 %v2335_v59, %v2073_v58  ;;  %v2041_v6 = vld [vmem:[%s2771_s14 + $0x188] sm:$0xf] }
  0x90   : > { %v1969_v15 = vld [vmem:[%s2771_s14 + $0x100] sm:$0xf]  ;;  %v2306_v17 = vld [vmem:[%s2771_s14 + $0x104] sm:$0xf]  ;;  %v2194_v19 = vor.u32 %v2366_v10, %v2193_v9  ;;  %v2198_v20 = vor.u32 %v2362_v13, %v2195_v14  ;;  %v1182_v9 = vsel %vm1174_vm0, %v1061_v60, 0 }
  0x91   : > { %v2310_v16 = vld [vmem:[%s2771_s14 + $0x11c] sm:$0xf0]  ;;  %v1971_v18 = vld [vmem:[%s2771_s14 + $0x120] sm:$0xf0]  ;;  %1215 = vmatpush.bf16.msra.mxu1 %v2226_v7  ;;  %1241 = vmatpush.bf16.msra.mxu3 %v2230_v8  ;;  %v2327_v7 = vld [vmem:[%s2771_s14 + $0x1a4] sm:$0xf0]  ;;  %v1062_v8 = vpack.c.b16 %v950_v57, %v950_v57 }
  0x92   : > { %v2161_v21 = vld [vmem:[%s2771_s14 + $0x280] sm:$0xf]  ;;  %1201 = vmatpush.bf16.msra.mxu0 %v2002_v11  ;;  %1227 = vmatpush.bf16.msra.mxu2 %v2006_v12  ;;  %v1970_v23 = vor.u32 %v2310_v16, %v1969_v15  ;;  %v1974_v24 = vor.u32 %v2306_v17, %v1971_v18  ;;  %v2354_v25 = vld [vmem:[%s2771_s14 + $0x284] sm:$0xf]  ;;  %v2233_v10 = vld [vmem:[%s2771_s14 + $0x308] sm:$0xf]  ;;  %v2042_v18 = vor.u32 %v2327_v7, %v2041_v6 }
  0x93   : > { %v2358_v22 = vld [vmem:[%s2771_s14 + $0x29c] sm:$0xf0]  ;;  %v2163_v26 = vld [vmem:[%s2771_s14 + $0x2a0] sm:$0xf0]  ;;  %v2375_v11 = vld [vmem:[%s2771_s14 + $0x324] sm:$0xf0] }
  0x94   : > { %v1937_v27 = vld [vmem:[%s2771_s14 + $0xc0] sm:$0xf]  ;;  %v2298_v29 = vld [vmem:[%s2771_s14 + $0xc4] sm:$0xf]  ;;  %v2162_v31 = vor.u32 %v2358_v22, %v2161_v21  ;;  %v2166_v32 = vor.u32 %v2354_v25, %v2163_v26  ;;  %v2331_v12 = vld [vmem:[%s2771_s14 + $0x1cc] sm:$0xf] }
  0x95   : > { %v2302_v28 = vld [vmem:[%s2771_s14 + $0xdc] sm:$0xf0]  ;;  %v1939_v30 = vld [vmem:[%s2771_s14 + $0xe0] sm:$0xf0]  ;;  %1216 = vmatpush.bf16.msra.mxu1 %v2194_v19  ;;  %1242 = vmatpush.bf16.msra.mxu3 %v2198_v20  ;;  %v2075_v13 = vld [vmem:[%s2771_s14 + $0x1e8] sm:$0xf0]  ;;  %v2234_v19 = vor.u32 %v2375_v11, %v2233_v10 }
  0x96   : > { %v2129_v33 = vld [vmem:[%s2771_s14 + $0x240] sm:$0xf]  ;;  %v2346_v35 = vld [vmem:[%s2771_s14 + $0x244] sm:$0xf]  ;;  %1202 = vmatpush.bf16.msra.mxu0 %v1970_v23  ;;  %1228 = vmatpush.bf16.msra.mxu2 %v1974_v24  ;;  %v1938_v36 = vor.u32 %v2302_v28, %v1937_v27  ;;  %v1942_v37 = vor.u32 %v2298_v29, %v1939_v30  ;;  %v2009_v16 = vld [vmem:[%s2771_s14 + $0x148] sm:$0xf]  ;;  %v2078_v23 = vor.u32 %v2331_v12, %v2075_v13 }
  0x97   : > { %v2350_v34 = vld [vmem:[%s2771_s14 + $0x25c] sm:$0xf0]  ;;  %v2131_v38 = vld [vmem:[%s2771_s14 + $0x260] sm:$0xf0]  ;;  %v2319_v17 = vld [vmem:[%s2771_s14 + $0x164] sm:$0xf0] }
  0x98   : > { %v1905_v39 = vld [vmem:[%s2771_s14 + $0x80] sm:$0xf]  ;;  %v2290_v41 = vld [vmem:[%s2771_s14 + $0x84] sm:$0xf]  ;;  %v2130_v45 = vor.u32 %v2350_v34, %v2129_v33  ;;  %v2134_v46 = vor.u32 %v2346_v35, %v2131_v38  ;;  %v1185_v20 = vsel %vm1174_vm0, %v1062_v8, 0  ;;  %v2010_v29 = vor.u32 %v2319_v17, %v2009_v16  ;;  %v2887_v6 = vld [vmem:[%s2771_s14 + $0x350] sm:$0xff] }
  0x99   : > { %v2294_v40 = vld [vmem:[%s2771_s14 + $0x9c] sm:$0xf0]  ;;  %v1907_v42 = vld [vmem:[%s2771_s14 + $0xa0] sm:$0xf0]  ;;  %1217 = vmatpush.bf16.msra.mxu1 %v2162_v31  ;;  %1243 = vmatpush.bf16.msra.mxu3 %v2166_v32  ;;  %v2201_v21 = vld [vmem:[%s2771_s14 + $0x2c8] sm:$0xf] }
  0x9a   : > { %v2097_v47 = vld [vmem:[%s2771_s14 + $0x200] sm:$0xf]  ;;  %1203 = vmatpush.bf16.msra.mxu0 %v1938_v36  ;;  %1229 = vmatpush.bf16.msra.mxu2 %v1942_v37  ;;  %v1906_v49 = vor.u32 %v2294_v40, %v1905_v39  ;;  %v1910_v50 = vor.u32 %v2290_v41, %v1907_v42  ;;  %v2338_v51 = vld [vmem:[%s2771_s14 + $0x204] sm:$0xf]  ;;  %v2367_v22 = vld [vmem:[%s2771_s14 + $0x2e4] sm:$0xf0] }
  0x9b   : > { %v2342_v48 = vld [vmem:[%s2771_s14 + $0x21c] sm:$0xf0]  ;;  %v2099_v52 = vld [vmem:[%s2771_s14 + $0x220] sm:$0xf0]  ;;  %v2323_v24 = vld [vmem:[%s2771_s14 + $0x18c] sm:$0xf]  ;;  %v2202_v30 = vor.u32 %v2367_v22, %v2201_v21 }
  0x9c   : > { %v1873_v53 = vld [vmem:[%s2771_s14 + $0x40] sm:$0xf]  ;;  %v2282_v55 = vld [vmem:[%s2771_s14 + $0x44] sm:$0xf]  ;;  %v2098_v61 = vor.u32 %v2342_v48, %v2097_v47  ;;  %v2102_v62 = vor.u32 %v2338_v51, %v2099_v52  ;;  %v2043_v25 = vld [vmem:[%s2771_s14 + $0x1a8] sm:$0xf0] }
  0x9d   : > { %v2286_v54 = vld [vmem:[%s2771_s14 + $0x5c] sm:$0xf0]  ;;  %v1875_v56 = vld [vmem:[%s2771_s14 + $0x60] sm:$0xf0]  ;;  %1218 = vmatpush.bf16.msra.mxu1 %v2130_v45  ;;  %1244 = vmatpush.bf16.msra.mxu3 %v2134_v46  ;;  %v511_v26 = vld [vmem:[%s3212_s1] sm:$0xf]  ;;  %v2046_v33 = vor.u32 %v2323_v24, %v2043_v25 }
  0x9e   : > { %1204 = vmatpush.bf16.msra.mxu0 %v1906_v49  ;;  %1230 = vmatpush.bf16.msra.mxu2 %v1910_v50  ;;  %v1874_v63 = vor.u32 %v2286_v54, %v1873_v53  ;;  %v1878_v0 = vor.u32 %v2282_v55, %v1875_v56  ;;  %v1841_v1 = vld [vmem:[%s2771_s14] sm:$0xf]  ;;  %v2274_v3 = vld [vmem:[%s2771_s14 + $0x4] sm:$0xf]  ;;  %v2371_v27 = vld [vmem:[%s2771_s14 + $0x30c] sm:$0xf] }
  0x9f   : > { %v2278_v2 = vld [vmem:[%s2771_s14 + $0x1c] sm:$0xf0]  ;;  %v1843_v5 = vld [vmem:[%s2771_s14 + $0x20] sm:$0xf0]  ;;  %v2235_v28 = vld [vmem:[%s2771_s14 + $0x328] sm:$0xf0] }
  0xa0   : > { %v1842_v14 = vor.u32 %v2278_v2, %v1841_v1  ;;  %v1846_v15 = vor.u32 %v2274_v3, %v1843_v5  ;;  %627 = vst [vmem:[#allocation1] ss:$4 sm:$0xff] %v511_v26  ;;  %v1977_v31 = vld [vmem:[%s2771_s14 + $0x108] sm:$0xf]  ;;  %v2238_v34 = vor.u32 %v2371_v27, %v2235_v28  ;;  %v2315_v37 = vld [vmem:[%s2771_s14 + $0x14c] sm:$0xf] }
  0xa1   : > { %1219 = vmatpush.bf16.msra.mxu1 %v2098_v61  ;;  %1245 = vmatpush.bf16.msra.mxu3 %v2102_v62  ;;  %v2311_v32 = vld [vmem:[%s2771_s14 + $0x124] sm:$0xf0]  ;;  %v2011_v38 = vld [vmem:[%s2771_s14 + $0x168] sm:$0xf0]  ;;  %v2478_v3 = vmov 0  }
  0xa2   : > { %1205 = vmatpush.bf16.msra.mxu0 %v1874_v63  ;;  %1231 = vmatpush.bf16.msra.mxu2 %v1878_v0  ;;  %v2169_v35 = vld [vmem:[%s2771_s14 + $0x288] sm:$0xf]  ;;  %v2363_v39 = vld [vmem:[%s2771_s14 + $0x2cc] sm:$0xf]  ;;  %v1978_v43 = vor.u32 %v2311_v32, %v1977_v31  ;;  %v2014_v48 = vor.u32 %v2315_v37, %v2011_v38  ;;  %v2336_v5 = vld [vmem:[%s2771_s14 + $0x1ec] sm:$0xf0] }
  0xa3   : > { %v2359_v36 = vld [vmem:[%s2771_s14 + $0x2a4] sm:$0xf0]  ;;  %v2203_v40 = vld [vmem:[%s2771_s14 + $0x2e8] sm:$0xf0]  ;;  %2405 = vset.pattern.permute.xlu0 %v2478_v3  ;;  %v2332_v21 = vld [vmem:[%s2771_s14 + $0x1d4] sm:$0xf] }
  0xa4   : > { %v1945_v41 = vld [vmem:[%s2771_s14 + $0xc8] sm:$0xf]  ;;  %v2170_v44 = vor.u32 %v2359_v36, %v2169_v35  ;;  %v2307_v47 = vld [vmem:[%s2771_s14 + $0x10c] sm:$0xf]  ;;  %v2206_v49 = vor.u32 %v2363_v39, %v2203_v40  ;;  %v2083_v22 = vld [vmem:[%s2771_s14 + $0x1f0] sm:$0xf0]  ;;  %v952_v39 = vunpack.c.h.b16 %v2887_v6 }
  0xa5   : > { %1251 = vmatpush.bf16.msrb.mxu1 %v2074_v4  ;;  %1266 = vmatpush.bf16.msrb.mxu3 %v1182_v9  ;;  %v2303_v42 = vld [vmem:[%s2771_s14 + $0xe4] sm:$0xf0]  ;;  %v1979_v52 = vld [vmem:[%s2771_s14 + $0x128] sm:$0xf0]  ;;  %v2081_v4 = vld [vmem:[%s2771_s14 + $0x1d0] sm:$0xf] }
  0xa6   : > { %1206 = vmatpush.bf16.msra.mxu0 %v1842_v14  ;;  %1232 = vmatpush.bf16.msra.mxu2 %v1846_v15  ;;  %v2137_v45 = vld [vmem:[%s2771_s14 + $0x248] sm:$0xf]  ;;  %v2355_v53 = vld [vmem:[%s2771_s14 + $0x28c] sm:$0xf]  ;;  %v1946_v55 = vor.u32 %v2303_v42, %v1945_v41  ;;  %v1982_v59 = vor.u32 %v2307_v47, %v1979_v52  ;;  %v2082_v15 = vor.u32 %v2336_v5, %v2081_v4  ;;  %v620_v24 = vld [vmem:[%s3213_s2] sm:$0xf] }
  0xa7   : > { %v2351_v46 = vld [vmem:[%s2771_s14 + $0x264] sm:$0xf0]  ;;  %v2863_v50 = vld.sshfl [vmem:[#allocation1 + $0x8] sm:$0xff pattern:$0x73625140]  ;;  %623 = vperm.xlu0 %2405, %v620_v24   ;;  %v2941_v5 = vld [vmem:[%s2771_s14 + $0x358] sm:$0xff] }
  0xa8   : > { %v2865_v51 = vld.sshfl [vmem:[#allocation1] sm:$0xff pattern:$0x73625140]  ;;  %v2171_v54 = vld [vmem:[%s2771_s14 + $0x2a8] sm:$0xf0]  ;;  %2256 = vmatmul.msk.bf16.vlgmr.msra.gmra.mxu3 %vm1171_vm1, %v2863_v50  ;;  %2255 = vmatmul.msk.bf16.vlgmr.msra.gmra.mxu1 %vm1171_vm1, %v2863_v50  ;;  %v2138_v56 = vor.u32 %v2351_v46, %v2137_v45 }
  0xa9   : > { %1252 = vmatpush.bf16.msrb.mxu1 %v2042_v18  ;;  %1267 = vmatpush.bf16.msrb.mxu3 %v2234_v19  ;;  %v1913_v57 = vld [vmem:[%s2771_s14 + $0x88] sm:$0xf]  ;;  %v2174_v60 = vor.u32 %v2355_v53, %v2171_v54  ;;  %v2299_v63 = vld [vmem:[%s2771_s14 + $0xcc] sm:$0xf]  ;;  %v2049_v18 = vld [vmem:[%s2771_s14 + $0x190] sm:$0xf]  ;;  %v951_v19 = vunpack.c.l.b16 %v2887_v6  ;;  %v1064_v54 = vpack.c.b16 %v952_v39, %v952_v39 }
  0xaa   : > { %1277 = vmatpush.bf16.msrb.mxu0 %v2078_v23  ;;  %1292 = vmatpush.bf16.msrb.mxu2 %v1185_v20  ;;  %v2295_v58 = vld [vmem:[%s2771_s14 + $0xa4] sm:$0xf0]  ;;  %v1947_v0 = vld [vmem:[%s2771_s14 + $0xe8] sm:$0xf0]  ;;  %v2328_v20 = vld [vmem:[%s2771_s14 + $0x1ac] sm:$0xf0] }
  0xab   : > { %1233 = vmatmul.bf16.vlgmr.msra.gmra.mxu2 %v2865_v51  ;;  %1207 = vmatmul.bf16.vlgmr.msra.gmra.mxu0 %v2865_v51  ;;  %v2105_v61 = vld [vmem:[%s2771_s14 + $0x208] sm:$0xf]  ;;  %v2347_v1 = vld [vmem:[%s2771_s14 + $0x24c] sm:$0xf]  ;;  %v1914_v7 = vor.u32 %v2295_v58, %v1913_v57  ;;  %v1950_v10 = vor.u32 %v2299_v63, %v1947_v0  ;;  %v2320_v35 = vld [vmem:[%s2771_s14 + $0x16c] sm:$0xf0] }
  0xac   : > { %v2343_v62 = vld [vmem:[%s2771_s14 + $0x224] sm:$0xf0]  ;;  %v2139_v2 = vld [vmem:[%s2771_s14 + $0x268] sm:$0xf0]  ;;  %v2324_v36 = vld [vmem:[%s2771_s14 + $0x194] sm:$0xf] }
  0xad   : > { %1253 = vmatpush.bf16.msrb.mxu1 %v2010_v29  ;;  %1268 = vmatpush.bf16.msrb.mxu3 %v2202_v30  ;;  %v2106_v8 = vor.u32 %v2343_v62, %v2105_v61  ;;  %v1881_v9 = vld [vmem:[%s2771_s14 + $0x48] sm:$0xf]  ;;  %v2142_v11 = vor.u32 %v2347_v1, %v2139_v2  ;;  %v2291_v13 = vld [vmem:[%s2771_s14 + $0x8c] sm:$0xf]  ;;  %v2050_v29 = vor.u32 %v2328_v20, %v2049_v18  ;;  %v2051_v37 = vld [vmem:[%s2771_s14 + $0x1b0] sm:$0xf0] }
  0xae   : > { %1278 = vmatpush.bf16.msrb.mxu0 %v2046_v33  ;;  %1293 = vmatpush.bf16.msrb.mxu2 %v2238_v34  ;;  %v2287_v12 = vld [vmem:[%s2771_s14 + $0x64] sm:$0xf0]  ;;  %v1915_v14 = vld [vmem:[%s2771_s14 + $0xa8] sm:$0xf0]  ;;  %v2086_v30 = vor.u32 %v2332_v21, %v2083_v22  ;;  %v2017_v33 = vld [vmem:[%s2771_s14 + $0x150] sm:$0xf]  ;;  %v1063_v34 = vpack.c.b16 %v951_v19, %v951_v19  ;;  %v2054_v46 = vor.u32 %v2324_v36, %v2051_v37 }
  0xaf   : > { %v2339_v16 = vld [vmem:[%s2771_s14 + $0x20c] sm:$0xf]  ;;  %v1882_v23 = vor.u32 %v2287_v12, %v1881_v9  ;;  %v1918_v25 = vor.u32 %v2291_v13, %v1915_v14  ;;  %v1849_v27 = vld [vmem:[%s2771_s14 + $0x8] sm:$0xf]  ;;  %v2241_v47 = vld [vmem:[%s2771_s14 + $0x310] sm:$0xf] }
  0xb0   : > { %v2107_v17 = vld [vmem:[%s2771_s14 + $0x228] sm:$0xf0]  ;;  %v2279_v28 = vld [vmem:[%s2771_s14 + $0x24] sm:$0xf0]  ;;  %v1188_v45 = vsel %vm1174_vm0, %v1063_v34, 0  ;;  %v1191_v1 = vsel %vm1174_vm0, %v1064_v54, 0 }
  0xb1   : > { %1254 = vmatpush.bf16.msrb.mxu1 %v1978_v43  ;;  %1269 = vmatpush.bf16.msrb.mxu3 %v2170_v44  ;;  %v2110_v26 = vor.u32 %v2339_v16, %v2107_v17  ;;  %v2283_v31 = vld [vmem:[%s2771_s14 + $0x4c] sm:$0xf]  ;;  %v1850_v38 = vor.u32 %v2279_v28, %v1849_v27  ;;  %v1985_v43 = vld [vmem:[%s2771_s14 + $0x110] sm:$0xf]  ;;  %v2018_v44 = vor.u32 %v2320_v35, %v2017_v33  ;;  %v2316_v52 = vld [vmem:[%s2771_s14 + $0x154] sm:$0xf] }
  0xb2   : > { %1279 = vmatpush.bf16.msrb.mxu0 %v2014_v48  ;;  %1294 = vmatpush.bf16.msrb.mxu2 %v2206_v49  ;;  %v1883_v32 = vld [vmem:[%s2771_s14 + $0x68] sm:$0xf0]  ;;  %v2376_v48 = vld [vmem:[%s2771_s14 + $0x32c] sm:$0xf0]  ;;  %v2019_v53 = vld [vmem:[%s2771_s14 + $0x170] sm:$0xf0] }
  0xb3   : > { %v1886_v40 = vor.u32 %v2283_v31, %v1883_v32  ;;  %v2275_v41 = vld [vmem:[%s2771_s14 + $0xc] sm:$0xf]  ;;  %v2312_v49 = vld [vmem:[%s2771_s14 + $0x12c] sm:$0xf0]  ;;  %v2022_v58 = vor.u32 %v2316_v52, %v2019_v53  ;;  %v2308_v63 = vld [vmem:[%s2771_s14 + $0x114] sm:$0xf]  ;;  %v954_v53 = vunpack.c.h.b16 %v2941_v5 }
  0xb4   : > { %v1851_v42 = vld [vmem:[%s2771_s14 + $0x28] sm:$0xf0]  ;;  %v1986_v57 = vor.u32 %v2312_v49, %v1985_v43  ;;  %v2368_v61 = vld [vmem:[%s2771_s14 + $0x2ec] sm:$0xf0]  ;;  %v1987_v0 = vld [vmem:[%s2771_s14 + $0x130] sm:$0xf0] }
  0xb5   : > { %1255 = vmatpush.bf16.msrb.mxu1 %v1946_v55  ;;  %1270 = vmatpush.bf16.msrb.mxu3 %v2138_v56  ;;  %v1854_v55 = vor.u32 %v2275_v41, %v1851_v42  ;;  %v2242_v56 = vor.u32 %v2376_v48, %v2241_v47  ;;  %v2304_v62 = vld [vmem:[%s2771_s14 + $0xec] sm:$0xf0]  ;;  %v2372_v2 = vld [vmem:[%s2771_s14 + $0x314] sm:$0xf]  ;;  %v2089_v43 = vld [vmem:[%s2771_s14 + $0x1d8] sm:$0xf] }
  0xb6   : > { %1280 = vmatpush.bf16.msrb.mxu0 %v1982_v59  ;;  %1295 = vmatpush.bf16.msrb.mxu2 %v2174_v60  ;;  %v1953_v59 = vld [vmem:[%s2771_s14 + $0xd0] sm:$0xf]  ;;  %v2243_v3 = vld [vmem:[%s2771_s14 + $0x330] sm:$0xf0]  ;;  %v1408_v54 = vld [vmem:[%s2977_s24] sm:$0xff] }
  0xb7   : > { %v2209_v60 = vld [vmem:[%s2771_s14 + $0x2d0] sm:$0xf]  ;;  %v1954_v6 = vor.u32 %v2304_v62, %v1953_v59  ;;  %v2300_v13 = vld [vmem:[%s2771_s14 + $0xd4] sm:$0xf]  ;;  %1411 = vst [vmem:[#allocation1] ss:$4 sm:$0xff] %v1408_v54 }
  0xb8   : > { %v2210_v4 = vor.u32 %v2368_v61, %v2209_v60  ;;  %v2177_v9 = vld [vmem:[%s2771_s14 + $0x290] sm:$0xf]  ;;  %v1955_v14 = vld [vmem:[%s2771_s14 + $0xf0] sm:$0xf0]  ;;  %v2057_v59 = vld [vmem:[%s2771_s14 + $0x198] sm:$0xf] }
  0xb9   : > { %1256 = vmatpush.bf16.msrb.mxu1 %v1914_v7  ;;  %1271 = vmatpush.bf16.msrb.mxu3 %v2106_v8  ;;  %v1990_v7 = vor.u32 %v2308_v63, %v1987_v0  ;;  %v1921_v8 = vld [vmem:[%s2771_s14 + $0x90] sm:$0xf]  ;;  %v2211_v16 = vld [vmem:[%s2771_s14 + $0x2f0] sm:$0xf0]  ;;  %v1958_v19 = vor.u32 %v2300_v13, %v1955_v14  ;;  %v2329_v60 = vld [vmem:[%s2771_s14 + $0x1b4] sm:$0xf0] }
  0xba   : > { %1281 = vmatpush.bf16.msrb.mxu0 %v1950_v10  ;;  %1296 = vmatpush.bf16.msrb.mxu2 %v2142_v11  ;;  %v2360_v10 = vld [vmem:[%s2771_s14 + $0x2ac] sm:$0xf0]  ;;  %v2246_v11 = vor.u32 %v2372_v2, %v2243_v3  ;;  %v1923_v27 = vld [vmem:[%s2771_s14 + $0xb0] sm:$0xf0]  ;;  %v2249_v61 = vld [vmem:[%s2771_s14 + $0x318] sm:$0xf]  ;;  %v1066_v2 = vpack.c.b16 %v954_v53, %v954_v53 }
  0xbb   : > { %v2296_v12 = vld [vmem:[%s2771_s14 + $0xac] sm:$0xf0]  ;;  %v2178_v17 = vor.u32 %v2360_v10, %v2177_v9  ;;  %v2356_v28 = vld [vmem:[%s2771_s14 + $0x294] sm:$0xf]  ;;  %v2377_v62 = vld [vmem:[%s2771_s14 + $0x334] sm:$0xf0] }
  0xbc   : > { %2257 = vmatmul.msk.bf16.vlgmr.msrb.gmra.mxu3 %vm1171_vm1, %v2863_v50  ;;  %v1922_v18 = vor.u32 %v2296_v12, %v1921_v8  ;;  %v1889_v20 = vld [vmem:[%s2771_s14 + $0x50] sm:$0xf]  ;;  %v2284_v39 = vld [vmem:[%s2771_s14 + $0x54] sm:$0xf]  ;;  %v2333_v63 = vld [vmem:[%s2771_s14 + $0x1dc] sm:$0xf] }
  0xbd   : > { %1303 = vmatpush.bf16.msra.mxu3 %v2082_v15  ;;  %1257 = vmatpush.bf16.msrb.mxu1 %v1882_v23  ;;  %v2364_v15 = vld [vmem:[%s2771_s14 + $0x2d4] sm:$0xf]  ;;  %v2145_v21 = vld [vmem:[%s2771_s14 + $0x250] sm:$0xf]  ;;  %v953_v23 = vunpack.c.l.b16 %v2941_v5  ;;  %v2091_v0 = vld [vmem:[%s2771_s14 + $0x1f8] sm:$0xf0]  ;;  %v2250_v5 = vor.u32 %v2377_v62, %v2249_v61 }
  0xbe   : > { %1282 = vmatpush.bf16.msrb.mxu0 %v1918_v25  ;;  %1297 = vmatpush.bf16.msrb.mxu2 %v2110_v26  ;;  %v2352_v22 = vld [vmem:[%s2771_s14 + $0x26c] sm:$0xf0]  ;;  %v2214_v24 = vor.u32 %v2364_v15, %v2211_v16  ;;  %v2292_v26 = vld [vmem:[%s2771_s14 + $0x94] sm:$0xf]  ;;  %v2321_v8 = vld [vmem:[%s2771_s14 + $0x174] sm:$0xf0] }
  0xbf   : > { %v2288_v25 = vld [vmem:[%s2771_s14 + $0x6c] sm:$0xf0]  ;;  %v1926_v33 = vor.u32 %v2292_v26, %v1923_v27  ;;  %v1065_v37 = vpack.c.b16 %v953_v23, %v953_v23  ;;  %v2348_v41 = vld [vmem:[%s2771_s14 + $0x254] sm:$0xf]  ;;  %v2217_v9 = vld [vmem:[%s2771_s14 + $0x2d8] sm:$0xf] }
  0xc0   : > { %v1857_v31 = vld [vmem:[%s2771_s14 + $0x10] sm:$0xf]  ;;  %v1890_v32 = vor.u32 %v2288_v25, %v1889_v20  ;;  %v2147_v42 = vld [vmem:[%s2771_s14 + $0x270] sm:$0xf0]  ;;  %v2369_v10 = vld [vmem:[%s2771_s14 + $0x2f4] sm:$0xf0] }
  0xc1   : > { %1304 = vmatpush.bf16.msra.mxu3 %v2050_v29  ;;  %1258 = vmatpush.bf16.msrb.mxu1 %v1850_v38  ;;  %v2179_v29 = vld [vmem:[%s2771_s14 + $0x2b0] sm:$0xf0]  ;;  %v2280_v34 = vld [vmem:[%s2771_s14 + $0x2c] sm:$0xf0]  ;;  %v1194_v48 = vsel %vm1174_vm0, %v1065_v37, 0  ;;  %v1197_v13 = vsel %vm1174_vm0, %v1066_v2, 0 }
  0xc2   : > { %1329 = vmatpush.bf16.msra.mxu2 %v2086_v30  ;;  %1283 = vmatpush.bf16.msrb.mxu0 %v1886_v40  ;;  %v2146_v30 = vor.u32 %v2352_v22, %v2145_v21  ;;  %v2113_v35 = vld [vmem:[%s2771_s14 + $0x210] sm:$0xf]  ;;  %v2182_v38 = vor.u32 %v2356_v28, %v2179_v29  ;;  %v1891_v40 = vld [vmem:[%s2771_s14 + $0x70] sm:$0xf0]  ;;  %v2059_v12 = vld [vmem:[%s2771_s14 + $0x1b8] sm:$0xf0] }
  0xc3   : > { %2258 = vmatmul.msk.bf16.vlgmr.msrb.gmra.mxu2 %vm1171_vm1, %v2863_v50  ;;  %v2344_v36 = vld [vmem:[%s2771_s14 + $0x22c] sm:$0xf0]  ;;  %v1894_v47 = vor.u32 %v2284_v39, %v1891_v40  ;;  %v2276_v49 = vld [vmem:[%s2771_s14 + $0x14] sm:$0xf]  ;;  %v2373_v14 = vld [vmem:[%s2771_s14 + $0x31c] sm:$0xf] }
  0xc4   : > { %1259 = vmatmul.bf16.vlgmr.msrb.gmra.mxu1 %v2865_v51  ;;  %v1859_v52 = vld [vmem:[%s2771_s14 + $0x30] sm:$0xf0]  ;;  %v2251_v15 = vld [vmem:[%s2771_s14 + $0x338] sm:$0xf0]  ;;  %v2313_v20 = vld [vmem:[%s2771_s14 + $0x134] sm:$0xf0] }
  0xc5   : > { %1318 = vmatpush.bf16.msra.mxu1 %v1188_v45  ;;  %1305 = vmatpush.bf16.msra.mxu3 %v2018_v44  ;;  %v2337_v44 = vld [vmem:[%s2771_s14 + $0x1f4] sm:$0xf0]  ;;  %v2114_v45 = vor.u32 %v2344_v36, %v2113_v35  ;;  %v2254_v22 = vor.u32 %v2373_v14, %v2251_v15  ;;  %v2027_v25 = vld [vmem:[%s2771_s14 + $0x178] sm:$0xf0]  ;;  %v1409_v40 = vld [vmem:[%s2977_s24 + $0x8] sm:$0xff] }
  0xc6   : > { %1330 = vmatpush.bf16.msra.mxu2 %v2054_v46  ;;  %1284 = vmatpush.bf16.msrb.mxu0 %v1854_v55  ;;  %v1858_v46 = vor.u32 %v2280_v34, %v1857_v31  ;;  %v2150_v55 = vor.u32 %v2348_v41, %v2147_v42  ;;  %v2185_v21 = vld [vmem:[%s2771_s14 + $0x298] sm:$0xf]  ;;  %v2365_v26 = vld [vmem:[%s2771_s14 + $0x2dc] sm:$0xf]  ;;  %1414 = vst [vmem:[#allocation1 + $0x20] ss:$4 sm:$0xff] %v1409_v40 }
  0xc7   : > { %v2361_v23 = vld [vmem:[%s2771_s14 + $0x2b4] sm:$0xf0]  ;;  %v2219_v27 = vld [vmem:[%s2771_s14 + $0x2f8] sm:$0xf0] }
  0xc8   : > { %v2186_v29 = vor.u32 %v2361_v23, %v2185_v21  ;;  %v1961_v31 = vld [vmem:[%s2771_s14 + $0xd8] sm:$0xf]  ;;  %v2222_v34 = vor.u32 %v2365_v26, %v2219_v27  ;;  %v2309_v36 = vld [vmem:[%s2771_s14 + $0x11c] sm:$0xf] }
  0xc9   : > { %1319 = vmatpush.bf16.msra.mxu1 %v2242_v56  ;;  %1306 = vmatpush.bf16.msra.mxu3 %v1986_v57  ;;  %v2090_v56 = vor.u32 %v2337_v44, %v2089_v43  ;;  %v2340_v57 = vld [vmem:[%s2771_s14 + $0x214] sm:$0xf]  ;;  %v2353_v35 = vld [vmem:[%s2771_s14 + $0x274] sm:$0xf0]  ;;  %v1995_v37 = vld [vmem:[%s2771_s14 + $0x138] sm:$0xf0] }
  0xca   : > { %1331 = vmatpush.bf16.msra.mxu2 %v2022_v58  ;;  %1344 = vmatpush.bf16.msra.mxu0 %v1191_v1  ;;  %v2115_v58 = vld [vmem:[%s2771_s14 + $0x230] sm:$0xf0]  ;;  %v1862_v1 = vor.u32 %v2276_v49, %v1859_v52  ;;  %v2187_v39 = vld [vmem:[%s2771_s14 + $0x2b8] sm:$0xf0]  ;;  %v1998_v43 = vor.u32 %v2309_v36, %v1995_v37  ;;  %v1929_v44 = vld [vmem:[%s2771_s14 + $0x98] sm:$0xf] }
  0xcb   : > { %1285 = vmatmul.bf16.vlgmr.msrb.gmra.mxu0 %v2865_v51  ;;  %v2118_v3 = vor.u32 %v2340_v57, %v2115_v58  ;;  %v2301_v49 = vld [vmem:[%s2771_s14 + $0xdc] sm:$0xf] }
  0xcc   : > { %v1963_v52 = vld [vmem:[%s2771_s14 + $0xf8] sm:$0xf0] }
  0xcd   : > { %1320 = vmatpush.bf16.msra.mxu1 %v2210_v4  ;;  %1307 = vmatpush.bf16.msra.mxu3 %v1954_v6  ;;  %v2058_v4 = vor.u32 %v2329_v60, %v2057_v59  ;;  %v2094_v6 = vor.u32 %v2333_v63, %v2091_v0  ;;  %v2349_v53 = vld [vmem:[%s2771_s14 + $0x25c] sm:$0xf]  ;;  %v1966_v58 = vor.u32 %v2301_v49, %v1963_v52  ;;  %v1897_v59 = vld [vmem:[%s2771_s14 + $0x58] sm:$0xf] }
  0xce   : > { %1332 = vmatpush.bf16.msra.mxu2 %v1990_v7  ;;  %1345 = vmatpush.bf16.msra.mxu0 %v2246_v11  ;;  %v2025_v7 = vld [vmem:[%s2771_s14 + $0x158] sm:$0xf]  ;;  %v2325_v11 = vld [vmem:[%s2771_s14 + $0x19c] sm:$0xf] }
  0xcf   : > { %v2026_v16 = vor.u32 %v2321_v8, %v2025_v7  ;;  %v2155_v54 = vld [vmem:[%s2771_s14 + $0x278] sm:$0xf0]  ;;  %v2289_v60 = vld [vmem:[%s2771_s14 + $0x74] sm:$0xf0] }
  0xd0   : > { %v2158_v61 = vor.u32 %v2349_v53, %v2155_v54  ;;  %v2293_v62 = vld [vmem:[%s2771_s14 + $0x9c] sm:$0xf]  ;;  %v2281_v7 = vld [vmem:[%s2771_s14 + $0x34] sm:$0xf0] }
  0xd1   : > { %1321 = vmatpush.bf16.msra.mxu1 %v2178_v17  ;;  %1308 = vmatpush.bf16.msra.mxu3 %v1922_v18  ;;  %v2218_v17 = vor.u32 %v2369_v10, %v2217_v9  ;;  %v2062_v18 = vor.u32 %v2325_v11, %v2059_v12  ;;  %v1931_v63 = vld [vmem:[%s2771_s14 + $0xb8] sm:$0xf0]  ;;  %v1417_v8 = vld.sshfl [vmem:[#allocation1 + $0x10] sm:$0xff pattern:$0x73625140] }
  0xd2   : > { %1333 = vmatpush.bf16.msra.mxu2 %v1958_v19  ;;  %1346 = vmatpush.bf16.msra.mxu0 %v2214_v24  ;;  %v1993_v19 = vld [vmem:[%s2771_s14 + $0x118] sm:$0xf]  ;;  %v2317_v24 = vld [vmem:[%s2771_s14 + $0x15c] sm:$0xf]  ;;  %v1432_v15 = vsel %vm1427_vm2, %v1417_v8, 0 }
  0xd3   : > { %v1994_v28 = vor.u32 %v2313_v20, %v1993_v19  ;;  %v2341_v0 = vld [vmem:[%s2771_s14 + $0x21c] sm:$0xf]  ;;  %v1420_v21 = vld.sshfl [vmem:[#allocation1 + $0x28] sm:$0xff pattern:$0x73625140] }
  0xd4   : > { %v2285_v10 = vld [vmem:[%s2771_s14 + $0x5c] sm:$0xf]  ;;  %v1438_v26 = vsel %vm1427_vm2, %v1420_v21, 0 }
  0xd5   : > { %1322 = vmatpush.bf16.msra.mxu1 %v2146_v30  ;;  %1309 = vmatpush.bf16.msra.mxu3 %v1890_v32  ;;  %v2030_v30 = vor.u32 %v2317_v24, %v2027_v25  ;;  %v2305_v32 = vld [vmem:[%s2771_s14 + $0xf4] sm:$0xf0]  ;;  %v1899_v11 = vld [vmem:[%s2771_s14 + $0x78] sm:$0xf0] }
  0xd6   : > { %1334 = vmatpush.bf16.msra.mxu2 %v1926_v33  ;;  %1347 = vmatpush.bf16.msra.mxu0 %v2182_v38  ;;  %v2153_v33 = vld [vmem:[%s2771_s14 + $0x258] sm:$0xf]  ;;  %v2357_v38 = vld [vmem:[%s2771_s14 + $0x29c] sm:$0xf]  ;;  %v1962_v41 = vor.u32 %v2305_v32, %v1961_v31 }
  0xd7   : > { %v2154_v42 = vor.u32 %v2353_v35, %v2153_v33  ;;  %v2277_v19 = vld [vmem:[%s2771_s14 + $0x1c] sm:$0xf]  ;;  %v1418_v24 = vld.sshfl [vmem:[#allocation1 + $0x18] sm:$0xff pattern:$0x73625140] }
  0xd8   : > { %v1867_v20 = vld [vmem:[%s2771_s14 + $0x38] sm:$0xf0]  ;;  %v1434_v27 = vsel %vm1427_vm2, %v1418_v24, 0 }
  0xd9   : > { %1323 = vmatpush.bf16.msra.mxu1 %v2114_v45  ;;  %1310 = vmatpush.bf16.msra.mxu3 %v1858_v46  ;;  %v2297_v45 = vld [vmem:[%s2771_s14 + $0xb4] sm:$0xf0]  ;;  %v1870_v25 = vor.u32 %v2277_v19, %v1867_v20 }
  0xda   : > { %1335 = vmatpush.bf16.msra.mxu2 %v1894_v47  ;;  %1348 = vmatpush.bf16.msra.mxu0 %v2150_v55  ;;  %v2121_v46 = vld [vmem:[%s2771_s14 + $0x218] sm:$0xf]  ;;  %v2190_v47 = vor.u32 %v2357_v38, %v2187_v39  ;;  %v1930_v55 = vor.u32 %v2297_v45, %v1929_v44 }
  0xdc   : > { %2259 = vmatmul.msk.bf16.vlgmr.msra.gmra.mxu1 %vm1171_vm1, %v2863_v50  ;;  %1311 = vmatmul.bf16.vlgmr.msra.gmra.mxu3 %v2865_v51 }
  0xdd   : > { %1355 = vmatpush.bf16.msrb.mxu1 %v2090_v56  ;;  %1370 = vmatpush.bf16.msrb.mxu3 %v1194_v48  ;;  %v2345_v48 = vld [vmem:[%s2771_s14 + $0x234] sm:$0xf0] }
  0xde   : > { %1336 = vmatpush.bf16.msra.mxu2 %v1862_v1  ;;  %1349 = vmatpush.bf16.msra.mxu0 %v2118_v3  ;;  %v1415_v56 = vld.sshfl [vmem:[#allocation1] sm:$0xff pattern:$0x73625140]  ;;  %v2122_v57 = vor.u32 %v2345_v48, %v2121_v46 }
  0xdf   : > { %v2123_v1 = vld [vmem:[%s2771_s14 + $0x238] sm:$0xf0]  ;;  %v1428_v2 = vsel %vm1427_vm2, %v1415_v56, 0 }
  0xe0   : > { %v1419_v3 = vld.sshfl [vmem:[#allocation1 + $0x20] sm:$0xff pattern:$0x73625140]  ;;  %v2126_v9 = vor.u32 %v2341_v0, %v2123_v1 }
  0xe1   : > { %1356 = vmatpush.bf16.msrb.mxu1 %v2058_v4  ;;  %1371 = vmatpush.bf16.msrb.mxu3 %v2250_v5  ;;  %v1898_v4 = vor.u32 %v2289_v60, %v1897_v59  ;;  %v1865_v5 = vld [vmem:[%s2771_s14 + $0x18] sm:$0xf]  ;;  %v1436_v12 = vsel %vm1427_vm2, %v1419_v3, 0 }
  0xe2   : > { %1381 = vmatpush.bf16.msrb.mxu0 %v2094_v6  ;;  %1396 = vmatpush.bf16.msrb.mxu2 %v1197_v13  ;;  %v1934_v6 = vor.u32 %v2293_v62, %v1931_v63  ;;  %v1416_v13 = vld.sshfl [vmem:[#allocation1 + $0x8] sm:$0xff pattern:$0x73625140]  ;;  %v1866_v14 = vor.u32 %v2281_v7, %v1865_v5 }
  0xe3   : > { %1337 = vmatmul.bf16.vlgmr.msra.gmra.mxu2 %v2865_v51  ;;  %2260 = vmatmul.msk.bf16.vlgmr.msra.gmra.mxu0 %vm1171_vm1, %v2863_v50 }
  0xe5   : > { %1357 = vmatpush.bf16.msrb.mxu1 %v2026_v16  ;;  %1372 = vmatpush.bf16.msrb.mxu3 %v2218_v17  ;;  %v1421_v16 = vld.sshfl [vmem:[#allocation1 + $0x30] sm:$0xff pattern:$0x73625140]  ;;  %v1556_v17 = vld [vmem:[%s3216_s5] sm:$0xf] }
  0xe6   : > { %1382 = vmatpush.bf16.msrb.mxu0 %v2062_v18  ;;  %1397 = vmatpush.bf16.msrb.mxu2 %v2254_v22  ;;  %v1902_v18 = vor.u32 %v2285_v10, %v1899_v11  ;;  %v1430_v22 = vsel %vm1427_vm2, %v1416_v13, 0  ;;  %v1440_v23 = vsel %vm1427_vm2, %v1421_v16, 0 }
  0xe7   : > { %1559 = vperm.xlu0 %2405, %v1556_v17  }
  0xe9   : > { %1358 = vmatpush.bf16.msrb.mxu1 %v1994_v28  ;;  %1373 = vmatpush.bf16.msrb.mxu3 %v2186_v29  ;;  %v1422_v28 = vld.sshfl [vmem:[#allocation1 + $0x38] sm:$0xff pattern:$0x73625140] }
  0xea   : > { %1383 = vmatpush.bf16.msrb.mxu0 %v2030_v30  ;;  %1398 = vmatpush.bf16.msrb.mxu2 %v2222_v34  ;;  %v1442_v29 = vsel %vm1427_vm2, %v1422_v28, 0 }
  0xed   : > { %1359 = vmatpush.bf16.msrb.mxu1 %v1962_v41  ;;  %1374 = vmatpush.bf16.msrb.mxu3 %v2154_v42 }
  0xee   : > { %1384 = vmatpush.bf16.msrb.mxu0 %v1998_v43  ;;  %1399 = vmatpush.bf16.msrb.mxu2 %v2190_v47 }
  0xf1   : > { %1360 = vmatpush.bf16.msrb.mxu1 %v1930_v55  ;;  %1375 = vmatpush.bf16.msrb.mxu3 %v2122_v57 }
  0xf2   : > { %1385 = vmatpush.bf16.msrb.mxu0 %v1966_v58  ;;  %1400 = vmatpush.bf16.msrb.mxu2 %v2158_v61 }
  0xf4   : > { %2261 = vmatmul.msk.bf16.vlgmr.msrb.gmra.mxu3 %vm1171_vm1, %v2863_v50 }
  0xf5   : > { %1451 = vmatpush.bf16.msra.mxu3 %v1428_v2  ;;  %1361 = vmatpush.bf16.msrb.mxu1 %v1898_v4 }
  0xf6   : > { %1386 = vmatpush.bf16.msrb.mxu0 %v1934_v6  ;;  %1401 = vmatpush.bf16.msrb.mxu2 %v2126_v9 }
  0xf9   : > { %1503 = vmatpush.bf16.msrb.mxu3 %v1436_v12  ;;  %1362 = vmatpush.bf16.msrb.mxu1 %v1866_v14 }
  0xfa   : > { %1477 = vmatpush.bf16.msra.mxu2 %v1432_v15  ;;  %1387 = vmatpush.bf16.msrb.mxu0 %v1902_v18 }
  0xfb   : > { %2262 = vmatmul.msk.bf16.vlgmr.msrb.gmra.mxu2 %vm1171_vm1, %v2863_v50  ;;  %v1407_v50 = vld [vmem:[%s3215_s4] sm:$0x3] }
  0xfc   : > { %1363 = vmatmul.bf16.vlgmr.msrb.gmra.mxu1 %v2865_v51 }
  0xfd   : > { %1464 = vmatpush.bf16.msra.mxu1 %v1430_v22 }
  0xfe   : > { %1529 = vmatpush.bf16.msrb.mxu2 %v1440_v23  ;;  %1388 = vmatpush.bf16.msrb.mxu0 %v1870_v25 }
 0x101   : > { %1516 = vmatpush.bf16.msrb.mxu1 %v1438_v26  ;;  %1389 = vmatmul.bf16.vlgmr.msrb.gmra.mxu0 %v2865_v51 }
 0x102   : > { %1490 = vmatpush.bf16.msra.mxu0 %v1434_v27 }
 0x104   : > { %2263 = vmatmul.msk.bf16.vlgmr.msra.gmra.mxu3 %vm1423_vm3, %v1407_v50 }
 0x106   : > { %1542 = vmatpush.bf16.msrb.mxu0 %v1442_v29 }
 0x10b   : > { %2265 = vmatmul.msk.bf16.vlgmr.msra.gmra.mxu2 %vm1423_vm3, %v1407_v50 }
 0x10c   : > { %2264 = vmatmul.msk.bf16.vlgmr.msra.gmra.mxu1 %vm1423_vm3, %v1407_v50 }
 0x111   : > { %2266 = vmatmul.msk.bf16.vlgmr.msra.gmra.mxu0 %vm1423_vm3, %v1407_v50 }
 0x114   : > { %2267 = vmatmul.msk.bf16.vlgmr.msrb.gmra.mxu3 %vm1423_vm3, %v1407_v50 }
 0x119   : > { %v3067_v32 = vpop.permute.xlu0 %623 }
 0x11b   : > { %2269 = vmatmul.msk.bf16.vlgmr.msrb.gmra.mxu2 %vm1423_vm3, %v1407_v50 }
 0x11c   : > { %2268 = vmatmul.msk.bf16.vlgmr.msrb.gmra.mxu1 %vm1423_vm3, %v1407_v50 }
 0x121   : > { %2270 = vmatmul.msk.bf16.vlgmr.msrb.gmra.mxu0 %vm1423_vm3, %v1407_v50 }
 0x125   : > { %v1221_v31 = vpop.f32.mrf.mxu1 }
 0x128   : > { %v1208_v30 = vpop.f32.mrf.mxu0 }
 0x129   : > { %v1209_v51 = vadd.f32 %v1208_v30, %v3067_v32 }
 0x12b   : > { %v1222_v33 = vadd.f32 %v1221_v31, %v1209_v51  ;;  %v1247_v35 = vpop.f32.mrf.mxu3 }
 0x12d   : > { %v1223_v38 = vpop.f32.mrf.mxu1 }
 0x12e   : > { %v1234_v34 = vpop.f32.mrf.mxu2 }
 0x12f   : > { %v1235_v36 = vadd.f32 %v1234_v34, %v3067_v32 }
 0x130   : > { %v1210_v37 = vpop.f32.mrf.mxu0 }
 0x131   : > { %v1248_v39 = vadd.f32 %v1247_v35, %v1235_v36 }
 0x133   : > { %v1249_v41 = vpop.f32.mrf.mxu3 }
 0x136   : > { %v1236_v40 = vpop.f32.mrf.mxu2 }
 0x13f   : > { %v1273_v44 = vpop.f32.mrf.mxu3 }
 0x141   : > { %v1260_v42 = vpop.f32.mrf.mxu1 }
 0x142   : > { %v1261_v43 = vadd.f32 %v1260_v42, %v3067_v32 }
 0x144   : > { %v1274_v45 = vadd.f32 %v1273_v44, %v1261_v43 }
 0x146   : > { %v1299_v46 = vpop.f32.mrf.mxu2 }
 0x147   : > { %v1275_v49 = vpop.f32.mrf.mxu3 }
 0x148   : > { %v1286_v47 = vpop.f32.mrf.mxu0 }
 0x149   : > { %v1262_v48 = vpop.f32.mrf.mxu1  ;;  %v1287_v8 = vadd.f32 %v1286_v47, %v3067_v32 }
 0x14b   : > { %v1300_v14 = vadd.f32 %v1299_v46, %v1287_v8 }
 0x14e   : > { %v1301_v52 = vpop.f32.mrf.mxu2 }
 0x150   : > { %v1288_v53 = vpop.f32.mrf.mxu0 }
 0x159   : > { %v1325_v54 = vpop.f32.mrf.mxu1  ;;  %v3076_v7 = vpop.permute.xlu0 %1559 }
 0x15f   : > { %v1312_v56 = vpop.f32.mrf.mxu3 }
 0x160   : > { %v1351_v55 = vpop.f32.mrf.mxu0  ;;  %v1313_v50 = vadd.f32 %v1312_v56, %v3067_v32 }
 0x161   : > { %v1327_v57 = vpop.f32.mrf.mxu1 }
 0x162   : > { %v1326_v38 = vadd.f32 %v1325_v54, %v1313_v50 }
 0x166   : > { %v1338_v58 = vpop.f32.mrf.mxu2 }
 0x167   : > { %v1314_v60 = vpop.f32.mrf.mxu3  ;;  %v1339_v51 = vadd.f32 %v1338_v58, %v3067_v32 }
 0x168   : > { %v1353_v59 = vpop.f32.mrf.mxu0 }
 0x169   : > { %v1352_v43 = vadd.f32 %v1351_v55, %v1339_v51 }
 0x16e   : > { %v1340_v61 = vpop.f32.mrf.mxu2 }
 0x177   : > { %v3072_v62 = vpop.f32.mrf.mxu3 }
 0x179   : > { %v1364_v63 = vpop.f32.mrf.mxu1 }
 0x17a   : > { %v1365_v41 = vadd.f32 %v1364_v63, %v3067_v32 }
 0x17c   : > { %v1378_v59 = vadd.f32 %v3072_v62, %v1365_v41 }
 0x17e   : > { %v3074_v0 = vpop.f32.mrf.mxu2  ;;  %v1390_v1 = vpop.f32.mrf.mxu0 }
 0x17f   : > { %v1379_v2 = vpop.f32.mrf.mxu3  ;;  %v1391_v46 = vadd.f32 %v1390_v1, %v3067_v32 }
 0x181   : > { %v1366_v3 = vpop.f32.mrf.mxu1  ;;  %v1404_v1 = vadd.f32 %v3074_v0, %v1391_v46 }
 0x186   : > { %v1405_v4 = vpop.f32.mrf.mxu2  ;;  %v1392_v5 = vpop.f32.mrf.mxu0 }
 0x187   : > { %v1453_v6 = vpop.f32.mrf.mxu3 }
 0x188   : > { %v1548_v9 = vadd.f32 %v1453_v6, %v1222_v33 }
 0x189   : > { %v1466_v10 = vpop.f32.mrf.mxu1 }
 0x18a   : > { %v1549_v11 = vadd.f32 %v1466_v10, %v1248_v39  ;;  %v3080_v12 = vadd.f32 %v3076_v7, %v1548_v9 }
 0x18c   : > { %v3083_v13 = vadd.f32 %v3076_v7, %v1549_v11  ;;  %v1594_v15 = vand.u32 2147483647, %v3080_v12  ;;  %v1570_v61 = vmax.f32 %v3080_v12, 0.0  ;;  %vm1578_vm4 = vcmp.ne.f32.partialorder %v3080_v12, %v3080_v12 }
 0x18e   : > { %v1479_v16 = vpop.f32.mrf.mxu2  ;;  %v1595_v17 = vand.u32 2147483647, %v3083_v13  ;;  %v1492_v19 = vpop.f32.mrf.mxu0  ;;  %v1602_v20 = vsub.f32 0.0, %v1594_v15  ;;  %v1571_v32 = vmax.f32 %v3083_v13, 0.0  ;;  %vm1579_vm6 = vcmp.ne.f32.partialorder %v3083_v13, %v3083_v13 }
 0x18f   : > { %v1550_v18 = vadd.f32 %v1479_v16, %v1274_v45  ;;  %v1551_v21 = vadd.f32 %v1492_v19, %v1300_v14  ;;  %v1455_v24 = vpop.f32.mrf.mxu3 }
 0x190   : > { %v1603_v22 = vsub.f32 0.0, %v1595_v17  ;;  %v1610_v25 = vmul.f32 1.442695, %v1602_v20 }
 0x191   : > { %v3088_v23 = vadd.f32 %v3076_v7, %v1550_v18  ;;  %v3091_v26 = vadd.f32 %v3076_v7, %v1551_v21  ;;  %v1468_v27 = vpop.f32.mrf.mxu1 }
 0x192   : > { %v1612_v28 = vmul.f32 1.442695, %v1603_v22  ;;  %2406 = vpow2.f32 %v1610_v25 }
 0x193   : > { %v1596_v29 = vand.u32 2147483647, %v3088_v23  ;;  %v1597_v30 = vand.u32 2147483647, %v3091_v26  ;;  %v1572_v4 = vmax.f32 %v3088_v23, 0.0  ;;  %vm1580_vm10 = vcmp.ne.f32.partialorder %v3088_v23, %v3088_v23 }
 0x194   : > { %2408 = vpow2.f32 %v1612_v28  ;;  %vm1581_vm11 = vcmp.ne.f32.partialorder %v3091_v26, %v3091_v26 }
 0x195   : > { %v1604_v31 = vsub.f32 0.0, %v1596_v29  ;;  %v1605_v33 = vsub.f32 0.0, %v1597_v30 }
 0x196   : > { %v1481_v34 = vpop.f32.mrf.mxu2  ;;  %v1494_v36 = vpop.f32.mrf.mxu0 }
 0x197   : > { %v1614_v35 = vmul.f32 1.442695, %v1604_v31  ;;  %v1616_v37 = vmul.f32 1.442695, %v1605_v33  ;;  %v1505_v39 = vpop.f32.mrf.mxu3 }
 0x198   : > { %v2407_v40 = vpop.eup %2406  ;;  %v1552_v42 = vadd.f32 %v1505_v39, %v1326_v38  ;;  %v1573_v38 = vmax.f32 %v3091_v26, 0.0 }
 0x199   : > { %2410 = vpow2.f32 %v1614_v35  ;;  %v1518_v44 = vpop.f32.mrf.mxu1  ;;  %v1626_v47 = vadd.f32 1.0, %v2407_v40  ;;  %v1629_v48 = vmul.f32 -0.5, %v2407_v40  ;;  %v1632_v54 = vand.u32 2147483647, %v2407_v40 }
 0x19a   : > { %2412 = vpow2.f32 %v1616_v37  ;;  %v2409_v45 = vpop.eup %2408  ;;  %v3100_v52 = vadd.f32 %v3076_v7, %v1552_v42  ;;  %v1553_v53 = vadd.f32 %v1518_v44, %v1352_v43 }
 0x19b   : > { %v1635_v49 = vadd.f32 1.0, %v2409_v45  ;;  %2414 = vlog2.f32 %v1626_v47  ;;  %v1638_v56 = vmul.f32 -0.5, %v2409_v45  ;;  %v1630_v57 = vadd.f32 1.0, %v1629_v48 }
 0x19c   : > { %v1641_v58 = vand.u32 2147483647, %v2409_v45  ;;  %v1598_v63 = vand.u32 2147483647, %v3100_v52  ;;  %v3111_v62 = vadd.f32 %v3076_v7, %v1553_v53  ;;  %vm3113_vm5 = vcmp.lt.f32.partialorder %v1632_v54, 0.0004427343 }
 0x19d   : > { %2416 = vlog2.f32 %v1635_v49  ;;  %v1639_v0 = vadd.f32 1.0, %v1638_v56  ;;  %v1631_v14 = vmul.f32 %v2407_v40, %v1630_v57  ;;  %vm1582_vm13 = vcmp.ne.f32.partialorder %v3100_v52, %v3100_v52 }
 0x19e   : > { %v1531_v55 = vpop.f32.mrf.mxu2  ;;  %v1544_v2 = vpop.f32.mrf.mxu0  ;;  %v1606_v10 = vsub.f32 0.0, %v1598_v63  ;;  %vm3119_vm7 = vcmp.lt.f32.partialorder %v1641_v58, 0.0004427343  ;;  %v1599_v27 = vand.u32 2147483647, %v3111_v62  ;;  %vm1583_vm15 = vcmp.ne.f32.partialorder %v3111_v62, %v3111_v62 }
 0x19f   : > { %v2411_v60 = vpop.eup %2410  ;;  %v1507_v11 = vpop.f32.mrf.mxu3  ;;  %v1554_v28 = vadd.f32 %v1531_v55, %v1378_v59  ;;  %v1640_v50 = vmul.f32 %v2409_v45, %v1639_v0  ;;  %v1555_v30 = vadd.f32 %v1544_v2, %v1404_v1 }
 0x1a0   : > { %v2413_v3 = vpop.eup %2412  ;;  %v1644_v5 = vadd.f32 1.0, %v2411_v60  ;;  %v1647_v6 = vmul.f32 -0.5, %v2411_v60  ;;  %v1650_v19 = vand.u32 2147483647, %v2411_v60  ;;  %v1618_v21 = vmul.f32 1.442695, %v1606_v10 }
 0x1a1   : > { %v1653_v9 = vadd.f32 1.0, %v2413_v3  ;;  %v1656_v16 = vmul.f32 -0.5, %v2413_v3  ;;  %v1520_v17 = vpop.f32.mrf.mxu1  ;;  %v2415_v18 = vpop.eup %2414  ;;  %v1659_v20 = vand.u32 2147483647, %v2413_v3  ;;  %v1607_v33 = vsub.f32 0.0, %v1599_v27 }
 0x1a2   : > { %2418 = vlog2.f32 %v1644_v5  ;;  %v1628_v24 = vmul.f32 0.6931472, %v2415_v18  ;;  %v1648_v25 = vadd.f32 1.0, %v1647_v6  ;;  %v3127_v34 = vadd.f32 %v3076_v7, %v1554_v28 }
 0x1a3   : > { %2420 = vlog2.f32 %v1653_v9  ;;  %v2417_v22 = vpop.eup %2416  ;;  %v1657_v51 = vadd.f32 1.0, %v1656_v16  ;;  %v3133_v39 = vadd.f32 %v3076_v7, %v1555_v30  ;;  %vm3135_vm8 = vcmp.lt.f32.partialorder %v1650_v19, 0.0004427343 }
 0x1a4   : > { %v1637_v29 = vmul.f32 0.6931472, %v2417_v22  ;;  %2422 = vpow2.f32 %v1618_v21  ;;  %v1634_v31 = vsel %vm3113_vm5, %v1631_v14, %v1628_v24  ;;  %v1649_v43 = vmul.f32 %v2411_v60, %v1648_v25 }
 0x1a5   : > { %v1698_v36 = vadd.f32 %v1634_v31, %v1570_v61  ;;  %vm3139_vm9 = vcmp.lt.f32.partialorder %v1659_v20, 0.0004427343  ;;  %v1620_v48 = vmul.f32 1.442695, %v1607_v33  ;;  %v1600_v49 = vand.u32 2147483647, %v3127_v34 }
 0x1a6   : > { %v1533_v35 = vpop.f32.mrf.mxu2  ;;  %v1643_v37 = vsel %vm3119_vm7, %v1640_v50, %v1637_v29  ;;  %v1546_v40 = vpop.f32.mrf.mxu0  ;;  %v1658_v56 = vmul.f32 %v2413_v3, %v1657_v51  ;;  %v1601_v55 = vand.u32 2147483647, %v3133_v39  ;;  %vm1584_vm3 = vcmp.ne.f32.partialorder %v3127_v34, %v3127_v34 }
 0x1a7   : > { %v1699_v42 = vadd.f32 %v1643_v37, %v1571_v32  ;;  %v1706_v47 = vsel %vm1578_vm4, %v3080_v12, %v1698_v36  ;;  %v1608_v59 = vsub.f32 0.0, %v1600_v49  ;;  %vm1585_vm4 = vcmp.ne.f32.partialorder %v3133_v39, %v3133_v39 }
 0x1a8   : > { %v2419_v41 = vpop.eup %2418  ;;  %2424 = vtanh.f32 %v1706_v47  ;;  %v1609_v5 = vsub.f32 0.0, %v1601_v55 }
 0x1a9   : > { %v2421_v46 = vpop.eup %2420  ;;  %v1646_v7 = vmul.f32 0.6931472, %v2419_v41  ;;  %v1707_v53 = vsel %vm1579_vm6, %v3083_v13, %v1699_v42  ;;  %v1622_v1 = vmul.f32 1.442695, %v1608_v59 }
 0x1aa   : > { %v1655_v54 = vmul.f32 0.6931472, %v2421_v46  ;;  %v2423_v57 = vpop.eup %2422  ;;  %2426 = vtanh.f32 %v1707_v53  ;;  %v1624_v8 = vmul.f32 1.442695, %v1609_v5 }
 0x1ab   : > { %v1652_v58 = vsel %vm3135_vm8, %v1649_v43, %v1646_v7  ;;  %v1662_v32 = vadd.f32 1.0, %v2423_v57  ;;  %2428 = vpow2.f32 %v1620_v48  ;;  %v1665_v3 = vmul.f32 -0.5, %v2423_v57 }
 0x1ac   : > { %v1700_v60 = vadd.f32 %v1652_v58, %v1572_v4  ;;  %v1661_v61 = vsel %vm3139_vm9, %v1658_v56, %v1655_v54  ;;  %v1668_v14 = vand.u32 2147483647, %v2423_v57  ;;  %v1575_v43 = vmax.f32 %v3111_v62, 0.0 }
 0x1ad   : > { %v1701_v63 = vadd.f32 %v1661_v61, %v1573_v38  ;;  %2430 = vlog2.f32 %v1662_v32  ;;  %v1666_v10 = vadd.f32 1.0, %v1665_v3  ;;  %v1576_v58 = vmax.f32 %v3127_v34, 0.0 }
 0x1ae   : > { %v1708_v2 = vsel %vm1580_vm10, %v3088_v23, %v1700_v60  ;;  %v2425_v4 = vpop.eup %2424  ;;  %vm1669_vm12 = vcmp.lt.f32.partialorder %v1668_v14, 0.0004427343  ;;  %v1577_v32 = vmax.f32 %v3133_v39, 0.0 }
 0x1af   : > { %2432 = vtanh.f32 %v1708_v2  ;;  %v1709_v6 = vsel %vm1581_vm11, %v3091_v26, %v1701_v63  ;;  %v1722_v16 = vmul.f32 %v2425_v4, %v3080_v12  ;;  %v1667_v24 = vmul.f32 %v2423_v57, %v1666_v10 }
 0x1b0   : > { %2434 = vtanh.f32 %v1709_v6  ;;  %v2427_v0 = vpop.eup %2426  ;;  %v1574_v12 = vmax.f32 %v3100_v52, 0.0 }
 0x1b1   : > { %2436 = vpow2.f32 %v1622_v1  ;;  %v1723_v9 = vmul.f32 %v2427_v0, %v3083_v13  ;;  %v2429_v11 = vpop.eup %2428 }
 0x1b2   : > { %2438 = vpow2.f32 %v1624_v8  ;;  %v1671_v18 = vadd.f32 1.0, %v2429_v11  ;;  %v1674_v21 = vmul.f32 -0.5, %v2429_v11  ;;  %v1677_v36 = vand.u32 2147483647, %v2429_v11 }
 0x1b3   : > { %v2431_v15 = vpop.eup %2430  ;;  %v1738_v17 = vrot.slane %v1723_v9, 4 }
 0x1b4   : > { %v1664_v20 = vmul.f32 0.6931472, %v2431_v15  ;;  %2440 = vlog2.f32 %v1671_v18  ;;  %v1675_v51 = vadd.f32 1.0, %v1674_v21  ;;  %vm1678_vm14 = vcmp.lt.f32.partialorder %v1677_v36, 0.0004427343 }
 0x1b5   : > { %v2433_v19 = vpop.eup %2432  ;;  %v1742_v13 = vsel %vm1174_vm0, %v1722_v16, %v1738_v17 }
 0x1b6   : > { %v2435_v22 = vpop.eup %2434  ;;  %1750 = vst [vmem:[%s3168_s10] sm:$0xff] %v1742_v13  ;;  %v1724_v29 = vmul.f32 %v2433_v19, %v3088_v23  ;;  %v1670_v50 = vsel %vm1669_vm12, %v1667_v24, %v1664_v20  ;;  %v1676_v42 = vmul.f32 %v2429_v11, %v1675_v51 }
 0x1b7   : > { %v2437_v25 = vpop.eup %2436  ;;  %v1725_v27 = vmul.f32 %v2435_v22, %v3091_v26  ;;  %v1702_v38 = vadd.f32 %v1670_v50, %v1574_v12 }
 0x1b8   : > { %v2439_v28 = vpop.eup %2438  ;;  %v1680_v30 = vadd.f32 1.0, %v2437_v25  ;;  %v1683_v33 = vmul.f32 -0.5, %v2437_v25  ;;  %v1686_v44 = vand.u32 2147483647, %v2437_v25 }
 0x1b9   : > { %v1739_v31 = vrot.slane %v1725_v27, 4  ;;  %v1689_v35 = vadd.f32 1.0, %v2439_v28  ;;  %v1692_v40 = vmul.f32 -0.5, %v2439_v28  ;;  %v1710_v45 = vsel %vm1582_vm13, %v3100_v52, %v1702_v38 }
 0x1ba   : > { %2442 = vlog2.f32 %v1680_v30  ;;  %v2441_v26 = vpop.eup %2440  ;;  %v1684_v23 = vadd.f32 1.0, %v1683_v33  ;;  %v1695_v49 = vand.u32 2147483647, %v2439_v28  ;;  %vm1687_vm1 = vcmp.lt.f32.partialorder %v1686_v44, 0.0004427343 }
 0x1bb   : > { %v1743_v37 = vsel %vm1174_vm0, %v1724_v29, %v1739_v31  ;;  %2444 = vlog2.f32 %v1689_v35  ;;  %v1673_v41 = vmul.f32 0.6931472, %v2441_v26  ;;  %v1693_v47 = vadd.f32 1.0, %v1692_v40 }
 0x1bc   : > { %1751 = vst [vmem:[%s3168_s10 + $0x8] sm:$0xff] %v1743_v37  ;;  %v1685_v54 = vmul.f32 %v2437_v25, %v1684_v23  ;;  %2446 = vtanh.f32 %v1710_v45  ;;  %vm1696_vm2 = vcmp.lt.f32.partialorder %v1695_v49, 0.0004427343 }
 0x1bd   : > { %v1679_v46 = vsel %vm1678_vm14, %v1676_v42, %v1673_v41  ;;  %v1694_v60 = vmul.f32 %v2439_v28, %v1693_v47 }
 0x1be   : > { %v1703_v48 = vadd.f32 %v1679_v46, %v1575_v43 }
 0x1c0   : > { %v2443_v7 = vpop.eup %2442  ;;  %v1711_v57 = vsel %vm1583_vm15, %v3111_v62, %v1703_v48 }
 0x1c1   : > { %v1682_v53 = vmul.f32 0.6931472, %v2443_v7  ;;  %v2445_v56 = vpop.eup %2444  ;;  %2448 = vtanh.f32 %v1711_v57 }
 0x1c2   : > { %v1691_v55 = vmul.f32 0.6931472, %v2445_v56  ;;  %v2447_v3 = vpop.eup %2446 }
 0x1c3   : > { %v1688_v59 = vsel %vm1687_vm1, %v1685_v54, %v1682_v53  ;;  %v1726_v8 = vmul.f32 %v2447_v3, %v3100_v52 }
 0x1c4   : > { %v1704_v61 = vadd.f32 %v1688_v59, %v1576_v58  ;;  %v1697_v63 = vsel %vm1696_vm2, %v1694_v60, %v1691_v55 }
 0x1c5   : > { %v1705_v2 = vadd.f32 %v1697_v63, %v1577_v32 }
 0x1c6   : > { %v1712_v1 = vsel %vm1584_vm3, %v3127_v34, %v1704_v61 }
 0x1c7   : > { %2450 = vtanh.f32 %v1712_v1  ;;  %v1713_v5 = vsel %vm1585_vm4, %v3133_v39, %v1705_v2  ;;  %v2449_v6 = vpop.eup %2448 }
 0x1c8   : > { %2452 = vtanh.f32 %v1713_v5  ;;  %v1727_v4 = vmul.f32 %v2449_v6, %v3111_v62 }
 0x1ca   : > { %v1740_v0 = vrot.slane %v1727_v4, 4 }
 0x1cc   : > { %v1744_v10 = vsel %vm1174_vm0, %v1726_v8, %v1740_v0 }
 0x1cd   : > { %v2451_v9 = vpop.eup %2450  ;;  %1752 = vst [vmem:[%s3168_s10 + $0x10] sm:$0xff] %v1744_v10 }
 0x1ce   : > { %v2453_v11 = vpop.eup %2452  ;;  %v1728_v15 = vmul.f32 %v2451_v9, %v3127_v34 }
 0x1cf   : > { %v1729_v14 = vmul.f32 %v2453_v11, %v3133_v39 }
 0x1d1   : > { %v1741_v16 = vrot.slane %v1729_v14, 4 }
 0x1d3   : > { %v1745_v17 = vsel %vm1174_vm0, %v1728_v15, %v1741_v16 }
 0x1d4   : > { %1753 = vst [vmem:[%s3168_s10 + $0x18] sm:$0xff] %v1745_v17 }
 0x1d5 PF: > { %p13_p9 = scmp.ge.s32.totalorder %s2531_s25, 6   ;;  %s3226_s21 = smov %s2472_s22 }
 0x1d6   : > { %s3227_s22 = smov %s2540_s28  ;;  %s3228_s23 = smov %s2531_s25 }
 0x1d7   :  { %15 = sbr.rel (!%p13_p9) target bundleno = 2 (0x2), region = 106 }

</bundles_post_ra>
